<compile_context>
chip_gen: v7x
topology: tpu7x:2x2x1
jax: 0.10.0
libtpu: 0.0.40
codegen_flags: <defaults>
</compile_context>

<pallas_src>
import functools

import jax
import jax.numpy as jnp
from jax.experimental import pallas as pl
from jax.experimental.pallas import tpu as pltpu

# Explicit scoped-VMEM budget: well above what these tiles need, within every chip's
# physical VMEM (v5e/v6e 128 MiB, v7x 64 MiB) and above v5e's 16 MiB default scoped limit.
VMEM_LIMIT_BYTES = 32 * 1024 * 1024


# ---------------------------------------------------------------------------
# Kernel 1: fused  Y = leaky_alpha( X @ W + b )  with a per-column negative slope
# ---------------------------------------------------------------------------
def _gemm_bias_leaky_kernel(x_ref, w_ref, b_ref, a_ref, o_ref):
    acc = jnp.dot(x_ref[...], w_ref[...], preferred_element_type=jnp.float32)
    y = acc + b_ref[...]
    y = jnp.where(y >= 0.0, y, a_ref[...] * y)   # alpha=0.1 -> LeakyReLU, alpha=1.0 -> identity
    o_ref[...] = y.astype(o_ref.dtype)


def _pick_tm(m, cap=512):
    """Largest power-of-two M-tile <= cap that divides M (no pad copy); prefer >= 2 grid
    steps so both v7x TensorCores get work."""
    if m % 8 != 0:
        return min(cap, m)                       # ragged M: wrapper falls back to padding
    tm = 8
    while tm * 2 <= min(cap, m) and m % (tm * 2) == 0:
        tm *= 2
    if m == tm and tm >= 16:
        tm //= 2
    return tm


def gemm_bias_leaky(x, w, bias, alpha):
    """(M,K)@(K,N) + per-column bias + per-column LeakyReLU. bf16 operands, f32 accumulate."""
    m, k = x.shape
    n = w.shape[1]
    tm = _pick_tm(m)
    n_tiles = pl.cdiv(m, tm)
    mp = n_tiles * tm
    if mp != m:                                  # avoided at well-formed shapes
        x = jnp.pad(x, ((0, mp - m), (0, 0)))
    out = pl.pallas_call(
        _gemm_bias_leaky_kernel,
        out_shape=jax.ShapeDtypeStruct((mp, n), jnp.bfloat16),
        grid=(n_tiles,),
        in_specs=[
            pl.BlockSpec((tm, k), lambda i: (i, 0)),
            pl.BlockSpec((k, n), lambda i: (0, 0)),
            pl.BlockSpec((1, n), lambda i: (0, 0)),
            pl.BlockSpec((1, n), lambda i: (0, 0)),
        ],
        out_specs=pl.BlockSpec((tm, n), lambda i: (i, 0)),
        compiler_params=pltpu.CompilerParams(
            dimension_semantics=("parallel",),
            vmem_limit_bytes=VMEM_LIMIT_BYTES),
    )(x, w, bias, alpha)
    return out[:m] if mp != m else out


# ---------------------------------------------------------------------------
# Kernels 2/3: small conv expressed as a sum over static taps (one image per grid step)
# ---------------------------------------------------------------------------
def _conv_taps_kernel(p_ref, w_ref, b_ref, o_ref, *, taps, ho_count, wo_count):
    # p_ref : (RP, CP, Hq, Wq, Cin)  parity planes of the padded input (one image)
    # w_ref : (T, Cin, Cout)         per-tap weight matrices (BN scale folded in)
    # b_ref : (1, Cout)              folded BN shift
    # o_ref : (Ho, Wo, Cout)
    w_taps = [w_ref[t] for t in range(len(taps))]     # hoisted: loaded once per grid step
    bias = b_ref[...]
    cout = bias.shape[-1]
    for ho in range(ho_count):                        # static unrolled row loop, 2-D ops only
        acc = jnp.zeros((wo_count, cout), jnp.float32)
        for t, (rp, cp, ro, co) in enumerate(taps):
            win = p_ref[rp, cp, ho + ro, co:co + wo_count, :]       # (Wo, Cin), contiguous
            acc = acc + jnp.dot(win, w_taps[t], preferred_element_type=jnp.float32)
        y = acc + bias
        y = jnp.where(y >= 0.0, y, 0.1 * y)           # LeakyReLU(0.1)
        o_ref[ho] = y.astype(o_ref.dtype)


def _conv_taps(planes, w_taps, shift, taps, ho, wo):
    b, rp, cp, hq, wq, cin = planes.shape
    ntaps, _, cout = w_taps.shape
    bias = shift.reshape(1, cout).astype(jnp.float32)
    kern = functools.partial(_conv_taps_kernel, taps=taps, ho_count=ho, wo_count=wo)
    return pl.pallas_call(
        kern,
        out_shape=jax.ShapeDtypeStruct((b, ho, wo, cout), jnp.bfloat16),
        grid=(b,),
        in_specs=[
            pl.BlockSpec((None, rp, cp, hq, wq, cin), lambda i: (i, 0, 0, 0, 0, 0)),
            pl.BlockSpec((ntaps, cin, cout), lambda i: (0, 0, 0)),
            pl.BlockSpec((1, cout), lambda i: (0, 0)),
        ],
        out_specs=pl.BlockSpec((None, ho, wo, cout), lambda i: (i, 0, 0, 0)),
        compiler_params=pltpu.CompilerParams(
            dimension_semantics=("parallel",),
            vmem_limit_bytes=VMEM_LIMIT_BYTES),
    )(planes, w_taps, bias)


def conv3x3_s2(x_nhwc, w_taps, shift):
    """3x3 / stride-2 / pad-1 conv + folded BN + LeakyReLU.  w_taps: (9, Cin, Cout)."""
    b, h, w, c = x_nhwc.shape
    ho, wo = (h + 1) // 2, (w + 1) // 2
    # Zero-pad by 1 and split the spatial dims by parity so every stride-2 window becomes a
    # contiguous static slice inside the kernel (no 9x im2col materialization in HBM).
    ph = h + 2 + ((h + 2) % 2)
    pw = w + 2 + ((w + 2) % 2)
    xp = jnp.pad(x_nhwc, ((0, 0), (1, ph - h - 1), (1, pw - w - 1), (0, 0)))
    planes = jnp.transpose(xp.reshape(b, ph // 2, 2, pw // 2, 2, c), (0, 2, 4, 1, 3, 5))
    # tap (di,dj) of the 3x3 kernel lives in parity plane (di&1, dj&1) at offset (di//2, dj//2)
    taps = tuple((di & 1, dj & 1, di // 2, dj // 2) for di in range(3) for dj in range(3))
    return _conv_taps(planes, w_taps, shift, taps, ho, wo)


def upsample2x_then_conv3x3_s2(x_nhwc, w2_taps, shift):
    """decode (2x nearest upsample) followed by a 3x3/s2/p1 conv, fused exactly into an
    equivalent 2x2 stride-1 conv with top/left zero-padding.  w2_taps: (4, Cin, Cout)."""
    b, h, w, c = x_nhwc.shape
    xp = jnp.pad(x_nhwc, ((0, 0), (1, 0), (1, 0), (0, 0)))          # pad top/left only
    planes = xp.reshape(b, 1, 1, h + 1, w + 1, c)
    taps = tuple((0, 0, a, bb) for a in range(2) for bb in range(2))
    return _conv_taps(planes, w2_taps, shift, taps, h, w)


# ---------------------------------------------------------------------------
# Kernel 4: endconv fused with decode2 upsample and channel concat
# ---------------------------------------------------------------------------
def _endconv_kernel(t1_ref, e2_ref, g_ref, wt_ref, wb_ref, b_ref, o_ref):
    # Nearest-neighbour upsample = one-hot gather matmul (exact copy); cast back to bf16 is
    # lossless since every gathered value is already a bf16 value.
    up = jnp.dot(g_ref[...], e2_ref[...],
                 preferred_element_type=jnp.float32).astype(jnp.bfloat16)
    acc = jnp.dot(t1_ref[...], wt_ref[...], preferred_element_type=jnp.float32)
    acc = acc + jnp.dot(up, wb_ref[...], preferred_element_type=jnp.float32)
    y = acc + b_ref[...]
    y = jnp.where(y >= 0.0, y, 0.1 * y)
    o_ref[...] = y.astype(o_ref.dtype)


def endconv_fused(t1_flat, e2_flat, gather, w_top, w_bot, shift):
    b, hw, ch = t1_flat.shape
    _, hw4, ch2 = e2_flat.shape
    c2 = w_top.shape[1]
    bias = shift.reshape(1, c2).astype(jnp.float32)
    return pl.pallas_call(
        _endconv_kernel,
        out_shape=jax.ShapeDtypeStruct((b, hw, c2), jnp.float32),
        grid=(b,),
        in_specs=[
            pl.BlockSpec((None, hw, ch), lambda i: (i, 0, 0)),
            pl.BlockSpec((None, hw4, ch2), lambda i: (i, 0, 0)),
            pl.BlockSpec((hw, hw4), lambda i: (0, 0)),
            pl.BlockSpec((ch, c2), lambda i: (0, 0)),
            pl.BlockSpec((ch2, c2), lambda i: (0, 0)),
            pl.BlockSpec((1, c2), lambda i: (0, 0)),
        ],
        out_specs=pl.BlockSpec((None, hw, c2), lambda i: (i, 0, 0)),
        compiler_params=pltpu.CompilerParams(
            dimension_semantics=("parallel",),
            vmem_limit_bytes=VMEM_LIMIT_BYTES),
    )(t1_flat, e2_flat, gather, w_top, w_bot, bias)


def _nearest_upsample_gather(h, w):
    """One-hot (H*W, (H/2)*(W/2)) matrix: row h*W+w selects source (h//2, w//2)."""
    p = jnp.arange(h * w)
    src = (p // w // 2) * (w // 2) + (p % w) // 2
    return (src[:, None] == jnp.arange((h // 2) * (w // 2))[None, :]).astype(jnp.bfloat16)


# ---------------------------------------------------------------------------
# Parameters (deterministic, synthetic) and forward pass
# ---------------------------------------------------------------------------
def bn_fold(gamma, beta, mean, var, eps=1e-5):
    scale = gamma / jnp.sqrt(var + eps)
    shift = beta - mean * scale
    return scale, shift


def init_params(key, c1, c2):
    tmp1 = c1 // 2
    tmp2 = c1 - tmp1
    ch = c2 // 2
    ch2 = c2 - c2 // 2

    def nrm(k, shape, s=0.1):
        return s * jax.random.normal(k, shape, dtype=jnp.float32)

    keys = jax.random.split(key, 24)
    p = {}
    # detials_conv / encode_conv: plain Conv2d 1x1 with bias, no BN, no activation
    p["det_w"] = nrm(keys[0], (tmp1, c1))
    p["det_b"] = nrm(keys[1], (tmp1,))
    p["enc_w"] = nrm(keys[2], (tmp2, c1))
    p["enc_b"] = nrm(keys[3], (tmp2,))

    def conv_block(kw, kg, kb, km, kv, shape_w, cout):
        w = nrm(kw, shape_w)
        gamma = 1.0 + 0.1 * jax.random.normal(kg, (cout,), dtype=jnp.float32)
        beta = 0.1 * jax.random.normal(kb, (cout,), dtype=jnp.float32)
        mean = 0.1 * jax.random.normal(km, (cout,), dtype=jnp.float32)
        var = 1.0 + 0.1 * jax.random.uniform(kv, (cout,), dtype=jnp.float32)
        scale, shift = bn_fold(gamma, beta, mean, var)
        return w, scale, shift

    p["c2_w"], p["c2_scale"], p["c2_shift"] = conv_block(
        keys[4], keys[5], keys[6], keys[7], keys[8], (ch, tmp1), ch)      # Conv(tmp1, c2//2, 1)
    p["e1_w"], p["e1_scale"], p["e1_shift"] = conv_block(
        keys[9], keys[10], keys[11], keys[12], keys[13], (ch, tmp2, 3, 3), ch)   # encode1
    p["e2_w"], p["e2_scale"], p["e2_shift"] = conv_block(
        keys[14], keys[15], keys[16], keys[17], keys[18], (ch2, ch, 3, 3), ch2)  # encode2
    p["end_w"], p["end_scale"], p["end_shift"] = conv_block(
        keys[19], keys[20], keys[21], keys[22], keys[23], (c2, c2), c2)          # endconv
    return p


def context_detail_forward(x_nchw, p):
    b, c1, h, w = x_nchw.shape
    assert h % 2 == 0 and w % 2 == 0, "ContextDetail needs even spatial dims"
    ch = p["c2_w"].shape[0]           # c2 // 2
    ch2 = p["e2_w"].shape[0]          # c2 - c2 // 2
    c2 = p["end_w"].shape[0]
    tmp2 = p["enc_w"].shape[0]

    x = jnp.transpose(x_nchw, (0, 2, 3, 1))                        # NCHW -> NHWC
    m = b * h * w
    x2d = x.reshape(m, c1).astype(jnp.bfloat16)

    # ---- fused front GEMM: [tmp_out_1 | split2] in a single pass over x -------------
    b_mid = p["c2_w"].T * p["c2_scale"][None, :]                   # (tmp1, ch), BN folded
    w_left = p["det_w"].T @ b_mid                                  # detials_conv o conv_2
    b_left = p["det_b"] @ b_mid + p["c2_shift"]
    w_front = jnp.concatenate([w_left, p["enc_w"].T], axis=1).astype(jnp.bfloat16)
    b_front = jnp.concatenate([b_left, p["enc_b"]]).reshape(1, ch + tmp2)
    alpha = jnp.concatenate([jnp.full((ch,), 0.1, jnp.float32),    # LeakyReLU for tmp_out_1
                             jnp.ones((tmp2,), jnp.float32)]       # identity for split2
                            ).reshape(1, ch + tmp2)
    front = gemm_bias_leaky(x2d, w_front, b_front, alpha)          # (M, ch+tmp2) bf16
    t1_flat = front[:, :ch]
    split2 = front[:, ch:].reshape(b, h, w, tmp2)

    # ---- encode1: 3x3 / stride-2 conv --------------------------------------------------
    w_e1 = p["e1_w"] * p["e1_scale"][:, None, None, None]
    w_e1_taps = jnp.transpose(w_e1, (2, 3, 1, 0)).reshape(9, tmp2, ch).astype(jnp.bfloat16)
    enc1 = conv3x3_s2(split2, w_e1_taps, p["e1_shift"])            # (B, H/2, W/2, ch) bf16

    # ---- decode1 + encode2 fused into an exact 2x2 / stride-1 conv ---------------------
    w_e2 = p["e2_w"] * p["e2_scale"][:, None, None, None]
    wm = jnp.transpose(w_e2, (2, 3, 1, 0))                         # (3, 3, ch, ch2)
    w2_taps = jnp.stack([wm[0, 0],
                         wm[0, 1] + wm[0, 2],
                         wm[1, 0] + wm[2, 0],
                         wm[1, 1] + wm[1, 2] + wm[2, 1] + wm[2, 2]],
                        axis=0).astype(jnp.bfloat16)               # (4, ch, ch2)
    enc2 = upsample2x_then_conv3x3_s2(enc1, w2_taps, p["e2_shift"])  # (B, H/2, W/2, ch2)

    # ---- endconv fused with decode2 upsample + channel concat --------------------------
    w_end = p["end_w"].T * p["end_scale"][None, :]                 # (c2, c2), BN folded
    w_top = w_end[:ch].astype(jnp.bfloat16)
    w_bot = w_end[ch:].astype(jnp.bfloat16)
    gather = _nearest_upsample_gather(h, w)
    out_flat = endconv_fused(t1_flat.reshape(b, h * w, ch),
                             enc2.reshape(b, (h // 2) * (w // 2), ch2),
                             gather, w_top, w_bot, p["end_shift"])
    return jnp.transpose(out_flat.reshape(b, h, w, c2), (0, 3, 1, 2))   # NHWC -> NCHW


# ---------------------------------------------------------------------------
# Pure-JAX f32 reference of the ORIGINAL (unfused) graph, for validation
# ---------------------------------------------------------------------------
def reference_forward(x_nchw, p):
    x = jnp.transpose(x_nchw, (0, 2, 3, 1))

    def conv1x1(t, w, b=None):
        y = jnp.einsum("bhwc,oc->bhwo", t, w)
        return y if b is None else y + b

    def conv3(t, w):
        return jax.lax.conv_general_dilated(
            t, jnp.transpose(w, (2, 3, 1, 0)), window_strides=(2, 2),
            padding=((1, 1), (1, 1)), dimension_numbers=("NHWC", "HWIO", "NHWC"))

    def bn_act(y, scale, shift):
        y = y * scale + shift
        return jnp.where(y >= 0.0, y, 0.1 * y)

    def up2(t):
        return jnp.repeat(jnp.repeat(t, 2, axis=1), 2, axis=2)

    split1 = conv1x1(x, p["det_w"], p["det_b"])
    split2 = conv1x1(x, p["enc_w"], p["enc_b"])
    t1 = bn_act(conv1x1(split1, p["c2_w"]), p["c2_scale"], p["c2_shift"])
    t = bn_act(conv3(split2, p["e1_w"]), p["e1_scale"], p["e1_shift"])
    t = up2(t)
    t = bn_act(conv3(t, p["e2_w"]), p["e2_scale"], p["e2_shift"])
    t2 = up2(t)
    cat = jnp.concatenate([t1, t2], axis=-1)
    out = bn_act(conv1x1(cat, p["end_w"]), p["end_scale"], p["end_shift"])
    return jnp.transpose(out, (0, 3, 1, 2))


if __name__ == "__main__":
    B, C1, H, W = 2, 8, 16, 16
    C2 = 16

    key = jax.random.PRNGKey(0)
    kx, kp = jax.random.split(key)
    x = jax.random.normal(kx, (B, C1, H, W), dtype=jnp.float32)
    params = init_params(kp, C1, C2)

    fwd = jax.jit(context_detail_forward)
    out = fwd(x, params)
    jax.block_until_ready(out)

    assert out.shape == (B, C2, H, W), out.shape
    assert bool(jnp.all(jnp.isfinite(out)))

    # Validate the fused Pallas path against the unfused f32 reference (bf16-tolerant).
    ref = reference_forward(x, params)
    err = float(jnp.max(jnp.abs(out - ref)))
    assert err < 5e-2, f"max abs error vs reference: {err}"

    print("KERNEL_OK")
</pallas_src>

<mosaic_0001>
module attributes {stable_mosaic.version = 11 : i64} {
  func.func @_gemm_bias_leaky_kernel(%arg0: i32, %arg1: memref<256x8xbf16, #tpu.memory_space<vmem>>, %arg2: memref<8x12xbf16, #tpu.memory_space<vmem>>, %arg3: memref<1x12xf32, #tpu.memory_space<vmem>>, %arg4: memref<1x12xf32, #tpu.memory_space<vmem>>, %arg5: memref<256x12xbf16, #tpu.memory_space<vmem>>) attributes {dimension_semantics = [#tpu.dimension_semantics<parallel>], iteration_bounds = array<i64: 2>, scalar_prefetch = 0 : i64, scratch_operands = 0 : i64, tpu.core_type = #tpu.core_type<tc>, window_params = [{transform_indices = @transform_0, window_bounds = array<i64: 256, 8>}, {pipeline_mode = #tpu.pipeline_mode<synchronous>, transform_indices = @transform_1, window_bounds = array<i64: 8, 12>}, {pipeline_mode = #tpu.pipeline_mode<synchronous>, transform_indices = @transform_2, window_bounds = array<i64: 1, 12>}, {pipeline_mode = #tpu.pipeline_mode<synchronous>, transform_indices = @transform_3, window_bounds = array<i64: 1, 12>}, {transform_indices = @transform_4, window_bounds = array<i64: 256, 12>}]} {
    %c0 = arith.constant 0 : index
    %c0_0 = arith.constant 0 : index
    %0 = vector.load %arg1[%c0, %c0_0] : memref<256x8xbf16, #tpu.memory_space<vmem>>, vector<256x8xbf16>
    %c0_1 = arith.constant 0 : index
    %c0_2 = arith.constant 0 : index
    %1 = vector.load %arg2[%c0_1, %c0_2] : memref<8x12xbf16, #tpu.memory_space<vmem>>, vector<8x12xbf16>
    %cst = arith.constant dense<0.000000e+00> : vector<256x12xf32>
    %2 = tpu.matmul %0, %1, %cst {dimension_numbers = #tpu.dot_dimension_numbers<[1], [0], [0], [1], [0, 0, 1, 1], [], []>} : vector<256x8xbf16>, vector<8x12xbf16>, vector<256x12xf32> -> vector<256x12xf32>
    %c0_3 = arith.constant 0 : index
    %c0_4 = arith.constant 0 : index
    %3 = vector.load %arg3[%c0_3, %c0_4] : memref<1x12xf32, #tpu.memory_space<vmem>>, vector<1x12xf32>
    %4 = vector.broadcast %3 : vector<1x12xf32> to vector<256x12xf32>
    %5 = arith.addf %2, %4 : vector<256x12xf32>
    %cst_5 = arith.constant 0.000000e+00 : f32
    %6 = vector.broadcast %cst_5 : f32 to vector<256x12xf32>
    %7 = arith.cmpf oge, %5, %6 : vector<256x12xf32>
    %c0_6 = arith.constant 0 : index
    %c0_7 = arith.constant 0 : index
    %8 = vector.load %arg4[%c0_6, %c0_7] : memref<1x12xf32, #tpu.memory_space<vmem>>, vector<1x12xf32>
    %9 = vector.broadcast %8 : vector<1x12xf32> to vector<256x12xf32>
    %10 = arith.mulf %9, %5 : vector<256x12xf32>
    %11 = arith.select %7, %5, %10 : vector<256x12xi1>, vector<256x12xf32>
    %12 = arith.truncf %11 : vector<256x12xf32> to vector<256x12xbf16>
    %c0_8 = arith.constant 0 : index
    %c0_9 = arith.constant 0 : index
    %13 = vector.load %arg5[%c0_8, %c0_9] : memref<256x12xbf16, #tpu.memory_space<vmem>>, vector<256x12xbf16>
    tpu.vector_store %arg5[%c0_8, %c0_9], %12 {strides = array<i32>} : memref<256x12xbf16, #tpu.memory_space<vmem>>, vector<256x12xbf16>,
    return
  }
  func.func @transform_0(%arg0: i32) -> (i32, i32) {
    %c0_i32 = arith.constant 0 : i32
    %c0_i32_0 = arith.constant 0 : i32
    return %arg0, %c0_i32 : i32, i32
  }
  func.func @transform_1(%arg0: i32) -> (i32, i32) {
    %c0_i32 = arith.constant 0 : i32
    %c0_i32_0 = arith.constant 0 : i32
    %c0_i32_1 = arith.constant 0 : i32
    return %c0_i32, %c0_i32_0 : i32, i32
  }
  func.func @transform_2(%arg0: i32) -> (i32, i32) {
    %c0_i32 = arith.constant 0 : i32
    %c0_i32_0 = arith.constant 0 : i32
    %c0_i32_1 = arith.constant 0 : i32
    return %c0_i32, %c0_i32_0 : i32, i32
  }
  func.func @transform_3(%arg0: i32) -> (i32, i32) {
    %c0_i32 = arith.constant 0 : i32
    %c0_i32_0 = arith.constant 0 : i32
    %c0_i32_1 = arith.constant 0 : i32
    return %c0_i32, %c0_i32_0 : i32, i32
  }
  func.func @transform_4(%arg0: i32) -> (i32, i32) {
    %c0_i32 = arith.constant 0 : i32
    %c0_i32_0 = arith.constant 0 : i32
    return %arg0, %c0_i32 : i32, i32
  }
}

module attributes {stable_mosaic.version = 11 : i64} {
  func.func @_conv_taps_kernel(%arg0: i32, %arg1: memref<1x2x2x9x9x4xbf16, #tpu.memory_space<vmem>>, %arg2: memref<9x4x8xbf16, #tpu.memory_space<vmem>>, %arg3: memref<1x8xf32, #tpu.memory_space<vmem>>, %arg4: memref<1x8x8x8xbf16, #tpu.memory_space<vmem>>) attributes {dimension_semantics = [#tpu.dimension_semantics<parallel>], iteration_bounds = array<i64: 2>, scalar_prefetch = 0 : i64, scratch_operands = 0 : i64, tpu.core_type = #tpu.core_type<tc>, window_params = [{transform_indices = @transform_0, window_bounds = array<i64: 1, 2, 2, 9, 9, 4>}, {pipeline_mode = #tpu.pipeline_mode<synchronous>, transform_indices = @transform_1, window_bounds = array<i64: 9, 4, 8>}, {pipeline_mode = #tpu.pipeline_mode<synchronous>, transform_indices = @transform_2, window_bounds = array<i64: 1, 8>}, {transform_indices = @transform_3, window_bounds = array<i64: 1, 8, 8, 8>}]} {
    %c0 = arith.constant 0 : index
    %c0_0 = arith.constant 0 : index
    %c0_1 = arith.constant 0 : index
    %0 = vector.load %arg2[%c0, %c0_0, %c0_1] : memref<9x4x8xbf16, #tpu.memory_space<vmem>>, vector<1x4x8xbf16>
    %1 = vector.shape_cast %0 : vector<1x4x8xbf16> to vector<4x8xbf16>
    %c1 = arith.constant 1 : index
    %c0_2 = arith.constant 0 : index
    %c0_3 = arith.constant 0 : index
    %2 = vector.load %arg2[%c1, %c0_2, %c0_3] : memref<9x4x8xbf16, #tpu.memory_space<vmem>>, vector<1x4x8xbf16>
    %3 = vector.shape_cast %2 : vector<1x4x8xbf16> to vector<4x8xbf16>
    %c2 = arith.constant 2 : index
    %c0_4 = arith.constant 0 : index
    %c0_5 = arith.constant 0 : index
    %4 = vector.load %arg2[%c2, %c0_4, %c0_5] : memref<9x4x8xbf16, #tpu.memory_space<vmem>>, vector<1x4x8xbf16>
    %5 = vector.shape_cast %4 : vector<1x4x8xbf16> to vector<4x8xbf16>
    %c3 = arith.constant 3 : index
    %c0_6 = arith.constant 0 : index
    %c0_7 = arith.constant 0 : index
    %6 = vector.load %arg2[%c3, %c0_6, %c0_7] : memref<9x4x8xbf16, #tpu.memory_space<vmem>>, vector<1x4x8xbf16>
    %7 = vector.shape_cast %6 : vector<1x4x8xbf16> to vector<4x8xbf16>
    %c4 = arith.constant 4 : index
    %c0_8 = arith.constant 0 : index
    %c0_9 = arith.constant 0 : index
    %8 = vector.load %arg2[%c4, %c0_8, %c0_9] : memref<9x4x8xbf16, #tpu.memory_space<vmem>>, vector<1x4x8xbf16>
    %9 = vector.shape_cast %8 : vector<1x4x8xbf16> to vector<4x8xbf16>
    %c5 = arith.constant 5 : index
    %c0_10 = arith.constant 0 : index
    %c0_11 = arith.constant 0 : index
    %10 = vector.load %arg2[%c5, %c0_10, %c0_11] : memref<9x4x8xbf16, #tpu.memory_space<vmem>>, vector<1x4x8xbf16>
    %11 = vector.shape_cast %10 : vector<1x4x8xbf16> to vector<4x8xbf16>
    %c6 = arith.constant 6 : index
    %c0_12 = arith.constant 0 : index
    %c0_13 = arith.constant 0 : index
    %12 = vector.load %arg2[%c6, %c0_12, %c0_13] : memref<9x4x8xbf16, #tpu.memory_space<vmem>>, vector<1x4x8xbf16>
    %13 = vector.shape_cast %12 : vector<1x4x8xbf16> to vector<4x8xbf16>
    %c7 = arith.constant 7 : index
    %c0_14 = arith.constant 0 : index
    %c0_15 = arith.constant 0 : index
    %14 = vector.load %arg2[%c7, %c0_14, %c0_15] : memref<9x4x8xbf16, #tpu.memory_space<vmem>>, vector<1x4x8xbf16>
    %15 = vector.shape_cast %14 : vector<1x4x8xbf16> to vector<4x8xbf16>
    %c8 = arith.constant 8 : index
    %c0_16 = arith.constant 0 : index
    %c0_17 = arith.constant 0 : index
    %16 = vector.load %arg2[%c8, %c0_16, %c0_17] : memref<9x4x8xbf16, #tpu.memory_space<vmem>>, vector<1x4x8xbf16>
    %17 = vector.shape_cast %16 : vector<1x4x8xbf16> to vector<4x8xbf16>
    %c0_18 = arith.constant 0 : index
    %c0_19 = arith.constant 0 : index
    %18 = vector.load %arg3[%c0_18, %c0_19] : memref<1x8xf32, #tpu.memory_space<vmem>>, vector<1x8xf32>
    %cst = arith.constant 0.000000e+00 : f32
    %19 = vector.broadcast %cst : f32 to vector<8x8xf32>
    %c0_20 = arith.constant 0 : index
    %c0_21 = arith.constant 0 : index
    %c0_22 = arith.constant 0 : index
    %c0_23 = arith.constant 0 : index
    %c0_24 = arith.constant 0 : index
    %c0_25 = arith.constant 0 : index
    %20 = vector.load %arg1[%c0_20, %c0_21, %c0_22, %c0_23, %c0_24, %c0_25] : memref<1x2x2x9x9x4xbf16, #tpu.memory_space<vmem>>, vector<1x1x1x1x8x4xbf16>
    %21 = vector.shape_cast %20 : vector<1x1x1x1x8x4xbf16> to vector<8x4xbf16>
    %cst_26 = arith.constant dense<0.000000e+00> : vector<8x8xf32>
    %22 = tpu.matmul %21, %1, %cst_26 {dimension_numbers = #tpu.dot_dimension_numbers<[1], [0], [0], [1], [0, 0, 1, 1], [], []>} : vector<8x4xbf16>, vector<4x8xbf16>, vector<8x8xf32> -> vector<8x8xf32>
    %23 = arith.addf %19, %22 : vector<8x8xf32>
    %c0_27 = arith.constant 0 : index
    %c0_28 = arith.constant 0 : index
    %c1_29 = arith.constant 1 : index
    %c0_30 = arith.constant 0 : index
    %c0_31 = arith.constant 0 : index
    %c0_32 = arith.constant 0 : index
    %24 = vector.load %arg1[%c0_27, %c0_28, %c1_29, %c0_30, %c0_31, %c0_32] : memref<1x2x2x9x9x4xbf16, #tpu.memory_space<vmem>>, vector<1x1x1x1x8x4xbf16>
    %25 = vector.shape_cast %24 : vector<1x1x1x1x8x4xbf16> to vector<8x4xbf16>
    %cst_33 = arith.constant dense<0.000000e+00> : vector<8x8xf32>
    %26 = tpu.matmul %25, %3, %cst_33 {dimension_numbers = #tpu.dot_dimension_numbers<[1], [0], [0], [1], [0, 0, 1, 1], [], []>} : vector<8x4xbf16>, vector<4x8xbf16>, vector<8x8xf32> -> vector<8x8xf32>
    %27 = arith.addf %23, %26 : vector<8x8xf32>
    %c0_34 = arith.constant 0 : index
    %c0_35 = arith.constant 0 : index
    %c0_36 = arith.constant 0 : index
    %c0_37 = arith.constant 0 : index
    %c1_38 = arith.constant 1 : index
    %c0_39 = arith.constant 0 : index
    %28 = vector.load %arg1[%c0_34, %c0_35, %c0_36, %c0_37, %c1_38, %c0_39] : memref<1x2x2x9x9x4xbf16, #tpu.memory_space<vmem>>, vector<1x1x1x1x8x4xbf16>
    %29 = vector.shape_cast %28 : vector<1x1x1x1x8x4xbf16> to vector<8x4xbf16>
    %cst_40 = arith.constant dense<0.000000e+00> : vector<8x8xf32>
    %30 = tpu.matmul %29, %5, %cst_40 {dimension_numbers = #tpu.dot_dimension_numbers<[1], [0], [0], [1], [0, 0, 1, 1], [], []>} : vector<8x4xbf16>, vector<4x8xbf16>, vector<8x8xf32> -> vector<8x8xf32>
    %31 = arith.addf %27, %30 : vector<8x8xf32>
    %c0_41 = arith.constant 0 : index
    %c1_42 = arith.constant 1 : index
    %c0_43 = arith.constant 0 : index
    %c0_44 = arith.constant 0 : index
    %c0_45 = arith.constant 0 : index
    %c0_46 = arith.constant 0 : index
    %32 = vector.load %arg1[%c0_41, %c1_42, %c0_43, %c0_44, %c0_45, %c0_46] : memref<1x2x2x9x9x4xbf16, #tpu.memory_space<vmem>>, vector<1x1x1x1x8x4xbf16>
    %33 = vector.shape_cast %32 : vector<1x1x1x1x8x4xbf16> to vector<8x4xbf16>
    %cst_47 = arith.constant dense<0.000000e+00> : vector<8x8xf32>
    %34 = tpu.matmul %33, %7, %cst_47 {dimension_numbers = #tpu.dot_dimension_numbers<[1], [0], [0], [1], [0, 0, 1, 1], [], []>} : vector<8x4xbf16>, vector<4x8xbf16>, vector<8x8xf32> -> vector<8x8xf32>
    %35 = arith.addf %31, %34 : vector<8x8xf32>
    %c0_48 = arith.constant 0 : index
    %c1_49 = arith.constant 1 : index
    %c1_50 = arith.constant 1 : index
    %c0_51 = arith.constant 0 : index
    %c0_52 = arith.constant 0 : index
    %c0_53 = arith.constant 0 : index
    %36 = vector.load %arg1[%c0_48, %c1_49, %c1_50, %c0_51, %c0_52, %c0_53] : memref<1x2x2x9x9x4xbf16, #tpu.memory_space<vmem>>, vector<1x1x1x1x8x4xbf16>
    %37 = vector.shape_cast %36 : vector<1x1x1x1x8x4xbf16> to vector<8x4xbf16>
    %cst_54 = arith.constant dense<0.000000e+00> : vector<8x8xf32>
    %38 = tpu.matmul %37, %9, %cst_54 {dimension_numbers = #tpu.dot_dimension_numbers<[1], [0], [0], [1], [0, 0, 1, 1], [], []>} : vector<8x4xbf16>, vector<4x8xbf16>, vector<8x8xf32> -> vector<8x8xf32>
    %39 = arith.addf %35, %38 : vector<8x8xf32>
    %c0_55 = arith.constant 0 : index
    %c1_56 = arith.constant 1 : index
    %c0_57 = arith.constant 0 : index
    %c0_58 = arith.constant 0 : index
    %c1_59 = arith.constant 1 : index
    %c0_60 = arith.constant 0 : index
    %40 = vector.load %arg1[%c0_55, %c1_56, %c0_57, %c0_58, %c1_59, %c0_60] : memref<1x2x2x9x9x4xbf16, #tpu.memory_space<vmem>>, vector<1x1x1x1x8x4xbf16>
    %41 = vector.shape_cast %40 : vector<1x1x1x1x8x4xbf16> to vector<8x4xbf16>
    %cst_61 = arith.constant dense<0.000000e+00> : vector<8x8xf32>
    %42 = tpu.matmul %41, %11, %cst_61 {dimension_numbers = #tpu.dot_dimension_numbers<[1], [0], [0], [1], [0, 0, 1, 1], [], []>} : vector<8x4xbf16>, vector<4x8xbf16>, vector<8x8xf32> -> vector<8x8xf32>
    %43 = arith.addf %39, %42 : vector<8x8xf32>
    %c0_62 = arith.constant 0 : index
    %c0_63 = arith.constant 0 : index
    %c0_64 = arith.constant 0 : index
    %c1_65 = arith.constant 1 : index
    %c0_66 = arith.constant 0 : index
    %c0_67 = arith.constant 0 : index
    %44 = vector.load %arg1[%c0_62, %c0_63, %c0_64, %c1_65, %c0_66, %c0_67] : memref<1x2x2x9x9x4xbf16, #tpu.memory_space<vmem>>, vector<1x1x1x1x8x4xbf16>
    %45 = vector.shape_cast %44 : vector<1x1x1x1x8x4xbf16> to vector<8x4xbf16>
    %cst_68 = arith.constant dense<0.000000e+00> : vector<8x8xf32>
    %46 = tpu.matmul %45, %13, %cst_68 {dimension_numbers = #tpu.dot_dimension_numbers<[1], [0], [0], [1], [0, 0, 1, 1], [], []>} : vector<8x4xbf16>, vector<4x8xbf16>, vector<8x8xf32> -> vector<8x8xf32>
    %47 = arith.addf %43, %46 : vector<8x8xf32>
    %c0_69 = arith.constant 0 : index
    %c0_70 = arith.constant 0 : index
    %c1_71 = arith.constant 1 : index
    %c1_72 = arith.constant 1 : index
    %c0_73 = arith.constant 0 : index
    %c0_74 = arith.constant 0 : index
    %48 = vector.load %arg1[%c0_69, %c0_70, %c1_71, %c1_72, %c0_73, %c0_74] : memref<1x2x2x9x9x4xbf16, #tpu.memory_space<vmem>>, vector<1x1x1x1x8x4xbf16>
    %49 = vector.shape_cast %48 : vector<1x1x1x1x8x4xbf16> to vector<8x4xbf16>
    %cst_75 = arith.constant dense<0.000000e+00> : vector<8x8xf32>
    %50 = tpu.matmul %49, %15, %cst_75 {dimension_numbers = #tpu.dot_dimension_numbers<[1], [0], [0], [1], [0, 0, 1, 1], [], []>} : vector<8x4xbf16>, vector<4x8xbf16>, vector<8x8xf32> -> vector<8x8xf32>
    %51 = arith.addf %47, %50 : vector<8x8xf32>
    %c0_76 = arith.constant 0 : index
    %c0_77 = arith.constant 0 : index
    %c0_78 = arith.constant 0 : index
    %c1_79 = arith.constant 1 : index
    %c1_80 = arith.constant 1 : index
    %c0_81 = arith.constant 0 : index
    %52 = vector.load %arg1[%c0_76, %c0_77, %c0_78, %c1_79, %c1_80, %c0_81] : memref<1x2x2x9x9x4xbf16, #tpu.memory_space<vmem>>, vector<1x1x1x1x8x4xbf16>
    %53 = vector.shape_cast %52 : vector<1x1x1x1x8x4xbf16> to vector<8x4xbf16>
    %cst_82 = arith.constant dense<0.000000e+00> : vector<8x8xf32>
    %54 = tpu.matmul %53, %17, %cst_82 {dimension_numbers = #tpu.dot_dimension_numbers<[1], [0], [0], [1], [0, 0, 1, 1], [], []>} : vector<8x4xbf16>, vector<4x8xbf16>, vector<8x8xf32> -> vector<8x8xf32>
    %55 = arith.addf %51, %54 : vector<8x8xf32>
    %56 = vector.broadcast %18 : vector<1x8xf32> to vector<8x8xf32>
    %57 = arith.addf %55, %56 : vector<8x8xf32>
    %cst_83 = arith.constant 0.000000e+00 : f32
    %58 = vector.broadcast %cst_83 : f32 to vector<8x8xf32>
    %59 = arith.cmpf oge, %57, %58 : vector<8x8xf32>
    %cst_84 = arith.constant 1.000000e-01 : f32
    %60 = vector.broadcast %cst_84 : f32 to vector<8x8xf32>
    %61 = arith.mulf %60, %57 : vector<8x8xf32>
    %62 = arith.select %59, %57, %61 : vector<8x8xi1>, vector<8x8xf32>
    %63 = arith.truncf %62 : vector<8x8xf32> to vector<8x8xbf16>
    %c0_85 = arith.constant 0 : index
    %c0_86 = arith.constant 0 : index
    %c0_87 = arith.constant 0 : index
    %c0_88 = arith.constant 0 : index
    %64 = vector.load %arg4[%c0_85, %c0_86, %c0_87, %c0_88] : memref<1x8x8x8xbf16, #tpu.memory_space<vmem>>, vector<1x1x8x8xbf16>
    %65 = vector.shape_cast %64 : vector<1x1x8x8xbf16> to vector<8x8xbf16>
    %66 = vector.shape_cast %63 : vector<8x8xbf16> to vector<1x1x8x8xbf16>
    tpu.vector_store %arg4[%c0_85, %c0_86, %c0_87, %c0_88], %66 {strides = array<i32>} : memref<1x8x8x8xbf16, #tpu.memory_space<vmem>>, vector<1x1x8x8xbf16>,
    %cst_89 = arith.constant 0.000000e+00 : f32
    %67 = vector.broadcast %cst_89 : f32 to vector<8x8xf32>
    %c0_90 = arith.constant 0 : index
    %c0_91 = arith.constant 0 : index
    %c0_92 = arith.constant 0 : index
    %c1_93 = arith.constant 1 : index
    %c0_94 = arith.constant 0 : index
    %c0_95 = arith.constant 0 : index
    %68 = vector.load %arg1[%c0_90, %c0_91, %c0_92, %c1_93, %c0_94, %c0_95] : memref<1x2x2x9x9x4xbf16, #tpu.memory_space<vmem>>, vector<1x1x1x1x8x4xbf16>
    %69 = vector.shape_cast %68 : vector<1x1x1x1x8x4xbf16> to vector<8x4xbf16>
    %cst_96 = arith.constant dense<0.000000e+00> : vector<8x8xf32>
    %70 = tpu.matmul %69, %1, %cst_96 {dimension_numbers = #tpu.dot_dimension_numbers<[1], [0], [0], [1], [0, 0, 1, 1], [], []>} : vector<8x4xbf16>, vector<4x8xbf16>, vector<8x8xf32> -> vector<8x8xf32>
    %71 = arith.addf %67, %70 : vector<8x8xf32>
    %c0_97 = arith.constant 0 : index
    %c0_98 = arith.constant 0 : index
    %c1_99 = arith.constant 1 : index
    %c1_100 = arith.constant 1 : index
    %c0_101 = arith.constant 0 : index
    %c0_102 = arith.constant 0 : index
    %72 = vector.load %arg1[%c0_97, %c0_98, %c1_99, %c1_100, %c0_101, %c0_102] : memref<1x2x2x9x9x4xbf16, #tpu.memory_space<vmem>>, vector<1x1x1x1x8x4xbf16>
    %73 = vector.shape_cast %72 : vector<1x1x1x1x8x4xbf16> to vector<8x4xbf16>
    %cst_103 = arith.constant dense<0.000000e+00> : vector<8x8xf32>
    %74 = tpu.matmul %73, %3, %cst_103 {dimension_numbers = #tpu.dot_dimension_numbers<[1], [0], [0], [1], [0, 0, 1, 1], [], []>} : vector<8x4xbf16>, vector<4x8xbf16>, vector<8x8xf32> -> vector<8x8xf32>
    %75 = arith.addf %71, %74 : vector<8x8xf32>
    %c0_104 = arith.constant 0 : index
    %c0_105 = arith.constant 0 : index
    %c0_106 = arith.constant 0 : index
    %c1_107 = arith.constant 1 : index
    %c1_108 = arith.constant 1 : index
    %c0_109 = arith.constant 0 : index
    %76 = vector.load %arg1[%c0_104, %c0_105, %c0_106, %c1_107, %c1_108, %c0_109] : memref<1x2x2x9x9x4xbf16, #tpu.memory_space<vmem>>, vector<1x1x1x1x8x4xbf16>
    %77 = vector.shape_cast %76 : vector<1x1x1x1x8x4xbf16> to vector<8x4xbf16>
    %cst_110 = arith.constant dense<0.000000e+00> : vector<8x8xf32>
    %78 = tpu.matmul %77, %5, %cst_110 {dimension_numbers = #tpu.dot_dimension_numbers<[1], [0], [0], [1], [0, 0, 1, 1], [], []>} : vector<8x4xbf16>, vector<4x8xbf16>, vector<8x8xf32> -> vector<8x8xf32>
    %79 = arith.addf %75, %78 : vector<8x8xf32>
    %c0_111 = arith.constant 0 : index
    %c1_112 = arith.constant 1 : index
    %c0_113 = arith.constant 0 : index
    %c1_114 = arith.constant 1 : index
    %c0_115 = arith.constant 0 : index
    %c0_116 = arith.constant 0 : index
    %80 = vector.load %arg1[%c0_111, %c1_112, %c0_113, %c1_114, %c0_115, %c0_116] : memref<1x2x2x9x9x4xbf16, #tpu.memory_space<vmem>>, vector<1x1x1x1x8x4xbf16>
    %81 = vector.shape_cast %80 : vector<1x1x1x1x8x4xbf16> to vector<8x4xbf16>
    %cst_117 = arith.constant dense<0.000000e+00> : vector<8x8xf32>
    %82 = tpu.matmul %81, %7, %cst_117 {dimension_numbers = #tpu.dot_dimension_numbers<[1], [0], [0], [1], [0, 0, 1, 1], [], []>} : vector<8x4xbf16>, vector<4x8xbf16>, vector<8x8xf32> -> vector<8x8xf32>
    %83 = arith.addf %79, %82 : vector<8x8xf32>
    %c0_118 = arith.constant 0 : index
    %c1_119 = arith.constant 1 : index
    %c1_120 = arith.constant 1 : index
    %c1_121 = arith.constant 1 : index
    %c0_122 = arith.constant 0 : index
    %c0_123 = arith.constant 0 : index
    %84 = vector.load %arg1[%c0_118, %c1_119, %c1_120, %c1_121, %c0_122, %c0_123] : memref<1x2x2x9x9x4xbf16, #tpu.memory_space<vmem>>, vector<1x1x1x1x8x4xbf16>
    %85 = vector.shape_cast %84 : vector<1x1x1x1x8x4xbf16> to vector<8x4xbf16>
    %cst_124 = arith.constant dense<0.000000e+00> : vector<8x8xf32>
    %86 = tpu.matmul %85, %9, %cst_124 {dimension_numbers = #tpu.dot_dimension_numbers<[1], [0], [0], [1], [0, 0, 1, 1], [], []>} : vector<8x4xbf16>, vector<4x8xbf16>, vector<8x8xf32> -> vector<8x8xf32>
    %87 = arith.addf %83, %86 : vector<8x8xf32>
    %c0_125 = arith.constant 0 : index
    %c1_126 = arith.constant 1 : index
    %c0_127 = arith.constant 0 : index
    %c1_128 = arith.constant 1 : index
    %c1_129 = arith.constant 1 : index
    %c0_130 = arith.constant 0 : index
    %88 = vector.load %arg1[%c0_125, %c1_126, %c0_127, %c1_128, %c1_129, %c0_130] : memref<1x2x2x9x9x4xbf16, #tpu.memory_space<vmem>>, vector<1x1x1x1x8x4xbf16>
    %89 = vector.shape_cast %88 : vector<1x1x1x1x8x4xbf16> to vector<8x4xbf16>
    %cst_131 = arith.constant dense<0.000000e+00> : vector<8x8xf32>
    %90 = tpu.matmul %89, %11, %cst_131 {dimension_numbers = #tpu.dot_dimension_numbers<[1], [0], [0], [1], [0, 0, 1, 1], [], []>} : vector<8x4xbf16>, vector<4x8xbf16>, vector<8x8xf32> -> vector<8x8xf32>
    %91 = arith.addf %87, %90 : vector<8x8xf32>
    %c0_132 = arith.constant 0 : index
    %c0_133 = arith.constant 0 : index
    %c0_134 = arith.constant 0 : index
    %c2_135 = arith.constant 2 : index
    %c0_136 = arith.constant 0 : index
    %c0_137 = arith.constant 0 : index
    %92 = vector.load %arg1[%c0_132, %c0_133, %c0_134, %c2_135, %c0_136, %c0_137] : memref<1x2x2x9x9x4xbf16, #tpu.memory_space<vmem>>, vector<1x1x1x1x8x4xbf16>
    %93 = vector.shape_cast %92 : vector<1x1x1x1x8x4xbf16> to vector<8x4xbf16>
    %cst_138 = arith.constant dense<0.000000e+00> : vector<8x8xf32>
    %94 = tpu.matmul %93, %13, %cst_138 {dimension_numbers = #tpu.dot_dimension_numbers<[1], [0], [0], [1], [0, 0, 1, 1], [], []>} : vector<8x4xbf16>, vector<4x8xbf16>, vector<8x8xf32> -> vector<8x8xf32>
    %95 = arith.addf %91, %94 : vector<8x8xf32>
    %c0_139 = arith.constant 0 : index
    %c0_140 = arith.constant 0 : index
    %c1_141 = arith.constant 1 : index
    %c2_142 = arith.constant 2 : index
    %c0_143 = arith.constant 0 : index
    %c0_144 = arith.constant 0 : index
    %96 = vector.load %arg1[%c0_139, %c0_140, %c1_141, %c2_142, %c0_143, %c0_144] : memref<1x2x2x9x9x4xbf16, #tpu.memory_space<vmem>>, vector<1x1x1x1x8x4xbf16>
    %97 = vector.shape_cast %96 : vector<1x1x1x1x8x4xbf16> to vector<8x4xbf16>
    %cst_145 = arith.constant dense<0.000000e+00> : vector<8x8xf32>
    %98 = tpu.matmul %97, %15, %cst_145 {dimension_numbers = #tpu.dot_dimension_numbers<[1], [0], [0], [1], [0, 0, 1, 1], [], []>} : vector<8x4xbf16>, vector<4x8xbf16>, vector<8x8xf32> -> vector<8x8xf32>
    %99 = arith.addf %95, %98 : vector<8x8xf32>
    %c0_146 = arith.constant 0 : index
    %c0_147 = arith.constant 0 : index
    %c0_148 = arith.constant 0 : index
    %c2_149 = arith.constant 2 : index
    %c1_150 = arith.constant 1 : index
    %c0_151 = arith.constant 0 : index
    %100 = vector.load %arg1[%c0_146, %c0_147, %c0_148, %c2_149, %c1_150, %c0_151] : memref<1x2x2x9x9x4xbf16, #tpu.memory_space<vmem>>, vector<1x1x1x1x8x4xbf16>
    %101 = vector.shape_cast %100 : vector<1x1x1x1x8x4xbf16> to vector<8x4xbf16>
    %cst_152 = arith.constant dense<0.000000e+00> : vector<8x8xf32>
    %102 = tpu.matmul %101, %17, %cst_152 {dimension_numbers = #tpu.dot_dimension_numbers<[1], [0], [0], [1], [0, 0, 1, 1], [], []>} : vector<8x4xbf16>, vector<4x8xbf16>, vector<8x8xf32> -> vector<8x8xf32>
    %103 = arith.addf %99, %102 : vector<8x8xf32>
    %104 = vector.broadcast %18 : vector<1x8xf32> to vector<8x8xf32>
    %105 = arith.addf %103, %104 : vector<8x8xf32>
    %cst_153 = arith.constant 0.000000e+00 : f32
    %106 = vector.broadcast %cst_153 : f32 to vector<8x8xf32>
    %107 = arith.cmpf oge, %105, %106 : vector<8x8xf32>
    %cst_154 = arith.constant 1.000000e-01 : f32
    %108 = vector.broadcast %cst_154 : f32 to vector<8x8xf32>
    %109 = arith.mulf %108, %105 : vector<8x8xf32>
    %110 = arith.select %107, %105, %109 : vector<8x8xi1>, vector<8x8xf32>
    %111 = arith.truncf %110 : vector<8x8xf32> to vector<8x8xbf16>
    %c0_155 = arith.constant 0 : index
    %c1_156 = arith.constant 1 : index
    %c0_157 = arith.constant 0 : index
    %c0_158 = arith.constant 0 : index
    %112 = vector.load %arg4[%c0_155, %c1_156, %c0_157, %c0_158] : memref<1x8x8x8xbf16, #tpu.memory_space<vmem>>, vector<1x1x8x8xbf16>
    %113 = vector.shape_cast %112 : vector<1x1x8x8xbf16> to vector<8x8xbf16>
    %114 = vector.shape_cast %111 : vector<8x8xbf16> to vector<1x1x8x8xbf16>
    tpu.vector_store %arg4[%c0_155, %c1_156, %c0_157, %c0_158], %114 {strides = array<i32>} : memref<1x8x8x8xbf16, #tpu.memory_space<vmem>>, vector<1x1x8x8xbf16>,
    %cst_159 = arith.constant 0.000000e+00 : f32
    %115 = vector.broadcast %cst_159 : f32 to vector<8x8xf32>
    %c0_160 = arith.constant 0 : index
    %c0_161 = arith.constant 0 : index
    %c0_162 = arith.constant 0 : index
    %c2_163 = arith.constant 2 : index
    %c0_164 = arith.constant 0 : index
    %c0_165 = arith.constant 0 : index
    %116 = vector.load %arg1[%c0_160, %c0_161, %c0_162, %c2_163, %c0_164, %c0_165] : memref<1x2x2x9x9x4xbf16, #tpu.memory_space<vmem>>, vector<1x1x1x1x8x4xbf16>
    %117 = vector.shape_cast %116 : vector<1x1x1x1x8x4xbf16> to vector<8x4xbf16>
    %cst_166 = arith.constant dense<0.000000e+00> : vector<8x8xf32>
    %118 = tpu.matmul %117, %1, %cst_166 {dimension_numbers = #tpu.dot_dimension_numbers<[1], [0], [0], [1], [0, 0, 1, 1], [], []>} : vector<8x4xbf16>, vector<4x8xbf16>, vector<8x8xf32> -> vector<8x8xf32>
    %119 = arith.addf %115, %118 : vector<8x8xf32>
    %c0_167 = arith.constant 0 : index
    %c0_168 = arith.constant 0 : index
    %c1_169 = arith.constant 1 : index
    %c2_170 = arith.constant 2 : index
    %c0_171 = arith.constant 0 : index
    %c0_172 = arith.constant 0 : index
    %120 = vector.load %arg1[%c0_167, %c0_168, %c1_169, %c2_170, %c0_171, %c0_172] : memref<1x2x2x9x9x4xbf16, #tpu.memory_space<vmem>>, vector<1x1x1x1x8x4xbf16>
    %121 = vector.shape_cast %120 : vector<1x1x1x1x8x4xbf16> to vector<8x4xbf16>
    %cst_173 = arith.constant dense<0.000000e+00> : vector<8x8xf32>
    %122 = tpu.matmul %121, %3, %cst_173 {dimension_numbers = #tpu.dot_dimension_numbers<[1], [0], [0], [1], [0, 0, 1, 1], [], []>} : vector<8x4xbf16>, vector<4x8xbf16>, vector<8x8xf32> -> vector<8x8xf32>
    %123 = arith.addf %119, %122 : vector<8x8xf32>
    %c0_174 = arith.constant 0 : index
    %c0_175 = arith.constant 0 : index
    %c0_176 = arith.constant 0 : index
    %c2_177 = arith.constant 2 : index
    %c1_178 = arith.constant 1 : index
    %c0_179 = arith.constant 0 : index
    %124 = vector.load %arg1[%c0_174, %c0_175, %c0_176, %c2_177, %c1_178, %c0_179] : memref<1x2x2x9x9x4xbf16, #tpu.memory_space<vmem>>, vector<1x1x1x1x8x4xbf16>
    %125 = vector.shape_cast %124 : vector<1x1x1x1x8x4xbf16> to vector<8x4xbf16>
    %cst_180 = arith.constant dense<0.000000e+00> : vector<8x8xf32>
    %126 = tpu.matmul %125, %5, %cst_180 {dimension_numbers = #tpu.dot_dimension_numbers<[1], [0], [0], [1], [0, 0, 1, 1], [], []>} : vector<8x4xbf16>, vector<4x8xbf16>, vector<8x8xf32> -> vector<8x8xf32>
    %127 = arith.addf %123, %126 : vector<8x8xf32>
    %c0_181 = arith.constant 0 : index
    %c1_182 = arith.constant 1 : index
    %c0_183 = arith.constant 0 : index
    %c2_184 = arith.constant 2 : index
    %c0_185 = arith.constant 0 : index
    %c0_186 = arith.constant 0 : index
    %128 = vector.load %arg1[%c0_181, %c1_182, %c0_183, %c2_184, %c0_185, %c0_186] : memref<1x2x2x9x9x4xbf16, #tpu.memory_space<vmem>>, vector<1x1x1x1x8x4xbf16>
    %129 = vector.shape_cast %128 : vector<1x1x1x1x8x4xbf16> to vector<8x4xbf16>
    %cst_187 = arith.constant dense<0.000000e+00> : vector<8x8xf32>
    %130 = tpu.matmul %129, %7, %cst_187 {dimension_numbers = #tpu.dot_dimension_numbers<[1], [0], [0], [1], [0, 0, 1, 1], [], []>} : vector<8x4xbf16>, vector<4x8xbf16>, vector<8x8xf32> -> vector<8x8xf32>
    %131 = arith.addf %127, %130 : vector<8x8xf32>
    %c0_188 = arith.constant 0 : index
    %c1_189 = arith.constant 1 : index
    %c1_190 = arith.constant 1 : index
    %c2_191 = arith.constant 2 : index
    %c0_192 = arith.constant 0 : index
    %c0_193 = arith.constant 0 : index
    %132 = vector.load %arg1[%c0_188, %c1_189, %c1_190, %c2_191, %c0_192, %c0_193] : memref<1x2x2x9x9x4xbf16, #tpu.memory_space<vmem>>, vector<1x1x1x1x8x4xbf16>
    %133 = vector.shape_cast %132 : vector<1x1x1x1x8x4xbf16> to vector<8x4xbf16>
    %cst_194 = arith.constant dense<0.000000e+00> : vector<8x8xf32>
    %134 = tpu.matmul %133, %9, %cst_194 {dimension_numbers = #tpu.dot_dimension_numbers<[1], [0], [0], [1], [0, 0, 1, 1], [], []>} : vector<8x4xbf16>, vector<4x8xbf16>, vector<8x8xf32> -> vector<8x8xf32>
    %135 = arith.addf %131, %134 : vector<8x8xf32>
    %c0_195 = arith.constant 0 : index
    %c1_196 = arith.constant 1 : index
    %c0_197 = arith.constant 0 : index
    %c2_198 = arith.constant 2 : index
    %c1_199 = arith.constant 1 : index
    %c0_200 = arith.constant 0 : index
    %136 = vector.load %arg1[%c0_195, %c1_196, %c0_197, %c2_198, %c1_199, %c0_200] : memref<1x2x2x9x9x4xbf16, #tpu.memory_space<vmem>>, vector<1x1x1x1x8x4xbf16>
    %137 = vector.shape_cast %136 : vector<1x1x1x1x8x4xbf16> to vector<8x4xbf16>
    %cst_201 = arith.constant dense<0.000000e+00> : vector<8x8xf32>
    %138 = tpu.matmul %137, %11, %cst_201 {dimension_numbers = #tpu.dot_dimension_numbers<[1], [0], [0], [1], [0, 0, 1, 1], [], []>} : vector<8x4xbf16>, vector<4x8xbf16>, vector<8x8xf32> -> vector<8x8xf32>
    %139 = arith.addf %135, %138 : vector<8x8xf32>
    %c0_202 = arith.constant 0 : index
    %c0_203 = arith.constant 0 : index
    %c0_204 = arith.constant 0 : index
    %c3_205 = arith.constant 3 : index
    %c0_206 = arith.constant 0 : index
    %c0_207 = arith.constant 0 : index
    %140 = vector.load %arg1[%c0_202, %c0_203, %c0_204, %c3_205, %c0_206, %c0_207] : memref<1x2x2x9x9x4xbf16, #tpu.memory_space<vmem>>, vector<1x1x1x1x8x4xbf16>
    %141 = vector.shape_cast %140 : vector<1x1x1x1x8x4xbf16> to vector<8x4xbf16>
    %cst_208 = arith.constant dense<0.000000e+00> : vector<8x8xf32>
    %142 = tpu.matmul %141, %13, %cst_208 {dimension_numbers = #tpu.dot_dimension_numbers<[1], [0], [0], [1], [0, 0, 1, 1], [], []>} : vector<8x4xbf16>, vector<4x8xbf16>, vector<8x8xf32> -> vector<8x8xf32>
    %143 = arith.addf %139, %142 : vector<8x8xf32>
    %c0_209 = arith.constant 0 : index
    %c0_210 = arith.constant 0 : index
    %c1_211 = arith.constant 1 : index
    %c3_212 = arith.constant 3 : index
    %c0_213 = arith.constant 0 : index
    %c0_214 = arith.constant 0 : index
    %144 = vector.load %arg1[%c0_209, %c0_210, %c1_211, %c3_212, %c0_213, %c0_214] : memref<1x2x2x9x9x4xbf16, #tpu.memory_space<vmem>>, vector<1x1x1x1x8x4xbf16>
    %145 = vector.shape_cast %144 : vector<1x1x1x1x8x4xbf16> to vector<8x4xbf16>
    %cst_215 = arith.constant dense<0.000000e+00> : vector<8x8xf32>
    %146 = tpu.matmul %145, %15, %cst_215 {dimension_numbers = #tpu.dot_dimension_numbers<[1], [0], [0], [1], [0, 0, 1, 1], [], []>} : vector<8x4xbf16>, vector<4x8xbf16>, vector<8x8xf32> -> vector<8x8xf32>
    %147 = arith.addf %143, %146 : vector<8x8xf32>
    %c0_216 = arith.constant 0 : index
    %c0_217 = arith.constant 0 : index
    %c0_218 = arith.constant 0 : index
    %c3_219 = arith.constant 3 : index
    %c1_220 = arith.constant 1 : index
    %c0_221 = arith.constant 0 : index
    %148 = vector.load %arg1[%c0_216, %c0_217, %c0_218, %c3_219, %c1_220, %c0_221] : memref<1x2x2x9x9x4xbf16, #tpu.memory_space<vmem>>, vector<1x1x1x1x8x4xbf16>
    %149 = vector.shape_cast %148 : vector<1x1x1x1x8x4xbf16> to vector<8x4xbf16>
    %cst_222 = arith.constant dense<0.000000e+00> : vector<8x8xf32>
    %150 = tpu.matmul %149, %17, %cst_222 {dimension_numbers = #tpu.dot_dimension_numbers<[1], [0], [0], [1], [0, 0, 1, 1], [], []>} : vector<8x4xbf16>, vector<4x8xbf16>, vector<8x8xf32> -> vector<8x8xf32>
    %151 = arith.addf %147, %150 : vector<8x8xf32>
    %152 = vector.broadcast %18 : vector<1x8xf32> to vector<8x8xf32>
    %153 = arith.addf %151, %152 : vector<8x8xf32>
    %cst_223 = arith.constant 0.000000e+00 : f32
    %154 = vector.broadcast %cst_223 : f32 to vector<8x8xf32>
    %155 = arith.cmpf oge, %153, %154 : vector<8x8xf32>
    %cst_224 = arith.constant 1.000000e-01 : f32
    %156 = vector.broadcast %cst_224 : f32 to vector<8x8xf32>
    %157 = arith.mulf %156, %153 : vector<8x8xf32>
    %158 = arith.select %155, %153, %157 : vector<8x8xi1>, vector<8x8xf32>
    %159 = arith.truncf %158 : vector<8x8xf32> to vector<8x8xbf16>
    %c0_225 = arith.constant 0 : index
    %c2_226 = arith.constant 2 : index
    %c0_227 = arith.constant 0 : index
    %c0_228 = arith.constant 0 : index
    %160 = vector.load %arg4[%c0_225, %c2_226, %c0_227, %c0_228] : memref<1x8x8x8xbf16, #tpu.memory_space<vmem>>, vector<1x1x8x8xbf16>
    %161 = vector.shape_cast %160 : vector<1x1x8x8xbf16> to vector<8x8xbf16>
    %162 = vector.shape_cast %159 : vector<8x8xbf16> to vector<1x1x8x8xbf16>
    tpu.vector_store %arg4[%c0_225, %c2_226, %c0_227, %c0_228], %162 {strides = array<i32>} : memref<1x8x8x8xbf16, #tpu.memory_space<vmem>>, vector<1x1x8x8xbf16>,
    %cst_229 = arith.constant 0.000000e+00 : f32
    %163 = vector.broadcast %cst_229 : f32 to vector<8x8xf32>
    %c0_230 = arith.constant 0 : index
    %c0_231 = arith.constant 0 : index
    %c0_232 = arith.constant 0 : index
    %c3_233 = arith.constant 3 : index
    %c0_234 = arith.constant 0 : index
    %c0_235 = arith.constant 0 : index
    %164 = vector.load %arg1[%c0_230, %c0_231, %c0_232, %c3_233, %c0_234, %c0_235] : memref<1x2x2x9x9x4xbf16, #tpu.memory_space<vmem>>, vector<1x1x1x1x8x4xbf16>
    %165 = vector.shape_cast %164 : vector<1x1x1x1x8x4xbf16> to vector<8x4xbf16>
    %cst_236 = arith.constant dense<0.000000e+00> : vector<8x8xf32>
    %166 = tpu.matmul %165, %1, %cst_236 {dimension_numbers = #tpu.dot_dimension_numbers<[1], [0], [0], [1], [0, 0, 1, 1], [], []>} : vector<8x4xbf16>, vector<4x8xbf16>, vector<8x8xf32> -> vector<8x8xf32>
    %167 = arith.addf %163, %166 : vector<8x8xf32>
    %c0_237 = arith.constant 0 : index
    %c0_238 = arith.constant 0 : index
    %c1_239 = arith.constant 1 : index
    %c3_240 = arith.constant 3 : index
    %c0_241 = arith.constant 0 : index
    %c0_242 = arith.constant 0 : index
    %168 = vector.load %arg1[%c0_237, %c0_238, %c1_239, %c3_240, %c0_241, %c0_242] : memref<1x2x2x9x9x4xbf16, #tpu.memory_space<vmem>>, vector<1x1x1x1x8x4xbf16>
    %169 = vector.shape_cast %168 : vector<1x1x1x1x8x4xbf16> to vector<8x4xbf16>
    %cst_243 = arith.constant dense<0.000000e+00> : vector<8x8xf32>
    %170 = tpu.matmul %169, %3, %cst_243 {dimension_numbers = #tpu.dot_dimension_numbers<[1], [0], [0], [1], [0, 0, 1, 1], [], []>} : vector<8x4xbf16>, vector<4x8xbf16>, vector<8x8xf32> -> vector<8x8xf32>
    %171 = arith.addf %167, %170 : vector<8x8xf32>
    %c0_244 = arith.constant 0 : index
    %c0_245 = arith.constant 0 : index
    %c0_246 = arith.constant 0 : index
    %c3_247 = arith.constant 3 : index
    %c1_248 = arith.constant 1 : index
    %c0_249 = arith.constant 0 : index
    %172 = vector.load %arg1[%c0_244, %c0_245, %c0_246, %c3_247, %c1_248, %c0_249] : memref<1x2x2x9x9x4xbf16, #tpu.memory_space<vmem>>, vector<1x1x1x1x8x4xbf16>
    %173 = vector.shape_cast %172 : vector<1x1x1x1x8x4xbf16> to vector<8x4xbf16>
    %cst_250 = arith.constant dense<0.000000e+00> : vector<8x8xf32>
    %174 = tpu.matmul %173, %5, %cst_250 {dimension_numbers = #tpu.dot_dimension_numbers<[1], [0], [0], [1], [0, 0, 1, 1], [], []>} : vector<8x4xbf16>, vector<4x8xbf16>, vector<8x8xf32> -> vector<8x8xf32>
    %175 = arith.addf %171, %174 : vector<8x8xf32>
    %c0_251 = arith.constant 0 : index
    %c1_252 = arith.constant 1 : index
    %c0_253 = arith.constant 0 : index
    %c3_254 = arith.constant 3 : index
    %c0_255 = arith.constant 0 : index
    %c0_256 = arith.constant 0 : index
    %176 = vector.load %arg1[%c0_251, %c1_252, %c0_253, %c3_254, %c0_255, %c0_256] : memref<1x2x2x9x9x4xbf16, #tpu.memory_space<vmem>>, vector<1x1x1x1x8x4xbf16>
    %177 = vector.shape_cast %176 : vector<1x1x1x1x8x4xbf16> to vector<8x4xbf16>
    %cst_257 = arith.constant dense<0.000000e+00> : vector<8x8xf32>
    %178 = tpu.matmul %177, %7, %cst_257 {dimension_numbers = #tpu.dot_dimension_numbers<[1], [0], [0], [1], [0, 0, 1, 1], [], []>} : vector<8x4xbf16>, vector<4x8xbf16>, vector<8x8xf32> -> vector<8x8xf32>
    %179 = arith.addf %175, %178 : vector<8x8xf32>
    %c0_258 = arith.constant 0 : index
    %c1_259 = arith.constant 1 : index
    %c1_260 = arith.constant 1 : index
    %c3_261 = arith.constant 3 : index
    %c0_262 = arith.constant 0 : index
    %c0_263 = arith.constant 0 : index
    %180 = vector.load %arg1[%c0_258, %c1_259, %c1_260, %c3_261, %c0_262, %c0_263] : memref<1x2x2x9x9x4xbf16, #tpu.memory_space<vmem>>, vector<1x1x1x1x8x4xbf16>
    %181 = vector.shape_cast %180 : vector<1x1x1x1x8x4xbf16> to vector<8x4xbf16>
    %cst_264 = arith.constant dense<0.000000e+00> : vector<8x8xf32>
    %182 = tpu.matmul %181, %9, %cst_264 {dimension_numbers = #tpu.dot_dimension_numbers<[1], [0], [0], [1], [0, 0, 1, 1], [], []>} : vector<8x4xbf16>, vector<4x8xbf16>, vector<8x8xf32> -> vector<8x8xf32>
    %183 = arith.addf %179, %182 : vector<8x8xf32>
    %c0_265 = arith.constant 0 : index
    %c1_266 = arith.constant 1 : index
    %c0_267 = arith.constant 0 : index
    %c3_268 = arith.constant 3 : index
    %c1_269 = arith.constant 1 : index
    %c0_270 = arith.constant 0 : index
    %184 = vector.load %arg1[%c0_265, %c1_266, %c0_267, %c3_268, %c1_269, %c0_270] : memref<1x2x2x9x9x4xbf16, #tpu.memory_space<vmem>>, vector<1x1x1x1x8x4xbf16>
    %185 = vector.shape_cast %184 : vector<1x1x1x1x8x4xbf16> to vector<8x4xbf16>
    %cst_271 = arith.constant dense<0.000000e+00> : vector<8x8xf32>
    %186 = tpu.matmul %185, %11, %cst_271 {dimension_numbers = #tpu.dot_dimension_numbers<[1], [0], [0], [1], [0, 0, 1, 1], [], []>} : vector<8x4xbf16>, vector<4x8xbf16>, vector<8x8xf32> -> vector<8x8xf32>
    %187 = arith.addf %183, %186 : vector<8x8xf32>
    %c0_272 = arith.constant 0 : index
    %c0_273 = arith.constant 0 : index
    %c0_274 = arith.constant 0 : index
    %c4_275 = arith.constant 4 : index
    %c0_276 = arith.constant 0 : index
    %c0_277 = arith.constant 0 : index
    %188 = vector.load %arg1[%c0_272, %c0_273, %c0_274, %c4_275, %c0_276, %c0_277] : memref<1x2x2x9x9x4xbf16, #tpu.memory_space<vmem>>, vector<1x1x1x1x8x4xbf16>
    %189 = vector.shape_cast %188 : vector<1x1x1x1x8x4xbf16> to vector<8x4xbf16>
    %cst_278 = arith.constant dense<0.000000e+00> : vector<8x8xf32>
    %190 = tpu.matmul %189, %13, %cst_278 {dimension_numbers = #tpu.dot_dimension_numbers<[1], [0], [0], [1], [0, 0, 1, 1], [], []>} : vector<8x4xbf16>, vector<4x8xbf16>, vector<8x8xf32> -> vector<8x8xf32>
    %191 = arith.addf %187, %190 : vector<8x8xf32>
    %c0_279 = arith.constant 0 : index
    %c0_280 = arith.constant 0 : index
    %c1_281 = arith.constant 1 : index
    %c4_282 = arith.constant 4 : index
    %c0_283 = arith.constant 0 : index
    %c0_284 = arith.constant 0 : index
    %192 = vector.load %arg1[%c0_279, %c0_280, %c1_281, %c4_282, %c0_283, %c0_284] : memref<1x2x2x9x9x4xbf16, #tpu.memory_space<vmem>>, vector<1x1x1x1x8x4xbf16>
    %193 = vector.shape_cast %192 : vector<1x1x1x1x8x4xbf16> to vector<8x4xbf16>
    %cst_285 = arith.constant dense<0.000000e+00> : vector<8x8xf32>
    %194 = tpu.matmul %193, %15, %cst_285 {dimension_numbers = #tpu.dot_dimension_numbers<[1], [0], [0], [1], [0, 0, 1, 1], [], []>} : vector<8x4xbf16>, vector<4x8xbf16>, vector<8x8xf32> -> vector<8x8xf32>
    %195 = arith.addf %191, %194 : vector<8x8xf32>
    %c0_286 = arith.constant 0 : index
    %c0_287 = arith.constant 0 : index
    %c0_288 = arith.constant 0 : index
    %c4_289 = arith.constant 4 : index
    %c1_290 = arith.constant 1 : index
    %c0_291 = arith.constant 0 : index
    %196 = vector.load %arg1[%c0_286, %c0_287, %c0_288, %c4_289, %c1_290, %c0_291] : memref<1x2x2x9x9x4xbf16, #tpu.memory_space<vmem>>, vector<1x1x1x1x8x4xbf16>
    %197 = vector.shape_cast %196 : vector<1x1x1x1x8x4xbf16> to vector<8x4xbf16>
    %cst_292 = arith.constant dense<0.000000e+00> : vector<8x8xf32>
    %198 = tpu.matmul %197, %17, %cst_292 {dimension_numbers = #tpu.dot_dimension_numbers<[1], [0], [0], [1], [0, 0, 1, 1], [], []>} : vector<8x4xbf16>, vector<4x8xbf16>, vector<8x8xf32> -> vector<8x8xf32>
    %199 = arith.addf %195, %198 : vector<8x8xf32>
    %200 = vector.broadcast %18 : vector<1x8xf32> to vector<8x8xf32>
    %201 = arith.addf %199, %200 : vector<8x8xf32>
    %cst_293 = arith.constant 0.000000e+00 : f32
    %202 = vector.broadcast %cst_293 : f32 to vector<8x8xf32>
    %203 = arith.cmpf oge, %201, %202 : vector<8x8xf32>
    %cst_294 = arith.constant 1.000000e-01 : f32
    %204 = vector.broadcast %cst_294 : f32 to vector<8x8xf32>
    %205 = arith.mulf %204, %201 : vector<8x8xf32>
    %206 = arith.select %203, %201, %205 : vector<8x8xi1>, vector<8x8xf32>
    %207 = arith.truncf %206 : vector<8x8xf32> to vector<8x8xbf16>
    %c0_295 = arith.constant 0 : index
    %c3_296 = arith.constant 3 : index
    %c0_297 = arith.constant 0 : index
    %c0_298 = arith.constant 0 : index
    %208 = vector.load %arg4[%c0_295, %c3_296, %c0_297, %c0_298] : memref<1x8x8x8xbf16, #tpu.memory_space<vmem>>, vector<1x1x8x8xbf16>
    %209 = vector.shape_cast %208 : vector<1x1x8x8xbf16> to vector<8x8xbf16>
    %210 = vector.shape_cast %207 : vector<8x8xbf16> to vector<1x1x8x8xbf16>
    tpu.vector_store %arg4[%c0_295, %c3_296, %c0_297, %c0_298], %210 {strides = array<i32>} : memref<1x8x8x8xbf16, #tpu.memory_space<vmem>>, vector<1x1x8x8xbf16>,
    %cst_299 = arith.constant 0.000000e+00 : f32
    %211 = vector.broadcast %cst_299 : f32 to vector<8x8xf32>
    %c0_300 = arith.constant 0 : index
    %c0_301 = arith.constant 0 : index
    %c0_302 = arith.constant 0 : index
    %c4_303 = arith.constant 4 : index
    %c0_304 = arith.constant 0 : index
    %c0_305 = arith.constant 0 : index
    %212 = vector.load %arg1[%c0_300, %c0_301, %c0_302, %c4_303, %c0_304, %c0_305] : memref<1x2x2x9x9x4xbf16, #tpu.memory_space<vmem>>, vector<1x1x1x1x8x4xbf16>
    %213 = vector.shape_cast %212 : vector<1x1x1x1x8x4xbf16> to vector<8x4xbf16>
    %cst_306 = arith.constant dense<0.000000e+00> : vector<8x8xf32>
    %214 = tpu.matmul %213, %1, %cst_306 {dimension_numbers = #tpu.dot_dimension_numbers<[1], [0], [0], [1], [0, 0, 1, 1], [], []>} : vector<8x4xbf16>, vector<4x8xbf16>, vector<8x8xf32> -> vector<8x8xf32>
    %215 = arith.addf %211, %214 : vector<8x8xf32>
    %c0_307 = arith.constant 0 : index
    %c0_308 = arith.constant 0 : index
    %c1_309 = arith.constant 1 : index
    %c4_310 = arith.constant 4 : index
    %c0_311 = arith.constant 0 : index
    %c0_312 = arith.constant 0 : index
    %216 = vector.load %arg1[%c0_307, %c0_308, %c1_309, %c4_310, %c0_311, %c0_312] : memref<1x2x2x9x9x4xbf16, #tpu.memory_space<vmem>>, vector<1x1x1x1x8x4xbf16>
    %217 = vector.shape_cast %216 : vector<1x1x1x1x8x4xbf16> to vector<8x4xbf16>
    %cst_313 = arith.constant dense<0.000000e+00> : vector<8x8xf32>
    %218 = tpu.matmul %217, %3, %cst_313 {dimension_numbers = #tpu.dot_dimension_numbers<[1], [0], [0], [1], [0, 0, 1, 1], [], []>} : vector<8x4xbf16>, vector<4x8xbf16>, vector<8x8xf32> -> vector<8x8xf32>
    %219 = arith.addf %215, %218 : vector<8x8xf32>
    %c0_314 = arith.constant 0 : index
    %c0_315 = arith.constant 0 : index
    %c0_316 = arith.constant 0 : index
    %c4_317 = arith.constant 4 : index
    %c1_318 = arith.constant 1 : index
    %c0_319 = arith.constant 0 : index
    %220 = vector.load %arg1[%c0_314, %c0_315, %c0_316, %c4_317, %c1_318, %c0_319] : memref<1x2x2x9x9x4xbf16, #tpu.memory_space<vmem>>, vector<1x1x1x1x8x4xbf16>
    %221 = vector.shape_cast %220 : vector<1x1x1x1x8x4xbf16> to vector<8x4xbf16>
    %cst_320 = arith.constant dense<0.000000e+00> : vector<8x8xf32>
    %222 = tpu.matmul %221, %5, %cst_320 {dimension_numbers = #tpu.dot_dimension_numbers<[1], [0], [0], [1], [0, 0, 1, 1], [], []>} : vector<8x4xbf16>, vector<4x8xbf16>, vector<8x8xf32> -> vector<8x8xf32>
    %223 = arith.addf %219, %222 : vector<8x8xf32>
    %c0_321 = arith.constant 0 : index
    %c1_322 = arith.constant 1 : index
    %c0_323 = arith.constant 0 : index
    %c4_324 = arith.constant 4 : index
    %c0_325 = arith.constant 0 : index
    %c0_326 = arith.constant 0 : index
    %224 = vector.load %arg1[%c0_321, %c1_322, %c0_323, %c4_324, %c0_325, %c0_326] : memref<1x2x2x9x9x4xbf16, #tpu.memory_space<vmem>>, vector<1x1x1x1x8x4xbf16>
    %225 = vector.shape_cast %224 : vector<1x1x1x1x8x4xbf16> to vector<8x4xbf16>
    %cst_327 = arith.constant dense<0.000000e+00> : vector<8x8xf32>
    %226 = tpu.matmul %225, %7, %cst_327 {dimension_numbers = #tpu.dot_dimension_numbers<[1], [0], [0], [1], [0, 0, 1, 1], [], []>} : vector<8x4xbf16>, vector<4x8xbf16>, vector<8x8xf32> -> vector<8x8xf32>
    %227 = arith.addf %223, %226 : vector<8x8xf32>
    %c0_328 = arith.constant 0 : index
    %c1_329 = arith.constant 1 : index
    %c1_330 = arith.constant 1 : index
    %c4_331 = arith.constant 4 : index
    %c0_332 = arith.constant 0 : index
    %c0_333 = arith.constant 0 : index
    %228 = vector.load %arg1[%c0_328, %c1_329, %c1_330, %c4_331, %c0_332, %c0_333] : memref<1x2x2x9x9x4xbf16, #tpu.memory_space<vmem>>, vector<1x1x1x1x8x4xbf16>
    %229 = vector.shape_cast %228 : vector<1x1x1x1x8x4xbf16> to vector<8x4xbf16>
    %cst_334 = arith.constant dense<0.000000e+00> : vector<8x8xf32>
    %230 = tpu.matmul %229, %9, %cst_334 {dimension_numbers = #tpu.dot_dimension_numbers<[1], [0], [0], [1], [0, 0, 1, 1], [], []>} : vector<8x4xbf16>, vector<4x8xbf16>, vector<8x8xf32> -> vector<8x8xf32>
    %231 = arith.addf %227, %230 : vector<8x8xf32>
    %c0_335 = arith.constant 0 : index
    %c1_336 = arith.constant 1 : index
    %c0_337 = arith.constant 0 : index
    %c4_338 = arith.constant 4 : index
    %c1_339 = arith.constant 1 : index
    %c0_340 = arith.constant 0 : index
    %232 = vector.load %arg1[%c0_335, %c1_336, %c0_337, %c4_338, %c1_339, %c0_340] : memref<1x2x2x9x9x4xbf16, #tpu.memory_space<vmem>>, vector<1x1x1x1x8x4xbf16>
    %233 = vector.shape_cast %232 : vector<1x1x1x1x8x4xbf16> to vector<8x4xbf16>
    %cst_341 = arith.constant dense<0.000000e+00> : vector<8x8xf32>
    %234 = tpu.matmul %233, %11, %cst_341 {dimension_numbers = #tpu.dot_dimension_numbers<[1], [0], [0], [1], [0, 0, 1, 1], [], []>} : vector<8x4xbf16>, vector<4x8xbf16>, vector<8x8xf32> -> vector<8x8xf32>
    %235 = arith.addf %231, %234 : vector<8x8xf32>
    %c0_342 = arith.constant 0 : index
    %c0_343 = arith.constant 0 : index
    %c0_344 = arith.constant 0 : index
    %c5_345 = arith.constant 5 : index
    %c0_346 = arith.constant 0 : index
    %c0_347 = arith.constant 0 : index
    %236 = vector.load %arg1[%c0_342, %c0_343, %c0_344, %c5_345, %c0_346, %c0_347] : memref<1x2x2x9x9x4xbf16, #tpu.memory_space<vmem>>, vector<1x1x1x1x8x4xbf16>
    %237 = vector.shape_cast %236 : vector<1x1x1x1x8x4xbf16> to vector<8x4xbf16>
    %cst_348 = arith.constant dense<0.000000e+00> : vector<8x8xf32>
    %238 = tpu.matmul %237, %13, %cst_348 {dimension_numbers = #tpu.dot_dimension_numbers<[1], [0], [0], [1], [0, 0, 1, 1], [], []>} : vector<8x4xbf16>, vector<4x8xbf16>, vector<8x8xf32> -> vector<8x8xf32>
    %239 = arith.addf %235, %238 : vector<8x8xf32>
    %c0_349 = arith.constant 0 : index
    %c0_350 = arith.constant 0 : index
    %c1_351 = arith.constant 1 : index
    %c5_352 = arith.constant 5 : index
    %c0_353 = arith.constant 0 : index
    %c0_354 = arith.constant 0 : index
    %240 = vector.load %arg1[%c0_349, %c0_350, %c1_351, %c5_352, %c0_353, %c0_354] : memref<1x2x2x9x9x4xbf16, #tpu.memory_space<vmem>>, vector<1x1x1x1x8x4xbf16>
    %241 = vector.shape_cast %240 : vector<1x1x1x1x8x4xbf16> to vector<8x4xbf16>
    %cst_355 = arith.constant dense<0.000000e+00> : vector<8x8xf32>
    %242 = tpu.matmul %241, %15, %cst_355 {dimension_numbers = #tpu.dot_dimension_numbers<[1], [0], [0], [1], [0, 0, 1, 1], [], []>} : vector<8x4xbf16>, vector<4x8xbf16>, vector<8x8xf32> -> vector<8x8xf32>
    %243 = arith.addf %239, %242 : vector<8x8xf32>
    %c0_356 = arith.constant 0 : index
    %c0_357 = arith.constant 0 : index
    %c0_358 = arith.constant 0 : index
    %c5_359 = arith.constant 5 : index
    %c1_360 = arith.constant 1 : index
    %c0_361 = arith.constant 0 : index
    %244 = vector.load %arg1[%c0_356, %c0_357, %c0_358, %c5_359, %c1_360, %c0_361] : memref<1x2x2x9x9x4xbf16, #tpu.memory_space<vmem>>, vector<1x1x1x1x8x4xbf16>
    %245 = vector.shape_cast %244 : vector<1x1x1x1x8x4xbf16> to vector<8x4xbf16>
    %cst_362 = arith.constant dense<0.000000e+00> : vector<8x8xf32>
    %246 = tpu.matmul %245, %17, %cst_362 {dimension_numbers = #tpu.dot_dimension_numbers<[1], [0], [0], [1], [0, 0, 1, 1], [], []>} : vector<8x4xbf16>, vector<4x8xbf16>, vector<8x8xf32> -> vector<8x8xf32>
    %247 = arith.addf %243, %246 : vector<8x8xf32>
    %248 = vector.broadcast %18 : vector<1x8xf32> to vector<8x8xf32>
    %249 = arith.addf %247, %248 : vector<8x8xf32>
    %cst_363 = arith.constant 0.000000e+00 : f32
    %250 = vector.broadcast %cst_363 : f32 to vector<8x8xf32>
    %251 = arith.cmpf oge, %249, %250 : vector<8x8xf32>
    %cst_364 = arith.constant 1.000000e-01 : f32
    %252 = vector.broadcast %cst_364 : f32 to vector<8x8xf32>
    %253 = arith.mulf %252, %249 : vector<8x8xf32>
    %254 = arith.select %251, %249, %253 : vector<8x8xi1>, vector<8x8xf32>
    %255 = arith.truncf %254 : vector<8x8xf32> to vector<8x8xbf16>
    %c0_365 = arith.constant 0 : index
    %c4_366 = arith.constant 4 : index
    %c0_367 = arith.constant 0 : index
    %c0_368 = arith.constant 0 : index
    %256 = vector.load %arg4[%c0_365, %c4_366, %c0_367, %c0_368] : memref<1x8x8x8xbf16, #tpu.memory_space<vmem>>, vector<1x1x8x8xbf16>
    %257 = vector.shape_cast %256 : vector<1x1x8x8xbf16> to vector<8x8xbf16>
    %258 = vector.shape_cast %255 : vector<8x8xbf16> to vector<1x1x8x8xbf16>
    tpu.vector_store %arg4[%c0_365, %c4_366, %c0_367, %c0_368], %258 {strides = array<i32>} : memref<1x8x8x8xbf16, #tpu.memory_space<vmem>>, vector<1x1x8x8xbf16>,
    %cst_369 = arith.constant 0.000000e+00 : f32
    %259 = vector.broadcast %cst_369 : f32 to vector<8x8xf32>
    %c0_370 = arith.constant 0 : index
    %c0_371 = arith.constant 0 : index
    %c0_372 = arith.constant 0 : index
    %c5_373 = arith.constant 5 : index
    %c0_374 = arith.constant 0 : index
    %c0_375 = arith.constant 0 : index
    %260 = vector.load %arg1[%c0_370, %c0_371, %c0_372, %c5_373, %c0_374, %c0_375] : memref<1x2x2x9x9x4xbf16, #tpu.memory_space<vmem>>, vector<1x1x1x1x8x4xbf16>
    %261 = vector.shape_cast %260 : vector<1x1x1x1x8x4xbf16> to vector<8x4xbf16>
    %cst_376 = arith.constant dense<0.000000e+00> : vector<8x8xf32>
    %262 = tpu.matmul %261, %1, %cst_376 {dimension_numbers = #tpu.dot_dimension_numbers<[1], [0], [0], [1], [0, 0, 1, 1], [], []>} : vector<8x4xbf16>, vector<4x8xbf16>, vector<8x8xf32> -> vector<8x8xf32>
    %263 = arith.addf %259, %262 : vector<8x8xf32>
    %c0_377 = arith.constant 0 : index
    %c0_378 = arith.constant 0 : index
    %c1_379 = arith.constant 1 : index
    %c5_380 = arith.constant 5 : index
    %c0_381 = arith.constant 0 : index
    %c0_382 = arith.constant 0 : index
    %264 = vector.load %arg1[%c0_377, %c0_378, %c1_379, %c5_380, %c0_381, %c0_382] : memref<1x2x2x9x9x4xbf16, #tpu.memory_space<vmem>>, vector<1x1x1x1x8x4xbf16>
    %265 = vector.shape_cast %264 : vector<1x1x1x1x8x4xbf16> to vector<8x4xbf16>
    %cst_383 = arith.constant dense<0.000000e+00> : vector<8x8xf32>
    %266 = tpu.matmul %265, %3, %cst_383 {dimension_numbers = #tpu.dot_dimension_numbers<[1], [0], [0], [1], [0, 0, 1, 1], [], []>} : vector<8x4xbf16>, vector<4x8xbf16>, vector<8x8xf32> -> vector<8x8xf32>
    %267 = arith.addf %263, %266 : vector<8x8xf32>
    %c0_384 = arith.constant 0 : index
    %c0_385 = arith.constant 0 : index
    %c0_386 = arith.constant 0 : index
    %c5_387 = arith.constant 5 : index
    %c1_388 = arith.constant 1 : index
    %c0_389 = arith.constant 0 : index
    %268 = vector.load %arg1[%c0_384, %c0_385, %c0_386, %c5_387, %c1_388, %c0_389] : memref<1x2x2x9x9x4xbf16, #tpu.memory_space<vmem>>, vector<1x1x1x1x8x4xbf16>
    %269 = vector.shape_cast %268 : vector<1x1x1x1x8x4xbf16> to vector<8x4xbf16>
    %cst_390 = arith.constant dense<0.000000e+00> : vector<8x8xf32>
    %270 = tpu.matmul %269, %5, %cst_390 {dimension_numbers = #tpu.dot_dimension_numbers<[1], [0], [0], [1], [0, 0, 1, 1], [], []>} : vector<8x4xbf16>, vector<4x8xbf16>, vector<8x8xf32> -> vector<8x8xf32>
    %271 = arith.addf %267, %270 : vector<8x8xf32>
    %c0_391 = arith.constant 0 : index
    %c1_392 = arith.constant 1 : index
    %c0_393 = arith.constant 0 : index
    %c5_394 = arith.constant 5 : index
    %c0_395 = arith.constant 0 : index
    %c0_396 = arith.constant 0 : index
    %272 = vector.load %arg1[%c0_391, %c1_392, %c0_393, %c5_394, %c0_395, %c0_396] : memref<1x2x2x9x9x4xbf16, #tpu.memory_space<vmem>>, vector<1x1x1x1x8x4xbf16>
    %273 = vector.shape_cast %272 : vector<1x1x1x1x8x4xbf16> to vector<8x4xbf16>
    %cst_397 = arith.constant dense<0.000000e+00> : vector<8x8xf32>
    %274 = tpu.matmul %273, %7, %cst_397 {dimension_numbers = #tpu.dot_dimension_numbers<[1], [0], [0], [1], [0, 0, 1, 1], [], []>} : vector<8x4xbf16>, vector<4x8xbf16>, vector<8x8xf32> -> vector<8x8xf32>
    %275 = arith.addf %271, %274 : vector<8x8xf32>
    %c0_398 = arith.constant 0 : index
    %c1_399 = arith.constant 1 : index
    %c1_400 = arith.constant 1 : index
    %c5_401 = arith.constant 5 : index
    %c0_402 = arith.constant 0 : index
    %c0_403 = arith.constant 0 : index
    %276 = vector.load %arg1[%c0_398, %c1_399, %c1_400, %c5_401, %c0_402, %c0_403] : memref<1x2x2x9x9x4xbf16, #tpu.memory_space<vmem>>, vector<1x1x1x1x8x4xbf16>
    %277 = vector.shape_cast %276 : vector<1x1x1x1x8x4xbf16> to vector<8x4xbf16>
    %cst_404 = arith.constant dense<0.000000e+00> : vector<8x8xf32>
    %278 = tpu.matmul %277, %9, %cst_404 {dimension_numbers = #tpu.dot_dimension_numbers<[1], [0], [0], [1], [0, 0, 1, 1], [], []>} : vector<8x4xbf16>, vector<4x8xbf16>, vector<8x8xf32> -> vector<8x8xf32>
    %279 = arith.addf %275, %278 : vector<8x8xf32>
    %c0_405 = arith.constant 0 : index
    %c1_406 = arith.constant 1 : index
    %c0_407 = arith.constant 0 : index
    %c5_408 = arith.constant 5 : index
    %c1_409 = arith.constant 1 : index
    %c0_410 = arith.constant 0 : index
    %280 = vector.load %arg1[%c0_405, %c1_406, %c0_407, %c5_408, %c1_409, %c0_410] : memref<1x2x2x9x9x4xbf16, #tpu.memory_space<vmem>>, vector<1x1x1x1x8x4xbf16>
    %281 = vector.shape_cast %280 : vector<1x1x1x1x8x4xbf16> to vector<8x4xbf16>
    %cst_411 = arith.constant dense<0.000000e+00> : vector<8x8xf32>
    %282 = tpu.matmul %281, %11, %cst_411 {dimension_numbers = #tpu.dot_dimension_numbers<[1], [0], [0], [1], [0, 0, 1, 1], [], []>} : vector<8x4xbf16>, vector<4x8xbf16>, vector<8x8xf32> -> vector<8x8xf32>
    %283 = arith.addf %279, %282 : vector<8x8xf32>
    %c0_412 = arith.constant 0 : index
    %c0_413 = arith.constant 0 : index
    %c0_414 = arith.constant 0 : index
    %c6_415 = arith.constant 6 : index
    %c0_416 = arith.constant 0 : index
    %c0_417 = arith.constant 0 : index
    %284 = vector.load %arg1[%c0_412, %c0_413, %c0_414, %c6_415, %c0_416, %c0_417] : memref<1x2x2x9x9x4xbf16, #tpu.memory_space<vmem>>, vector<1x1x1x1x8x4xbf16>
    %285 = vector.shape_cast %284 : vector<1x1x1x1x8x4xbf16> to vector<8x4xbf16>
    %cst_418 = arith.constant dense<0.000000e+00> : vector<8x8xf32>
    %286 = tpu.matmul %285, %13, %cst_418 {dimension_numbers = #tpu.dot_dimension_numbers<[1], [0], [0], [1], [0, 0, 1, 1], [], []>} : vector<8x4xbf16>, vector<4x8xbf16>, vector<8x8xf32> -> vector<8x8xf32>
    %287 = arith.addf %283, %286 : vector<8x8xf32>
    %c0_419 = arith.constant 0 : index
    %c0_420 = arith.constant 0 : index
    %c1_421 = arith.constant 1 : index
    %c6_422 = arith.constant 6 : index
    %c0_423 = arith.constant 0 : index
    %c0_424 = arith.constant 0 : index
    %288 = vector.load %arg1[%c0_419, %c0_420, %c1_421, %c6_422, %c0_423, %c0_424] : memref<1x2x2x9x9x4xbf16, #tpu.memory_space<vmem>>, vector<1x1x1x1x8x4xbf16>
    %289 = vector.shape_cast %288 : vector<1x1x1x1x8x4xbf16> to vector<8x4xbf16>
    %cst_425 = arith.constant dense<0.000000e+00> : vector<8x8xf32>
    %290 = tpu.matmul %289, %15, %cst_425 {dimension_numbers = #tpu.dot_dimension_numbers<[1], [0], [0], [1], [0, 0, 1, 1], [], []>} : vector<8x4xbf16>, vector<4x8xbf16>, vector<8x8xf32> -> vector<8x8xf32>
    %291 = arith.addf %287, %290 : vector<8x8xf32>
    %c0_426 = arith.constant 0 : index
    %c0_427 = arith.constant 0 : index
    %c0_428 = arith.constant 0 : index
    %c6_429 = arith.constant 6 : index
    %c1_430 = arith.constant 1 : index
    %c0_431 = arith.constant 0 : index
    %292 = vector.load %arg1[%c0_426, %c0_427, %c0_428, %c6_429, %c1_430, %c0_431] : memref<1x2x2x9x9x4xbf16, #tpu.memory_space<vmem>>, vector<1x1x1x1x8x4xbf16>
    %293 = vector.shape_cast %292 : vector<1x1x1x1x8x4xbf16> to vector<8x4xbf16>
    %cst_432 = arith.constant dense<0.000000e+00> : vector<8x8xf32>
    %294 = tpu.matmul %293, %17, %cst_432 {dimension_numbers = #tpu.dot_dimension_numbers<[1], [0], [0], [1], [0, 0, 1, 1], [], []>} : vector<8x4xbf16>, vector<4x8xbf16>, vector<8x8xf32> -> vector<8x8xf32>
    %295 = arith.addf %291, %294 : vector<8x8xf32>
    %296 = vector.broadcast %18 : vector<1x8xf32> to vector<8x8xf32>
    %297 = arith.addf %295, %296 : vector<8x8xf32>
    %cst_433 = arith.constant 0.000000e+00 : f32
    %298 = vector.broadcast %cst_433 : f32 to vector<8x8xf32>
    %299 = arith.cmpf oge, %297, %298 : vector<8x8xf32>
    %cst_434 = arith.constant 1.000000e-01 : f32
    %300 = vector.broadcast %cst_434 : f32 to vector<8x8xf32>
    %301 = arith.mulf %300, %297 : vector<8x8xf32>
    %302 = arith.select %299, %297, %301 : vector<8x8xi1>, vector<8x8xf32>
    %303 = arith.truncf %302 : vector<8x8xf32> to vector<8x8xbf16>
    %c0_435 = arith.constant 0 : index
    %c5_436 = arith.constant 5 : index
    %c0_437 = arith.constant 0 : index
    %c0_438 = arith.constant 0 : index
    %304 = vector.load %arg4[%c0_435, %c5_436, %c0_437, %c0_438] : memref<1x8x8x8xbf16, #tpu.memory_space<vmem>>, vector<1x1x8x8xbf16>
    %305 = vector.shape_cast %304 : vector<1x1x8x8xbf16> to vector<8x8xbf16>
    %306 = vector.shape_cast %303 : vector<8x8xbf16> to vector<1x1x8x8xbf16>
    tpu.vector_store %arg4[%c0_435, %c5_436, %c0_437, %c0_438], %306 {strides = array<i32>} : memref<1x8x8x8xbf16, #tpu.memory_space<vmem>>, vector<1x1x8x8xbf16>,
    %cst_439 = arith.constant 0.000000e+00 : f32
    %307 = vector.broadcast %cst_439 : f32 to vector<8x8xf32>
    %c0_440 = arith.constant 0 : index
    %c0_441 = arith.constant 0 : index
    %c0_442 = arith.constant 0 : index
    %c6_443 = arith.constant 6 : index
    %c0_444 = arith.constant 0 : index
    %c0_445 = arith.constant 0 : index
    %308 = vector.load %arg1[%c0_440, %c0_441, %c0_442, %c6_443, %c0_444, %c0_445] : memref<1x2x2x9x9x4xbf16, #tpu.memory_space<vmem>>, vector<1x1x1x1x8x4xbf16>
    %309 = vector.shape_cast %308 : vector<1x1x1x1x8x4xbf16> to vector<8x4xbf16>
    %cst_446 = arith.constant dense<0.000000e+00> : vector<8x8xf32>
    %310 = tpu.matmul %309, %1, %cst_446 {dimension_numbers = #tpu.dot_dimension_numbers<[1], [0], [0], [1], [0, 0, 1, 1], [], []>} : vector<8x4xbf16>, vector<4x8xbf16>, vector<8x8xf32> -> vector<8x8xf32>
    %311 = arith.addf %307, %310 : vector<8x8xf32>
    %c0_447 = arith.constant 0 : index
    %c0_448 = arith.constant 0 : index
    %c1_449 = arith.constant 1 : index
    %c6_450 = arith.constant 6 : index
    %c0_451 = arith.constant 0 : index
    %c0_452 = arith.constant 0 : index
    %312 = vector.load %arg1[%c0_447, %c0_448, %c1_449, %c6_450, %c0_451, %c0_452] : memref<1x2x2x9x9x4xbf16, #tpu.memory_space<vmem>>, vector<1x1x1x1x8x4xbf16>
    %313 = vector.shape_cast %312 : vector<1x1x1x1x8x4xbf16> to vector<8x4xbf16>
    %cst_453 = arith.constant dense<0.000000e+00> : vector<8x8xf32>
    %314 = tpu.matmul %313, %3, %cst_453 {dimension_numbers = #tpu.dot_dimension_numbers<[1], [0], [0], [1], [0, 0, 1, 1], [], []>} : vector<8x4xbf16>, vector<4x8xbf16>, vector<8x8xf32> -> vector<8x8xf32>
    %315 = arith.addf %311, %314 : vector<8x8xf32>
    %c0_454 = arith.constant 0 : index
    %c0_455 = arith.constant 0 : index
    %c0_456 = arith.constant 0 : index
    %c6_457 = arith.constant 6 : index
    %c1_458 = arith.constant 1 : index
    %c0_459 = arith.constant 0 : index
    %316 = vector.load %arg1[%c0_454, %c0_455, %c0_456, %c6_457, %c1_458, %c0_459] : memref<1x2x2x9x9x4xbf16, #tpu.memory_space<vmem>>, vector<1x1x1x1x8x4xbf16>
    %317 = vector.shape_cast %316 : vector<1x1x1x1x8x4xbf16> to vector<8x4xbf16>
    %cst_460 = arith.constant dense<0.000000e+00> : vector<8x8xf32>
    %318 = tpu.matmul %317, %5, %cst_460 {dimension_numbers = #tpu.dot_dimension_numbers<[1], [0], [0], [1], [0, 0, 1, 1], [], []>} : vector<8x4xbf16>, vector<4x8xbf16>, vector<8x8xf32> -> vector<8x8xf32>
    %319 = arith.addf %315, %318 : vector<8x8xf32>
    %c0_461 = arith.constant 0 : index
    %c1_462 = arith.constant 1 : index
    %c0_463 = arith.constant 0 : index
    %c6_464 = arith.constant 6 : index
    %c0_465 = arith.constant 0 : index
    %c0_466 = arith.constant 0 : index
    %320 = vector.load %arg1[%c0_461, %c1_462, %c0_463, %c6_464, %c0_465, %c0_466] : memref<1x2x2x9x9x4xbf16, #tpu.memory_space<vmem>>, vector<1x1x1x1x8x4xbf16>
    %321 = vector.shape_cast %320 : vector<1x1x1x1x8x4xbf16> to vector<8x4xbf16>
    %cst_467 = arith.constant dense<0.000000e+00> : vector<8x8xf32>
    %322 = tpu.matmul %321, %7, %cst_467 {dimension_numbers = #tpu.dot_dimension_numbers<[1], [0], [0], [1], [0, 0, 1, 1], [], []>} : vector<8x4xbf16>, vector<4x8xbf16>, vector<8x8xf32> -> vector<8x8xf32>
    %323 = arith.addf %319, %322 : vector<8x8xf32>
    %c0_468 = arith.constant 0 : index
    %c1_469 = arith.constant 1 : index
    %c1_470 = arith.constant 1 : index
    %c6_471 = arith.constant 6 : index
    %c0_472 = arith.constant 0 : index
    %c0_473 = arith.constant 0 : index
    %324 = vector.load %arg1[%c0_468, %c1_469, %c1_470, %c6_471, %c0_472, %c0_473] : memref<1x2x2x9x9x4xbf16, #tpu.memory_space<vmem>>, vector<1x1x1x1x8x4xbf16>
    %325 = vector.shape_cast %324 : vector<1x1x1x1x8x4xbf16> to vector<8x4xbf16>
    %cst_474 = arith.constant dense<0.000000e+00> : vector<8x8xf32>
    %326 = tpu.matmul %325, %9, %cst_474 {dimension_numbers = #tpu.dot_dimension_numbers<[1], [0], [0], [1], [0, 0, 1, 1], [], []>} : vector<8x4xbf16>, vector<4x8xbf16>, vector<8x8xf32> -> vector<8x8xf32>
    %327 = arith.addf %323, %326 : vector<8x8xf32>
    %c0_475 = arith.constant 0 : index
    %c1_476 = arith.constant 1 : index
    %c0_477 = arith.constant 0 : index
    %c6_478 = arith.constant 6 : index
    %c1_479 = arith.constant 1 : index
    %c0_480 = arith.constant 0 : index
    %328 = vector.load %arg1[%c0_475, %c1_476, %c0_477, %c6_478, %c1_479, %c0_480] : memref<1x2x2x9x9x4xbf16, #tpu.memory_space<vmem>>, vector<1x1x1x1x8x4xbf16>
    %329 = vector.shape_cast %328 : vector<1x1x1x1x8x4xbf16> to vector<8x4xbf16>
    %cst_481 = arith.constant dense<0.000000e+00> : vector<8x8xf32>
    %330 = tpu.matmul %329, %11, %cst_481 {dimension_numbers = #tpu.dot_dimension_numbers<[1], [0], [0], [1], [0, 0, 1, 1], [], []>} : vector<8x4xbf16>, vector<4x8xbf16>, vector<8x8xf32> -> vector<8x8xf32>
    %331 = arith.addf %327, %330 : vector<8x8xf32>
    %c0_482 = arith.constant 0 : index
    %c0_483 = arith.constant 0 : index
    %c0_484 = arith.constant 0 : index
    %c7_485 = arith.constant 7 : index
    %c0_486 = arith.constant 0 : index
    %c0_487 = arith.constant 0 : index
    %332 = vector.load %arg1[%c0_482, %c0_483, %c0_484, %c7_485, %c0_486, %c0_487] : memref<1x2x2x9x9x4xbf16, #tpu.memory_space<vmem>>, vector<1x1x1x1x8x4xbf16>
    %333 = vector.shape_cast %332 : vector<1x1x1x1x8x4xbf16> to vector<8x4xbf16>
    %cst_488 = arith.constant dense<0.000000e+00> : vector<8x8xf32>
    %334 = tpu.matmul %333, %13, %cst_488 {dimension_numbers = #tpu.dot_dimension_numbers<[1], [0], [0], [1], [0, 0, 1, 1], [], []>} : vector<8x4xbf16>, vector<4x8xbf16>, vector<8x8xf32> -> vector<8x8xf32>
    %335 = arith.addf %331, %334 : vector<8x8xf32>
    %c0_489 = arith.constant 0 : index
    %c0_490 = arith.constant 0 : index
    %c1_491 = arith.constant 1 : index
    %c7_492 = arith.constant 7 : index
    %c0_493 = arith.constant 0 : index
    %c0_494 = arith.constant 0 : index
    %336 = vector.load %arg1[%c0_489, %c0_490, %c1_491, %c7_492, %c0_493, %c0_494] : memref<1x2x2x9x9x4xbf16, #tpu.memory_space<vmem>>, vector<1x1x1x1x8x4xbf16>
    %337 = vector.shape_cast %336 : vector<1x1x1x1x8x4xbf16> to vector<8x4xbf16>
    %cst_495 = arith.constant dense<0.000000e+00> : vector<8x8xf32>
    %338 = tpu.matmul %337, %15, %cst_495 {dimension_numbers = #tpu.dot_dimension_numbers<[1], [0], [0], [1], [0, 0, 1, 1], [], []>} : vector<8x4xbf16>, vector<4x8xbf16>, vector<8x8xf32> -> vector<8x8xf32>
    %339 = arith.addf %335, %338 : vector<8x8xf32>
    %c0_496 = arith.constant 0 : index
    %c0_497 = arith.constant 0 : index
    %c0_498 = arith.constant 0 : index
    %c7_499 = arith.constant 7 : index
    %c1_500 = arith.constant 1 : index
    %c0_501 = arith.constant 0 : index
    %340 = vector.load %arg1[%c0_496, %c0_497, %c0_498, %c7_499, %c1_500, %c0_501] : memref<1x2x2x9x9x4xbf16, #tpu.memory_space<vmem>>, vector<1x1x1x1x8x4xbf16>
    %341 = vector.shape_cast %340 : vector<1x1x1x1x8x4xbf16> to vector<8x4xbf16>
    %cst_502 = arith.constant dense<0.000000e+00> : vector<8x8xf32>
    %342 = tpu.matmul %341, %17, %cst_502 {dimension_numbers = #tpu.dot_dimension_numbers<[1], [0], [0], [1], [0, 0, 1, 1], [], []>} : vector<8x4xbf16>, vector<4x8xbf16>, vector<8x8xf32> -> vector<8x8xf32>
    %343 = arith.addf %339, %342 : vector<8x8xf32>
    %344 = vector.broadcast %18 : vector<1x8xf32> to vector<8x8xf32>
    %345 = arith.addf %343, %344 : vector<8x8xf32>
    %cst_503 = arith.constant 0.000000e+00 : f32
    %346 = vector.broadcast %cst_503 : f32 to vector<8x8xf32>
    %347 = arith.cmpf oge, %345, %346 : vector<8x8xf32>
    %cst_504 = arith.constant 1.000000e-01 : f32
    %348 = vector.broadcast %cst_504 : f32 to vector<8x8xf32>
    %349 = arith.mulf %348, %345 : vector<8x8xf32>
    %350 = arith.select %347, %345, %349 : vector<8x8xi1>, vector<8x8xf32>
    %351 = arith.truncf %350 : vector<8x8xf32> to vector<8x8xbf16>
    %c0_505 = arith.constant 0 : index
    %c6_506 = arith.constant 6 : index
    %c0_507 = arith.constant 0 : index
    %c0_508 = arith.constant 0 : index
    %352 = vector.load %arg4[%c0_505, %c6_506, %c0_507, %c0_508] : memref<1x8x8x8xbf16, #tpu.memory_space<vmem>>, vector<1x1x8x8xbf16>
    %353 = vector.shape_cast %352 : vector<1x1x8x8xbf16> to vector<8x8xbf16>
    %354 = vector.shape_cast %351 : vector<8x8xbf16> to vector<1x1x8x8xbf16>
    tpu.vector_store %arg4[%c0_505, %c6_506, %c0_507, %c0_508], %354 {strides = array<i32>} : memref<1x8x8x8xbf16, #tpu.memory_space<vmem>>, vector<1x1x8x8xbf16>,
    %cst_509 = arith.constant 0.000000e+00 : f32
    %355 = vector.broadcast %cst_509 : f32 to vector<8x8xf32>
    %c0_510 = arith.constant 0 : index
    %c0_511 = arith.constant 0 : index
    %c0_512 = arith.constant 0 : index
    %c7_513 = arith.constant 7 : index
    %c0_514 = arith.constant 0 : index
    %c0_515 = arith.constant 0 : index
    %356 = vector.load %arg1[%c0_510, %c0_511, %c0_512, %c7_513, %c0_514, %c0_515] : memref<1x2x2x9x9x4xbf16, #tpu.memory_space<vmem>>, vector<1x1x1x1x8x4xbf16>
    %357 = vector.shape_cast %356 : vector<1x1x1x1x8x4xbf16> to vector<8x4xbf16>
    %cst_516 = arith.constant dense<0.000000e+00> : vector<8x8xf32>
    %358 = tpu.matmul %357, %1, %cst_516 {dimension_numbers = #tpu.dot_dimension_numbers<[1], [0], [0], [1], [0, 0, 1, 1], [], []>} : vector<8x4xbf16>, vector<4x8xbf16>, vector<8x8xf32> -> vector<8x8xf32>
    %359 = arith.addf %355, %358 : vector<8x8xf32>
    %c0_517 = arith.constant 0 : index
    %c0_518 = arith.constant 0 : index
    %c1_519 = arith.constant 1 : index
    %c7_520 = arith.constant 7 : index
    %c0_521 = arith.constant 0 : index
    %c0_522 = arith.constant 0 : index
    %360 = vector.load %arg1[%c0_517, %c0_518, %c1_519, %c7_520, %c0_521, %c0_522] : memref<1x2x2x9x9x4xbf16, #tpu.memory_space<vmem>>, vector<1x1x1x1x8x4xbf16>
    %361 = vector.shape_cast %360 : vector<1x1x1x1x8x4xbf16> to vector<8x4xbf16>
    %cst_523 = arith.constant dense<0.000000e+00> : vector<8x8xf32>
    %362 = tpu.matmul %361, %3, %cst_523 {dimension_numbers = #tpu.dot_dimension_numbers<[1], [0], [0], [1], [0, 0, 1, 1], [], []>} : vector<8x4xbf16>, vector<4x8xbf16>, vector<8x8xf32> -> vector<8x8xf32>
    %363 = arith.addf %359, %362 : vector<8x8xf32>
    %c0_524 = arith.constant 0 : index
    %c0_525 = arith.constant 0 : index
    %c0_526 = arith.constant 0 : index
    %c7_527 = arith.constant 7 : index
    %c1_528 = arith.constant 1 : index
    %c0_529 = arith.constant 0 : index
    %364 = vector.load %arg1[%c0_524, %c0_525, %c0_526, %c7_527, %c1_528, %c0_529] : memref<1x2x2x9x9x4xbf16, #tpu.memory_space<vmem>>, vector<1x1x1x1x8x4xbf16>
    %365 = vector.shape_cast %364 : vector<1x1x1x1x8x4xbf16> to vector<8x4xbf16>
    %cst_530 = arith.constant dense<0.000000e+00> : vector<8x8xf32>
    %366 = tpu.matmul %365, %5, %cst_530 {dimension_numbers = #tpu.dot_dimension_numbers<[1], [0], [0], [1], [0, 0, 1, 1], [], []>} : vector<8x4xbf16>, vector<4x8xbf16>, vector<8x8xf32> -> vector<8x8xf32>
    %367 = arith.addf %363, %366 : vector<8x8xf32>
    %c0_531 = arith.constant 0 : index
    %c1_532 = arith.constant 1 : index
    %c0_533 = arith.constant 0 : index
    %c7_534 = arith.constant 7 : index
    %c0_535 = arith.constant 0 : index
    %c0_536 = arith.constant 0 : index
    %368 = vector.load %arg1[%c0_531, %c1_532, %c0_533, %c7_534, %c0_535, %c0_536] : memref<1x2x2x9x9x4xbf16, #tpu.memory_space<vmem>>, vector<1x1x1x1x8x4xbf16>
    %369 = vector.shape_cast %368 : vector<1x1x1x1x8x4xbf16> to vector<8x4xbf16>
    %cst_537 = arith.constant dense<0.000000e+00> : vector<8x8xf32>
    %370 = tpu.matmul %369, %7, %cst_537 {dimension_numbers = #tpu.dot_dimension_numbers<[1], [0], [0], [1], [0, 0, 1, 1], [], []>} : vector<8x4xbf16>, vector<4x8xbf16>, vector<8x8xf32> -> vector<8x8xf32>
    %371 = arith.addf %367, %370 : vector<8x8xf32>
    %c0_538 = arith.constant 0 : index
    %c1_539 = arith.constant 1 : index
    %c1_540 = arith.constant 1 : index
    %c7_541 = arith.constant 7 : index
    %c0_542 = arith.constant 0 : index
    %c0_543 = arith.constant 0 : index
    %372 = vector.load %arg1[%c0_538, %c1_539, %c1_540, %c7_541, %c0_542, %c0_543] : memref<1x2x2x9x9x4xbf16, #tpu.memory_space<vmem>>, vector<1x1x1x1x8x4xbf16>
    %373 = vector.shape_cast %372 : vector<1x1x1x1x8x4xbf16> to vector<8x4xbf16>
    %cst_544 = arith.constant dense<0.000000e+00> : vector<8x8xf32>
    %374 = tpu.matmul %373, %9, %cst_544 {dimension_numbers = #tpu.dot_dimension_numbers<[1], [0], [0], [1], [0, 0, 1, 1], [], []>} : vector<8x4xbf16>, vector<4x8xbf16>, vector<8x8xf32> -> vector<8x8xf32>
    %375 = arith.addf %371, %374 : vector<8x8xf32>
    %c0_545 = arith.constant 0 : index
    %c1_546 = arith.constant 1 : index
    %c0_547 = arith.constant 0 : index
    %c7_548 = arith.constant 7 : index
    %c1_549 = arith.constant 1 : index
    %c0_550 = arith.constant 0 : index
    %376 = vector.load %arg1[%c0_545, %c1_546, %c0_547, %c7_548, %c1_549, %c0_550] : memref<1x2x2x9x9x4xbf16, #tpu.memory_space<vmem>>, vector<1x1x1x1x8x4xbf16>
    %377 = vector.shape_cast %376 : vector<1x1x1x1x8x4xbf16> to vector<8x4xbf16>
    %cst_551 = arith.constant dense<0.000000e+00> : vector<8x8xf32>
    %378 = tpu.matmul %377, %11, %cst_551 {dimension_numbers = #tpu.dot_dimension_numbers<[1], [0], [0], [1], [0, 0, 1, 1], [], []>} : vector<8x4xbf16>, vector<4x8xbf16>, vector<8x8xf32> -> vector<8x8xf32>
    %379 = arith.addf %375, %378 : vector<8x8xf32>
    %c0_552 = arith.constant 0 : index
    %c0_553 = arith.constant 0 : index
    %c0_554 = arith.constant 0 : index
    %c8_555 = arith.constant 8 : index
    %c0_556 = arith.constant 0 : index
    %c0_557 = arith.constant 0 : index
    %380 = vector.load %arg1[%c0_552, %c0_553, %c0_554, %c8_555, %c0_556, %c0_557] : memref<1x2x2x9x9x4xbf16, #tpu.memory_space<vmem>>, vector<1x1x1x1x8x4xbf16>
    %381 = vector.shape_cast %380 : vector<1x1x1x1x8x4xbf16> to vector<8x4xbf16>
    %cst_558 = arith.constant dense<0.000000e+00> : vector<8x8xf32>
    %382 = tpu.matmul %381, %13, %cst_558 {dimension_numbers = #tpu.dot_dimension_numbers<[1], [0], [0], [1], [0, 0, 1, 1], [], []>} : vector<8x4xbf16>, vector<4x8xbf16>, vector<8x8xf32> -> vector<8x8xf32>
    %383 = arith.addf %379, %382 : vector<8x8xf32>
    %c0_559 = arith.constant 0 : index
    %c0_560 = arith.constant 0 : index
    %c1_561 = arith.constant 1 : index
    %c8_562 = arith.constant 8 : index
    %c0_563 = arith.constant 0 : index
    %c0_564 = arith.constant 0 : index
    %384 = vector.load %arg1[%c0_559, %c0_560, %c1_561, %c8_562, %c0_563, %c0_564] : memref<1x2x2x9x9x4xbf16, #tpu.memory_space<vmem>>, vector<1x1x1x1x8x4xbf16>
    %385 = vector.shape_cast %384 : vector<1x1x1x1x8x4xbf16> to vector<8x4xbf16>
    %cst_565 = arith.constant dense<0.000000e+00> : vector<8x8xf32>
    %386 = tpu.matmul %385, %15, %cst_565 {dimension_numbers = #tpu.dot_dimension_numbers<[1], [0], [0], [1], [0, 0, 1, 1], [], []>} : vector<8x4xbf16>, vector<4x8xbf16>, vector<8x8xf32> -> vector<8x8xf32>
    %387 = arith.addf %383, %386 : vector<8x8xf32>
    %c0_566 = arith.constant 0 : index
    %c0_567 = arith.constant 0 : index
    %c0_568 = arith.constant 0 : index
    %c8_569 = arith.constant 8 : index
    %c1_570 = arith.constant 1 : index
    %c0_571 = arith.constant 0 : index
    %388 = vector.load %arg1[%c0_566, %c0_567, %c0_568, %c8_569, %c1_570, %c0_571] : memref<1x2x2x9x9x4xbf16, #tpu.memory_space<vmem>>, vector<1x1x1x1x8x4xbf16>
    %389 = vector.shape_cast %388 : vector<1x1x1x1x8x4xbf16> to vector<8x4xbf16>
    %cst_572 = arith.constant dense<0.000000e+00> : vector<8x8xf32>
    %390 = tpu.matmul %389, %17, %cst_572 {dimension_numbers = #tpu.dot_dimension_numbers<[1], [0], [0], [1], [0, 0, 1, 1], [], []>} : vector<8x4xbf16>, vector<4x8xbf16>, vector<8x8xf32> -> vector<8x8xf32>
    %391 = arith.addf %387, %390 : vector<8x8xf32>
    %392 = vector.broadcast %18 : vector<1x8xf32> to vector<8x8xf32>
    %393 = arith.addf %391, %392 : vector<8x8xf32>
    %cst_573 = arith.constant 0.000000e+00 : f32
    %394 = vector.broadcast %cst_573 : f32 to vector<8x8xf32>
    %395 = arith.cmpf oge, %393, %394 : vector<8x8xf32>
    %cst_574 = arith.constant 1.000000e-01 : f32
    %396 = vector.broadcast %cst_574 : f32 to vector<8x8xf32>
    %397 = arith.mulf %396, %393 : vector<8x8xf32>
    %398 = arith.select %395, %393, %397 : vector<8x8xi1>, vector<8x8xf32>
    %399 = arith.truncf %398 : vector<8x8xf32> to vector<8x8xbf16>
    %c0_575 = arith.constant 0 : index
    %c7_576 = arith.constant 7 : index
    %c0_577 = arith.constant 0 : index
    %c0_578 = arith.constant 0 : index
    %400 = vector.load %arg4[%c0_575, %c7_576, %c0_577, %c0_578] : memref<1x8x8x8xbf16, #tpu.memory_space<vmem>>, vector<1x1x8x8xbf16>
    %401 = vector.shape_cast %400 : vector<1x1x8x8xbf16> to vector<8x8xbf16>
    %402 = vector.shape_cast %399 : vector<8x8xbf16> to vector<1x1x8x8xbf16>
    tpu.vector_store %arg4[%c0_575, %c7_576, %c0_577, %c0_578], %402 {strides = array<i32>} : memref<1x8x8x8xbf16, #tpu.memory_space<vmem>>, vector<1x1x8x8xbf16>,
    return
  }
  func.func @transform_0(%arg0: i32) -> (i32, i32, i32, i32, i32, i32) {
    %c0_i32 = arith.constant 0 : i32
    %c0_i32_0 = arith.constant 0 : i32
    %c0_i32_1 = arith.constant 0 : i32
    %c0_i32_2 = arith.constant 0 : i32
    %c0_i32_3 = arith.constant 0 : i32
    %c0_i32_4 = arith.constant 0 : i32
    return %arg0, %c0_i32, %c0_i32_0, %c0_i32_1, %c0_i32_2, %c0_i32_3 : i32, i32, i32, i32, i32, i32
  }
  func.func @transform_1(%arg0: i32) -> (i32, i32, i32) {
    %c0_i32 = arith.constant 0 : i32
    %c0_i32_0 = arith.constant 0 : i32
    %c0_i32_1 = arith.constant 0 : i32
    %c0_i32_2 = arith.constant 0 : i32
    return %c0_i32, %c0_i32_0, %c0_i32_1 : i32, i32, i32
  }
  func.func @transform_2(%arg0: i32) -> (i32, i32) {
    %c0_i32 = arith.constant 0 : i32
    %c0_i32_0 = arith.constant 0 : i32
    %c0_i32_1 = arith.constant 0 : i32
    return %c0_i32, %c0_i32_0 : i32, i32
  }
  func.func @transform_3(%arg0: i32) -> (i32, i32, i32, i32) {
    %c0_i32 = arith.constant 0 : i32
    %c0_i32_0 = arith.constant 0 : i32
    %c0_i32_1 = arith.constant 0 : i32
    %c0_i32_2 = arith.constant 0 : i32
    return %arg0, %c0_i32, %c0_i32_0, %c0_i32_1 : i32, i32, i32, i32
  }
}

module attributes {stable_mosaic.version = 11 : i64} {
  func.func @_conv_taps_kernel(%arg0: i32, %arg1: memref<1x1x1x9x9x8xbf16, #tpu.memory_space<vmem>>, %arg2: memref<4x8x8xbf16, #tpu.memory_space<vmem>>, %arg3: memref<1x8xf32, #tpu.memory_space<vmem>>, %arg4: memref<1x8x8x8xbf16, #tpu.memory_space<vmem>>) attributes {dimension_semantics = [#tpu.dimension_semantics<parallel>], iteration_bounds = array<i64: 2>, scalar_prefetch = 0 : i64, scratch_operands = 0 : i64, tpu.core_type = #tpu.core_type<tc>, window_params = [{transform_indices = @transform_0, window_bounds = array<i64: 1, 1, 1, 9, 9, 8>}, {pipeline_mode = #tpu.pipeline_mode<synchronous>, transform_indices = @transform_1, window_bounds = array<i64: 4, 8, 8>}, {pipeline_mode = #tpu.pipeline_mode<synchronous>, transform_indices = @transform_2, window_bounds = array<i64: 1, 8>}, {transform_indices = @transform_3, window_bounds = array<i64: 1, 8, 8, 8>}]} {
    %c0 = arith.constant 0 : index
    %c0_0 = arith.constant 0 : index
    %c0_1 = arith.constant 0 : index
    %0 = vector.load %arg2[%c0, %c0_0, %c0_1] : memref<4x8x8xbf16, #tpu.memory_space<vmem>>, vector<1x8x8xbf16>
    %1 = vector.shape_cast %0 : vector<1x8x8xbf16> to vector<8x8xbf16>
    %c1 = arith.constant 1 : index
    %c0_2 = arith.constant 0 : index
    %c0_3 = arith.constant 0 : index
    %2 = vector.load %arg2[%c1, %c0_2, %c0_3] : memref<4x8x8xbf16, #tpu.memory_space<vmem>>, vector<1x8x8xbf16>
    %3 = vector.shape_cast %2 : vector<1x8x8xbf16> to vector<8x8xbf16>
    %c2 = arith.constant 2 : index
    %c0_4 = arith.constant 0 : index
    %c0_5 = arith.constant 0 : index
    %4 = vector.load %arg2[%c2, %c0_4, %c0_5] : memref<4x8x8xbf16, #tpu.memory_space<vmem>>, vector<1x8x8xbf16>
    %5 = vector.shape_cast %4 : vector<1x8x8xbf16> to vector<8x8xbf16>
    %c3 = arith.constant 3 : index
    %c0_6 = arith.constant 0 : index
    %c0_7 = arith.constant 0 : index
    %6 = vector.load %arg2[%c3, %c0_6, %c0_7] : memref<4x8x8xbf16, #tpu.memory_space<vmem>>, vector<1x8x8xbf16>
    %7 = vector.shape_cast %6 : vector<1x8x8xbf16> to vector<8x8xbf16>
    %c0_8 = arith.constant 0 : index
    %c0_9 = arith.constant 0 : index
    %8 = vector.load %arg3[%c0_8, %c0_9] : memref<1x8xf32, #tpu.memory_space<vmem>>, vector<1x8xf32>
    %cst = arith.constant 0.000000e+00 : f32
    %9 = vector.broadcast %cst : f32 to vector<8x8xf32>
    %c0_10 = arith.constant 0 : index
    %c0_11 = arith.constant 0 : index
    %c0_12 = arith.constant 0 : index
    %c0_13 = arith.constant 0 : index
    %c0_14 = arith.constant 0 : index
    %c0_15 = arith.constant 0 : index
    %10 = vector.load %arg1[%c0_10, %c0_11, %c0_12, %c0_13, %c0_14, %c0_15] : memref<1x1x1x9x9x8xbf16, #tpu.memory_space<vmem>>, vector<1x1x1x1x8x8xbf16>
    %11 = vector.shape_cast %10 : vector<1x1x1x1x8x8xbf16> to vector<8x8xbf16>
    %cst_16 = arith.constant dense<0.000000e+00> : vector<8x8xf32>
    %12 = tpu.matmul %11, %1, %cst_16 {dimension_numbers = #tpu.dot_dimension_numbers<[1], [0], [0], [1], [0, 0, 1, 1], [], []>} : vector<8x8xbf16>, vector<8x8xbf16>, vector<8x8xf32> -> vector<8x8xf32>
    %13 = arith.addf %9, %12 : vector<8x8xf32>
    %c0_17 = arith.constant 0 : index
    %c0_18 = arith.constant 0 : index
    %c0_19 = arith.constant 0 : index
    %c0_20 = arith.constant 0 : index
    %c1_21 = arith.constant 1 : index
    %c0_22 = arith.constant 0 : index
    %14 = vector.load %arg1[%c0_17, %c0_18, %c0_19, %c0_20, %c1_21, %c0_22] : memref<1x1x1x9x9x8xbf16, #tpu.memory_space<vmem>>, vector<1x1x1x1x8x8xbf16>
    %15 = vector.shape_cast %14 : vector<1x1x1x1x8x8xbf16> to vector<8x8xbf16>
    %cst_23 = arith.constant dense<0.000000e+00> : vector<8x8xf32>
    %16 = tpu.matmul %15, %3, %cst_23 {dimension_numbers = #tpu.dot_dimension_numbers<[1], [0], [0], [1], [0, 0, 1, 1], [], []>} : vector<8x8xbf16>, vector<8x8xbf16>, vector<8x8xf32> -> vector<8x8xf32>
    %17 = arith.addf %13, %16 : vector<8x8xf32>
    %c0_24 = arith.constant 0 : index
    %c0_25 = arith.constant 0 : index
    %c0_26 = arith.constant 0 : index
    %c1_27 = arith.constant 1 : index
    %c0_28 = arith.constant 0 : index
    %c0_29 = arith.constant 0 : index
    %18 = vector.load %arg1[%c0_24, %c0_25, %c0_26, %c1_27, %c0_28, %c0_29] : memref<1x1x1x9x9x8xbf16, #tpu.memory_space<vmem>>, vector<1x1x1x1x8x8xbf16>
    %19 = vector.shape_cast %18 : vector<1x1x1x1x8x8xbf16> to vector<8x8xbf16>
    %cst_30 = arith.constant dense<0.000000e+00> : vector<8x8xf32>
    %20 = tpu.matmul %19, %5, %cst_30 {dimension_numbers = #tpu.dot_dimension_numbers<[1], [0], [0], [1], [0, 0, 1, 1], [], []>} : vector<8x8xbf16>, vector<8x8xbf16>, vector<8x8xf32> -> vector<8x8xf32>
    %21 = arith.addf %17, %20 : vector<8x8xf32>
    %c0_31 = arith.constant 0 : index
    %c0_32 = arith.constant 0 : index
    %c0_33 = arith.constant 0 : index
    %c1_34 = arith.constant 1 : index
    %c1_35 = arith.constant 1 : index
    %c0_36 = arith.constant 0 : index
    %22 = vector.load %arg1[%c0_31, %c0_32, %c0_33, %c1_34, %c1_35, %c0_36] : memref<1x1x1x9x9x8xbf16, #tpu.memory_space<vmem>>, vector<1x1x1x1x8x8xbf16>
    %23 = vector.shape_cast %22 : vector<1x1x1x1x8x8xbf16> to vector<8x8xbf16>
    %cst_37 = arith.constant dense<0.000000e+00> : vector<8x8xf32>
    %24 = tpu.matmul %23, %7, %cst_37 {dimension_numbers = #tpu.dot_dimension_numbers<[1], [0], [0], [1], [0, 0, 1, 1], [], []>} : vector<8x8xbf16>, vector<8x8xbf16>, vector<8x8xf32> -> vector<8x8xf32>
    %25 = arith.addf %21, %24 : vector<8x8xf32>
    %26 = vector.broadcast %8 : vector<1x8xf32> to vector<8x8xf32>
    %27 = arith.addf %25, %26 : vector<8x8xf32>
    %cst_38 = arith.constant 0.000000e+00 : f32
    %28 = vector.broadcast %cst_38 : f32 to vector<8x8xf32>
    %29 = arith.cmpf oge, %27, %28 : vector<8x8xf32>
    %cst_39 = arith.constant 1.000000e-01 : f32
    %30 = vector.broadcast %cst_39 : f32 to vector<8x8xf32>
    %31 = arith.mulf %30, %27 : vector<8x8xf32>
    %32 = arith.select %29, %27, %31 : vector<8x8xi1>, vector<8x8xf32>
    %33 = arith.truncf %32 : vector<8x8xf32> to vector<8x8xbf16>
    %c0_40 = arith.constant 0 : index
    %c0_41 = arith.constant 0 : index
    %c0_42 = arith.constant 0 : index
    %c0_43 = arith.constant 0 : index
    %34 = vector.load %arg4[%c0_40, %c0_41, %c0_42, %c0_43] : memref<1x8x8x8xbf16, #tpu.memory_space<vmem>>, vector<1x1x8x8xbf16>
    %35 = vector.shape_cast %34 : vector<1x1x8x8xbf16> to vector<8x8xbf16>
    %36 = vector.shape_cast %33 : vector<8x8xbf16> to vector<1x1x8x8xbf16>
    tpu.vector_store %arg4[%c0_40, %c0_41, %c0_42, %c0_43], %36 {strides = array<i32>} : memref<1x8x8x8xbf16, #tpu.memory_space<vmem>>, vector<1x1x8x8xbf16>,
    %cst_44 = arith.constant 0.000000e+00 : f32
    %37 = vector.broadcast %cst_44 : f32 to vector<8x8xf32>
    %c0_45 = arith.constant 0 : index
    %c0_46 = arith.constant 0 : index
    %c0_47 = arith.constant 0 : index
    %c1_48 = arith.constant 1 : index
    %c0_49 = arith.constant 0 : index
    %c0_50 = arith.constant 0 : index
    %38 = vector.load %arg1[%c0_45, %c0_46, %c0_47, %c1_48, %c0_49, %c0_50] : memref<1x1x1x9x9x8xbf16, #tpu.memory_space<vmem>>, vector<1x1x1x1x8x8xbf16>
    %39 = vector.shape_cast %38 : vector<1x1x1x1x8x8xbf16> to vector<8x8xbf16>
    %cst_51 = arith.constant dense<0.000000e+00> : vector<8x8xf32>
    %40 = tpu.matmul %39, %1, %cst_51 {dimension_numbers = #tpu.dot_dimension_numbers<[1], [0], [0], [1], [0, 0, 1, 1], [], []>} : vector<8x8xbf16>, vector<8x8xbf16>, vector<8x8xf32> -> vector<8x8xf32>
    %41 = arith.addf %37, %40 : vector<8x8xf32>
    %c0_52 = arith.constant 0 : index
    %c0_53 = arith.constant 0 : index
    %c0_54 = arith.constant 0 : index
    %c1_55 = arith.constant 1 : index
    %c1_56 = arith.constant 1 : index
    %c0_57 = arith.constant 0 : index
    %42 = vector.load %arg1[%c0_52, %c0_53, %c0_54, %c1_55, %c1_56, %c0_57] : memref<1x1x1x9x9x8xbf16, #tpu.memory_space<vmem>>, vector<1x1x1x1x8x8xbf16>
    %43 = vector.shape_cast %42 : vector<1x1x1x1x8x8xbf16> to vector<8x8xbf16>
    %cst_58 = arith.constant dense<0.000000e+00> : vector<8x8xf32>
    %44 = tpu.matmul %43, %3, %cst_58 {dimension_numbers = #tpu.dot_dimension_numbers<[1], [0], [0], [1], [0, 0, 1, 1], [], []>} : vector<8x8xbf16>, vector<8x8xbf16>, vector<8x8xf32> -> vector<8x8xf32>
    %45 = arith.addf %41, %44 : vector<8x8xf32>
    %c0_59 = arith.constant 0 : index
    %c0_60 = arith.constant 0 : index
    %c0_61 = arith.constant 0 : index
    %c2_62 = arith.constant 2 : index
    %c0_63 = arith.constant 0 : index
    %c0_64 = arith.constant 0 : index
    %46 = vector.load %arg1[%c0_59, %c0_60, %c0_61, %c2_62, %c0_63, %c0_64] : memref<1x1x1x9x9x8xbf16, #tpu.memory_space<vmem>>, vector<1x1x1x1x8x8xbf16>
    %47 = vector.shape_cast %46 : vector<1x1x1x1x8x8xbf16> to vector<8x8xbf16>
    %cst_65 = arith.constant dense<0.000000e+00> : vector<8x8xf32>
    %48 = tpu.matmul %47, %5, %cst_65 {dimension_numbers = #tpu.dot_dimension_numbers<[1], [0], [0], [1], [0, 0, 1, 1], [], []>} : vector<8x8xbf16>, vector<8x8xbf16>, vector<8x8xf32> -> vector<8x8xf32>
    %49 = arith.addf %45, %48 : vector<8x8xf32>
    %c0_66 = arith.constant 0 : index
    %c0_67 = arith.constant 0 : index
    %c0_68 = arith.constant 0 : index
    %c2_69 = arith.constant 2 : index
    %c1_70 = arith.constant 1 : index
    %c0_71 = arith.constant 0 : index
    %50 = vector.load %arg1[%c0_66, %c0_67, %c0_68, %c2_69, %c1_70, %c0_71] : memref<1x1x1x9x9x8xbf16, #tpu.memory_space<vmem>>, vector<1x1x1x1x8x8xbf16>
    %51 = vector.shape_cast %50 : vector<1x1x1x1x8x8xbf16> to vector<8x8xbf16>
    %cst_72 = arith.constant dense<0.000000e+00> : vector<8x8xf32>
    %52 = tpu.matmul %51, %7, %cst_72 {dimension_numbers = #tpu.dot_dimension_numbers<[1], [0], [0], [1], [0, 0, 1, 1], [], []>} : vector<8x8xbf16>, vector<8x8xbf16>, vector<8x8xf32> -> vector<8x8xf32>
    %53 = arith.addf %49, %52 : vector<8x8xf32>
    %54 = vector.broadcast %8 : vector<1x8xf32> to vector<8x8xf32>
    %55 = arith.addf %53, %54 : vector<8x8xf32>
    %cst_73 = arith.constant 0.000000e+00 : f32
    %56 = vector.broadcast %cst_73 : f32 to vector<8x8xf32>
    %57 = arith.cmpf oge, %55, %56 : vector<8x8xf32>
    %cst_74 = arith.constant 1.000000e-01 : f32
    %58 = vector.broadcast %cst_74 : f32 to vector<8x8xf32>
    %59 = arith.mulf %58, %55 : vector<8x8xf32>
    %60 = arith.select %57, %55, %59 : vector<8x8xi1>, vector<8x8xf32>
    %61 = arith.truncf %60 : vector<8x8xf32> to vector<8x8xbf16>
    %c0_75 = arith.constant 0 : index
    %c1_76 = arith.constant 1 : index
    %c0_77 = arith.constant 0 : index
    %c0_78 = arith.constant 0 : index
    %62 = vector.load %arg4[%c0_75, %c1_76, %c0_77, %c0_78] : memref<1x8x8x8xbf16, #tpu.memory_space<vmem>>, vector<1x1x8x8xbf16>
    %63 = vector.shape_cast %62 : vector<1x1x8x8xbf16> to vector<8x8xbf16>
    %64 = vector.shape_cast %61 : vector<8x8xbf16> to vector<1x1x8x8xbf16>
    tpu.vector_store %arg4[%c0_75, %c1_76, %c0_77, %c0_78], %64 {strides = array<i32>} : memref<1x8x8x8xbf16, #tpu.memory_space<vmem>>, vector<1x1x8x8xbf16>,
    %cst_79 = arith.constant 0.000000e+00 : f32
    %65 = vector.broadcast %cst_79 : f32 to vector<8x8xf32>
    %c0_80 = arith.constant 0 : index
    %c0_81 = arith.constant 0 : index
    %c0_82 = arith.constant 0 : index
    %c2_83 = arith.constant 2 : index
    %c0_84 = arith.constant 0 : index
    %c0_85 = arith.constant 0 : index
    %66 = vector.load %arg1[%c0_80, %c0_81, %c0_82, %c2_83, %c0_84, %c0_85] : memref<1x1x1x9x9x8xbf16, #tpu.memory_space<vmem>>, vector<1x1x1x1x8x8xbf16>
    %67 = vector.shape_cast %66 : vector<1x1x1x1x8x8xbf16> to vector<8x8xbf16>
    %cst_86 = arith.constant dense<0.000000e+00> : vector<8x8xf32>
    %68 = tpu.matmul %67, %1, %cst_86 {dimension_numbers = #tpu.dot_dimension_numbers<[1], [0], [0], [1], [0, 0, 1, 1], [], []>} : vector<8x8xbf16>, vector<8x8xbf16>, vector<8x8xf32> -> vector<8x8xf32>
    %69 = arith.addf %65, %68 : vector<8x8xf32>
    %c0_87 = arith.constant 0 : index
    %c0_88 = arith.constant 0 : index
    %c0_89 = arith.constant 0 : index
    %c2_90 = arith.constant 2 : index
    %c1_91 = arith.constant 1 : index
    %c0_92 = arith.constant 0 : index
    %70 = vector.load %arg1[%c0_87, %c0_88, %c0_89, %c2_90, %c1_91, %c0_92] : memref<1x1x1x9x9x8xbf16, #tpu.memory_space<vmem>>, vector<1x1x1x1x8x8xbf16>
    %71 = vector.shape_cast %70 : vector<1x1x1x1x8x8xbf16> to vector<8x8xbf16>
    %cst_93 = arith.constant dense<0.000000e+00> : vector<8x8xf32>
    %72 = tpu.matmul %71, %3, %cst_93 {dimension_numbers = #tpu.dot_dimension_numbers<[1], [0], [0], [1], [0, 0, 1, 1], [], []>} : vector<8x8xbf16>, vector<8x8xbf16>, vector<8x8xf32> -> vector<8x8xf32>
    %73 = arith.addf %69, %72 : vector<8x8xf32>
    %c0_94 = arith.constant 0 : index
    %c0_95 = arith.constant 0 : index
    %c0_96 = arith.constant 0 : index
    %c3_97 = arith.constant 3 : index
    %c0_98 = arith.constant 0 : index
    %c0_99 = arith.constant 0 : index
    %74 = vector.load %arg1[%c0_94, %c0_95, %c0_96, %c3_97, %c0_98, %c0_99] : memref<1x1x1x9x9x8xbf16, #tpu.memory_space<vmem>>, vector<1x1x1x1x8x8xbf16>
    %75 = vector.shape_cast %74 : vector<1x1x1x1x8x8xbf16> to vector<8x8xbf16>
    %cst_100 = arith.constant dense<0.000000e+00> : vector<8x8xf32>
    %76 = tpu.matmul %75, %5, %cst_100 {dimension_numbers = #tpu.dot_dimension_numbers<[1], [0], [0], [1], [0, 0, 1, 1], [], []>} : vector<8x8xbf16>, vector<8x8xbf16>, vector<8x8xf32> -> vector<8x8xf32>
    %77 = arith.addf %73, %76 : vector<8x8xf32>
    %c0_101 = arith.constant 0 : index
    %c0_102 = arith.constant 0 : index
    %c0_103 = arith.constant 0 : index
    %c3_104 = arith.constant 3 : index
    %c1_105 = arith.constant 1 : index
    %c0_106 = arith.constant 0 : index
    %78 = vector.load %arg1[%c0_101, %c0_102, %c0_103, %c3_104, %c1_105, %c0_106] : memref<1x1x1x9x9x8xbf16, #tpu.memory_space<vmem>>, vector<1x1x1x1x8x8xbf16>
    %79 = vector.shape_cast %78 : vector<1x1x1x1x8x8xbf16> to vector<8x8xbf16>
    %cst_107 = arith.constant dense<0.000000e+00> : vector<8x8xf32>
    %80 = tpu.matmul %79, %7, %cst_107 {dimension_numbers = #tpu.dot_dimension_numbers<[1], [0], [0], [1], [0, 0, 1, 1], [], []>} : vector<8x8xbf16>, vector<8x8xbf16>, vector<8x8xf32> -> vector<8x8xf32>
    %81 = arith.addf %77, %80 : vector<8x8xf32>
    %82 = vector.broadcast %8 : vector<1x8xf32> to vector<8x8xf32>
    %83 = arith.addf %81, %82 : vector<8x8xf32>
    %cst_108 = arith.constant 0.000000e+00 : f32
    %84 = vector.broadcast %cst_108 : f32 to vector<8x8xf32>
    %85 = arith.cmpf oge, %83, %84 : vector<8x8xf32>
    %cst_109 = arith.constant 1.000000e-01 : f32
    %86 = vector.broadcast %cst_109 : f32 to vector<8x8xf32>
    %87 = arith.mulf %86, %83 : vector<8x8xf32>
    %88 = arith.select %85, %83, %87 : vector<8x8xi1>, vector<8x8xf32>
    %89 = arith.truncf %88 : vector<8x8xf32> to vector<8x8xbf16>
    %c0_110 = arith.constant 0 : index
    %c2_111 = arith.constant 2 : index
    %c0_112 = arith.constant 0 : index
    %c0_113 = arith.constant 0 : index
    %90 = vector.load %arg4[%c0_110, %c2_111, %c0_112, %c0_113] : memref<1x8x8x8xbf16, #tpu.memory_space<vmem>>, vector<1x1x8x8xbf16>
    %91 = vector.shape_cast %90 : vector<1x1x8x8xbf16> to vector<8x8xbf16>
    %92 = vector.shape_cast %89 : vector<8x8xbf16> to vector<1x1x8x8xbf16>
    tpu.vector_store %arg4[%c0_110, %c2_111, %c0_112, %c0_113], %92 {strides = array<i32>} : memref<1x8x8x8xbf16, #tpu.memory_space<vmem>>, vector<1x1x8x8xbf16>,
    %cst_114 = arith.constant 0.000000e+00 : f32
    %93 = vector.broadcast %cst_114 : f32 to vector<8x8xf32>
    %c0_115 = arith.constant 0 : index
    %c0_116 = arith.constant 0 : index
    %c0_117 = arith.constant 0 : index
    %c3_118 = arith.constant 3 : index
    %c0_119 = arith.constant 0 : index
    %c0_120 = arith.constant 0 : index
    %94 = vector.load %arg1[%c0_115, %c0_116, %c0_117, %c3_118, %c0_119, %c0_120] : memref<1x1x1x9x9x8xbf16, #tpu.memory_space<vmem>>, vector<1x1x1x1x8x8xbf16>
    %95 = vector.shape_cast %94 : vector<1x1x1x1x8x8xbf16> to vector<8x8xbf16>
    %cst_121 = arith.constant dense<0.000000e+00> : vector<8x8xf32>
    %96 = tpu.matmul %95, %1, %cst_121 {dimension_numbers = #tpu.dot_dimension_numbers<[1], [0], [0], [1], [0, 0, 1, 1], [], []>} : vector<8x8xbf16>, vector<8x8xbf16>, vector<8x8xf32> -> vector<8x8xf32>
    %97 = arith.addf %93, %96 : vector<8x8xf32>
    %c0_122 = arith.constant 0 : index
    %c0_123 = arith.constant 0 : index
    %c0_124 = arith.constant 0 : index
    %c3_125 = arith.constant 3 : index
    %c1_126 = arith.constant 1 : index
    %c0_127 = arith.constant 0 : index
    %98 = vector.load %arg1[%c0_122, %c0_123, %c0_124, %c3_125, %c1_126, %c0_127] : memref<1x1x1x9x9x8xbf16, #tpu.memory_space<vmem>>, vector<1x1x1x1x8x8xbf16>
    %99 = vector.shape_cast %98 : vector<1x1x1x1x8x8xbf16> to vector<8x8xbf16>
    %cst_128 = arith.constant dense<0.000000e+00> : vector<8x8xf32>
    %100 = tpu.matmul %99, %3, %cst_128 {dimension_numbers = #tpu.dot_dimension_numbers<[1], [0], [0], [1], [0, 0, 1, 1], [], []>} : vector<8x8xbf16>, vector<8x8xbf16>, vector<8x8xf32> -> vector<8x8xf32>
    %101 = arith.addf %97, %100 : vector<8x8xf32>
    %c0_129 = arith.constant 0 : index
    %c0_130 = arith.constant 0 : index
    %c0_131 = arith.constant 0 : index
    %c4 = arith.constant 4 : index
    %c0_132 = arith.constant 0 : index
    %c0_133 = arith.constant 0 : index
    %102 = vector.load %arg1[%c0_129, %c0_130, %c0_131, %c4, %c0_132, %c0_133] : memref<1x1x1x9x9x8xbf16, #tpu.memory_space<vmem>>, vector<1x1x1x1x8x8xbf16>
    %103 = vector.shape_cast %102 : vector<1x1x1x1x8x8xbf16> to vector<8x8xbf16>
    %cst_134 = arith.constant dense<0.000000e+00> : vector<8x8xf32>
    %104 = tpu.matmul %103, %5, %cst_134 {dimension_numbers = #tpu.dot_dimension_numbers<[1], [0], [0], [1], [0, 0, 1, 1], [], []>} : vector<8x8xbf16>, vector<8x8xbf16>, vector<8x8xf32> -> vector<8x8xf32>
    %105 = arith.addf %101, %104 : vector<8x8xf32>
    %c0_135 = arith.constant 0 : index
    %c0_136 = arith.constant 0 : index
    %c0_137 = arith.constant 0 : index
    %c4_138 = arith.constant 4 : index
    %c1_139 = arith.constant 1 : index
    %c0_140 = arith.constant 0 : index
    %106 = vector.load %arg1[%c0_135, %c0_136, %c0_137, %c4_138, %c1_139, %c0_140] : memref<1x1x1x9x9x8xbf16, #tpu.memory_space<vmem>>, vector<1x1x1x1x8x8xbf16>
    %107 = vector.shape_cast %106 : vector<1x1x1x1x8x8xbf16> to vector<8x8xbf16>
    %cst_141 = arith.constant dense<0.000000e+00> : vector<8x8xf32>
    %108 = tpu.matmul %107, %7, %cst_141 {dimension_numbers = #tpu.dot_dimension_numbers<[1], [0], [0], [1], [0, 0, 1, 1], [], []>} : vector<8x8xbf16>, vector<8x8xbf16>, vector<8x8xf32> -> vector<8x8xf32>
    %109 = arith.addf %105, %108 : vector<8x8xf32>
    %110 = vector.broadcast %8 : vector<1x8xf32> to vector<8x8xf32>
    %111 = arith.addf %109, %110 : vector<8x8xf32>
    %cst_142 = arith.constant 0.000000e+00 : f32
    %112 = vector.broadcast %cst_142 : f32 to vector<8x8xf32>
    %113 = arith.cmpf oge, %111, %112 : vector<8x8xf32>
    %cst_143 = arith.constant 1.000000e-01 : f32
    %114 = vector.broadcast %cst_143 : f32 to vector<8x8xf32>
    %115 = arith.mulf %114, %111 : vector<8x8xf32>
    %116 = arith.select %113, %111, %115 : vector<8x8xi1>, vector<8x8xf32>
    %117 = arith.truncf %116 : vector<8x8xf32> to vector<8x8xbf16>
    %c0_144 = arith.constant 0 : index
    %c3_145 = arith.constant 3 : index
    %c0_146 = arith.constant 0 : index
    %c0_147 = arith.constant 0 : index
    %118 = vector.load %arg4[%c0_144, %c3_145, %c0_146, %c0_147] : memref<1x8x8x8xbf16, #tpu.memory_space<vmem>>, vector<1x1x8x8xbf16>
    %119 = vector.shape_cast %118 : vector<1x1x8x8xbf16> to vector<8x8xbf16>
    %120 = vector.shape_cast %117 : vector<8x8xbf16> to vector<1x1x8x8xbf16>
    tpu.vector_store %arg4[%c0_144, %c3_145, %c0_146, %c0_147], %120 {strides = array<i32>} : memref<1x8x8x8xbf16, #tpu.memory_space<vmem>>, vector<1x1x8x8xbf16>,
    %cst_148 = arith.constant 0.000000e+00 : f32
    %121 = vector.broadcast %cst_148 : f32 to vector<8x8xf32>
    %c0_149 = arith.constant 0 : index
    %c0_150 = arith.constant 0 : index
    %c0_151 = arith.constant 0 : index
    %c4_152 = arith.constant 4 : index
    %c0_153 = arith.constant 0 : index
    %c0_154 = arith.constant 0 : index
    %122 = vector.load %arg1[%c0_149, %c0_150, %c0_151, %c4_152, %c0_153, %c0_154] : memref<1x1x1x9x9x8xbf16, #tpu.memory_space<vmem>>, vector<1x1x1x1x8x8xbf16>
    %123 = vector.shape_cast %122 : vector<1x1x1x1x8x8xbf16> to vector<8x8xbf16>
    %cst_155 = arith.constant dense<0.000000e+00> : vector<8x8xf32>
    %124 = tpu.matmul %123, %1, %cst_155 {dimension_numbers = #tpu.dot_dimension_numbers<[1], [0], [0], [1], [0, 0, 1, 1], [], []>} : vector<8x8xbf16>, vector<8x8xbf16>, vector<8x8xf32> -> vector<8x8xf32>
    %125 = arith.addf %121, %124 : vector<8x8xf32>
    %c0_156 = arith.constant 0 : index
    %c0_157 = arith.constant 0 : index
    %c0_158 = arith.constant 0 : index
    %c4_159 = arith.constant 4 : index
    %c1_160 = arith.constant 1 : index
    %c0_161 = arith.constant 0 : index
    %126 = vector.load %arg1[%c0_156, %c0_157, %c0_158, %c4_159, %c1_160, %c0_161] : memref<1x1x1x9x9x8xbf16, #tpu.memory_space<vmem>>, vector<1x1x1x1x8x8xbf16>
    %127 = vector.shape_cast %126 : vector<1x1x1x1x8x8xbf16> to vector<8x8xbf16>
    %cst_162 = arith.constant dense<0.000000e+00> : vector<8x8xf32>
    %128 = tpu.matmul %127, %3, %cst_162 {dimension_numbers = #tpu.dot_dimension_numbers<[1], [0], [0], [1], [0, 0, 1, 1], [], []>} : vector<8x8xbf16>, vector<8x8xbf16>, vector<8x8xf32> -> vector<8x8xf32>
    %129 = arith.addf %125, %128 : vector<8x8xf32>
    %c0_163 = arith.constant 0 : index
    %c0_164 = arith.constant 0 : index
    %c0_165 = arith.constant 0 : index
    %c5 = arith.constant 5 : index
    %c0_166 = arith.constant 0 : index
    %c0_167 = arith.constant 0 : index
    %130 = vector.load %arg1[%c0_163, %c0_164, %c0_165, %c5, %c0_166, %c0_167] : memref<1x1x1x9x9x8xbf16, #tpu.memory_space<vmem>>, vector<1x1x1x1x8x8xbf16>
    %131 = vector.shape_cast %130 : vector<1x1x1x1x8x8xbf16> to vector<8x8xbf16>
    %cst_168 = arith.constant dense<0.000000e+00> : vector<8x8xf32>
    %132 = tpu.matmul %131, %5, %cst_168 {dimension_numbers = #tpu.dot_dimension_numbers<[1], [0], [0], [1], [0, 0, 1, 1], [], []>} : vector<8x8xbf16>, vector<8x8xbf16>, vector<8x8xf32> -> vector<8x8xf32>
    %133 = arith.addf %129, %132 : vector<8x8xf32>
    %c0_169 = arith.constant 0 : index
    %c0_170 = arith.constant 0 : index
    %c0_171 = arith.constant 0 : index
    %c5_172 = arith.constant 5 : index
    %c1_173 = arith.constant 1 : index
    %c0_174 = arith.constant 0 : index
    %134 = vector.load %arg1[%c0_169, %c0_170, %c0_171, %c5_172, %c1_173, %c0_174] : memref<1x1x1x9x9x8xbf16, #tpu.memory_space<vmem>>, vector<1x1x1x1x8x8xbf16>
    %135 = vector.shape_cast %134 : vector<1x1x1x1x8x8xbf16> to vector<8x8xbf16>
    %cst_175 = arith.constant dense<0.000000e+00> : vector<8x8xf32>
    %136 = tpu.matmul %135, %7, %cst_175 {dimension_numbers = #tpu.dot_dimension_numbers<[1], [0], [0], [1], [0, 0, 1, 1], [], []>} : vector<8x8xbf16>, vector<8x8xbf16>, vector<8x8xf32> -> vector<8x8xf32>
    %137 = arith.addf %133, %136 : vector<8x8xf32>
    %138 = vector.broadcast %8 : vector<1x8xf32> to vector<8x8xf32>
    %139 = arith.addf %137, %138 : vector<8x8xf32>
    %cst_176 = arith.constant 0.000000e+00 : f32
    %140 = vector.broadcast %cst_176 : f32 to vector<8x8xf32>
    %141 = arith.cmpf oge, %139, %140 : vector<8x8xf32>
    %cst_177 = arith.constant 1.000000e-01 : f32
    %142 = vector.broadcast %cst_177 : f32 to vector<8x8xf32>
    %143 = arith.mulf %142, %139 : vector<8x8xf32>
    %144 = arith.select %141, %139, %143 : vector<8x8xi1>, vector<8x8xf32>
    %145 = arith.truncf %144 : vector<8x8xf32> to vector<8x8xbf16>
    %c0_178 = arith.constant 0 : index
    %c4_179 = arith.constant 4 : index
    %c0_180 = arith.constant 0 : index
    %c0_181 = arith.constant 0 : index
    %146 = vector.load %arg4[%c0_178, %c4_179, %c0_180, %c0_181] : memref<1x8x8x8xbf16, #tpu.memory_space<vmem>>, vector<1x1x8x8xbf16>
    %147 = vector.shape_cast %146 : vector<1x1x8x8xbf16> to vector<8x8xbf16>
    %148 = vector.shape_cast %145 : vector<8x8xbf16> to vector<1x1x8x8xbf16>
    tpu.vector_store %arg4[%c0_178, %c4_179, %c0_180, %c0_181], %148 {strides = array<i32>} : memref<1x8x8x8xbf16, #tpu.memory_space<vmem>>, vector<1x1x8x8xbf16>,
    %cst_182 = arith.constant 0.000000e+00 : f32
    %149 = vector.broadcast %cst_182 : f32 to vector<8x8xf32>
    %c0_183 = arith.constant 0 : index
    %c0_184 = arith.constant 0 : index
    %c0_185 = arith.constant 0 : index
    %c5_186 = arith.constant 5 : index
    %c0_187 = arith.constant 0 : index
    %c0_188 = arith.constant 0 : index
    %150 = vector.load %arg1[%c0_183, %c0_184, %c0_185, %c5_186, %c0_187, %c0_188] : memref<1x1x1x9x9x8xbf16, #tpu.memory_space<vmem>>, vector<1x1x1x1x8x8xbf16>
    %151 = vector.shape_cast %150 : vector<1x1x1x1x8x8xbf16> to vector<8x8xbf16>
    %cst_189 = arith.constant dense<0.000000e+00> : vector<8x8xf32>
    %152 = tpu.matmul %151, %1, %cst_189 {dimension_numbers = #tpu.dot_dimension_numbers<[1], [0], [0], [1], [0, 0, 1, 1], [], []>} : vector<8x8xbf16>, vector<8x8xbf16>, vector<8x8xf32> -> vector<8x8xf32>
    %153 = arith.addf %149, %152 : vector<8x8xf32>
    %c0_190 = arith.constant 0 : index
    %c0_191 = arith.constant 0 : index
    %c0_192 = arith.constant 0 : index
    %c5_193 = arith.constant 5 : index
    %c1_194 = arith.constant 1 : index
    %c0_195 = arith.constant 0 : index
    %154 = vector.load %arg1[%c0_190, %c0_191, %c0_192, %c5_193, %c1_194, %c0_195] : memref<1x1x1x9x9x8xbf16, #tpu.memory_space<vmem>>, vector<1x1x1x1x8x8xbf16>
    %155 = vector.shape_cast %154 : vector<1x1x1x1x8x8xbf16> to vector<8x8xbf16>
    %cst_196 = arith.constant dense<0.000000e+00> : vector<8x8xf32>
    %156 = tpu.matmul %155, %3, %cst_196 {dimension_numbers = #tpu.dot_dimension_numbers<[1], [0], [0], [1], [0, 0, 1, 1], [], []>} : vector<8x8xbf16>, vector<8x8xbf16>, vector<8x8xf32> -> vector<8x8xf32>
    %157 = arith.addf %153, %156 : vector<8x8xf32>
    %c0_197 = arith.constant 0 : index
    %c0_198 = arith.constant 0 : index
    %c0_199 = arith.constant 0 : index
    %c6 = arith.constant 6 : index
    %c0_200 = arith.constant 0 : index
    %c0_201 = arith.constant 0 : index
    %158 = vector.load %arg1[%c0_197, %c0_198, %c0_199, %c6, %c0_200, %c0_201] : memref<1x1x1x9x9x8xbf16, #tpu.memory_space<vmem>>, vector<1x1x1x1x8x8xbf16>
    %159 = vector.shape_cast %158 : vector<1x1x1x1x8x8xbf16> to vector<8x8xbf16>
    %cst_202 = arith.constant dense<0.000000e+00> : vector<8x8xf32>
    %160 = tpu.matmul %159, %5, %cst_202 {dimension_numbers = #tpu.dot_dimension_numbers<[1], [0], [0], [1], [0, 0, 1, 1], [], []>} : vector<8x8xbf16>, vector<8x8xbf16>, vector<8x8xf32> -> vector<8x8xf32>
    %161 = arith.addf %157, %160 : vector<8x8xf32>
    %c0_203 = arith.constant 0 : index
    %c0_204 = arith.constant 0 : index
    %c0_205 = arith.constant 0 : index
    %c6_206 = arith.constant 6 : index
    %c1_207 = arith.constant 1 : index
    %c0_208 = arith.constant 0 : index
    %162 = vector.load %arg1[%c0_203, %c0_204, %c0_205, %c6_206, %c1_207, %c0_208] : memref<1x1x1x9x9x8xbf16, #tpu.memory_space<vmem>>, vector<1x1x1x1x8x8xbf16>
    %163 = vector.shape_cast %162 : vector<1x1x1x1x8x8xbf16> to vector<8x8xbf16>
    %cst_209 = arith.constant dense<0.000000e+00> : vector<8x8xf32>
    %164 = tpu.matmul %163, %7, %cst_209 {dimension_numbers = #tpu.dot_dimension_numbers<[1], [0], [0], [1], [0, 0, 1, 1], [], []>} : vector<8x8xbf16>, vector<8x8xbf16>, vector<8x8xf32> -> vector<8x8xf32>
    %165 = arith.addf %161, %164 : vector<8x8xf32>
    %166 = vector.broadcast %8 : vector<1x8xf32> to vector<8x8xf32>
    %167 = arith.addf %165, %166 : vector<8x8xf32>
    %cst_210 = arith.constant 0.000000e+00 : f32
    %168 = vector.broadcast %cst_210 : f32 to vector<8x8xf32>
    %169 = arith.cmpf oge, %167, %168 : vector<8x8xf32>
    %cst_211 = arith.constant 1.000000e-01 : f32
    %170 = vector.broadcast %cst_211 : f32 to vector<8x8xf32>
    %171 = arith.mulf %170, %167 : vector<8x8xf32>
    %172 = arith.select %169, %167, %171 : vector<8x8xi1>, vector<8x8xf32>
    %173 = arith.truncf %172 : vector<8x8xf32> to vector<8x8xbf16>
    %c0_212 = arith.constant 0 : index
    %c5_213 = arith.constant 5 : index
    %c0_214 = arith.constant 0 : index
    %c0_215 = arith.constant 0 : index
    %174 = vector.load %arg4[%c0_212, %c5_213, %c0_214, %c0_215] : memref<1x8x8x8xbf16, #tpu.memory_space<vmem>>, vector<1x1x8x8xbf16>
    %175 = vector.shape_cast %174 : vector<1x1x8x8xbf16> to vector<8x8xbf16>
    %176 = vector.shape_cast %173 : vector<8x8xbf16> to vector<1x1x8x8xbf16>
    tpu.vector_store %arg4[%c0_212, %c5_213, %c0_214, %c0_215], %176 {strides = array<i32>} : memref<1x8x8x8xbf16, #tpu.memory_space<vmem>>, vector<1x1x8x8xbf16>,
    %cst_216 = arith.constant 0.000000e+00 : f32
    %177 = vector.broadcast %cst_216 : f32 to vector<8x8xf32>
    %c0_217 = arith.constant 0 : index
    %c0_218 = arith.constant 0 : index
    %c0_219 = arith.constant 0 : index
    %c6_220 = arith.constant 6 : index
    %c0_221 = arith.constant 0 : index
    %c0_222 = arith.constant 0 : index
    %178 = vector.load %arg1[%c0_217, %c0_218, %c0_219, %c6_220, %c0_221, %c0_222] : memref<1x1x1x9x9x8xbf16, #tpu.memory_space<vmem>>, vector<1x1x1x1x8x8xbf16>
    %179 = vector.shape_cast %178 : vector<1x1x1x1x8x8xbf16> to vector<8x8xbf16>
    %cst_223 = arith.constant dense<0.000000e+00> : vector<8x8xf32>
    %180 = tpu.matmul %179, %1, %cst_223 {dimension_numbers = #tpu.dot_dimension_numbers<[1], [0], [0], [1], [0, 0, 1, 1], [], []>} : vector<8x8xbf16>, vector<8x8xbf16>, vector<8x8xf32> -> vector<8x8xf32>
    %181 = arith.addf %177, %180 : vector<8x8xf32>
    %c0_224 = arith.constant 0 : index
    %c0_225 = arith.constant 0 : index
    %c0_226 = arith.constant 0 : index
    %c6_227 = arith.constant 6 : index
    %c1_228 = arith.constant 1 : index
    %c0_229 = arith.constant 0 : index
    %182 = vector.load %arg1[%c0_224, %c0_225, %c0_226, %c6_227, %c1_228, %c0_229] : memref<1x1x1x9x9x8xbf16, #tpu.memory_space<vmem>>, vector<1x1x1x1x8x8xbf16>
    %183 = vector.shape_cast %182 : vector<1x1x1x1x8x8xbf16> to vector<8x8xbf16>
    %cst_230 = arith.constant dense<0.000000e+00> : vector<8x8xf32>
    %184 = tpu.matmul %183, %3, %cst_230 {dimension_numbers = #tpu.dot_dimension_numbers<[1], [0], [0], [1], [0, 0, 1, 1], [], []>} : vector<8x8xbf16>, vector<8x8xbf16>, vector<8x8xf32> -> vector<8x8xf32>
    %185 = arith.addf %181, %184 : vector<8x8xf32>
    %c0_231 = arith.constant 0 : index
    %c0_232 = arith.constant 0 : index
    %c0_233 = arith.constant 0 : index
    %c7 = arith.constant 7 : index
    %c0_234 = arith.constant 0 : index
    %c0_235 = arith.constant 0 : index
    %186 = vector.load %arg1[%c0_231, %c0_232, %c0_233, %c7, %c0_234, %c0_235] : memref<1x1x1x9x9x8xbf16, #tpu.memory_space<vmem>>, vector<1x1x1x1x8x8xbf16>
    %187 = vector.shape_cast %186 : vector<1x1x1x1x8x8xbf16> to vector<8x8xbf16>
    %cst_236 = arith.constant dense<0.000000e+00> : vector<8x8xf32>
    %188 = tpu.matmul %187, %5, %cst_236 {dimension_numbers = #tpu.dot_dimension_numbers<[1], [0], [0], [1], [0, 0, 1, 1], [], []>} : vector<8x8xbf16>, vector<8x8xbf16>, vector<8x8xf32> -> vector<8x8xf32>
    %189 = arith.addf %185, %188 : vector<8x8xf32>
    %c0_237 = arith.constant 0 : index
    %c0_238 = arith.constant 0 : index
    %c0_239 = arith.constant 0 : index
    %c7_240 = arith.constant 7 : index
    %c1_241 = arith.constant 1 : index
    %c0_242 = arith.constant 0 : index
    %190 = vector.load %arg1[%c0_237, %c0_238, %c0_239, %c7_240, %c1_241, %c0_242] : memref<1x1x1x9x9x8xbf16, #tpu.memory_space<vmem>>, vector<1x1x1x1x8x8xbf16>
    %191 = vector.shape_cast %190 : vector<1x1x1x1x8x8xbf16> to vector<8x8xbf16>
    %cst_243 = arith.constant dense<0.000000e+00> : vector<8x8xf32>
    %192 = tpu.matmul %191, %7, %cst_243 {dimension_numbers = #tpu.dot_dimension_numbers<[1], [0], [0], [1], [0, 0, 1, 1], [], []>} : vector<8x8xbf16>, vector<8x8xbf16>, vector<8x8xf32> -> vector<8x8xf32>
    %193 = arith.addf %189, %192 : vector<8x8xf32>
    %194 = vector.broadcast %8 : vector<1x8xf32> to vector<8x8xf32>
    %195 = arith.addf %193, %194 : vector<8x8xf32>
    %cst_244 = arith.constant 0.000000e+00 : f32
    %196 = vector.broadcast %cst_244 : f32 to vector<8x8xf32>
    %197 = arith.cmpf oge, %195, %196 : vector<8x8xf32>
    %cst_245 = arith.constant 1.000000e-01 : f32
    %198 = vector.broadcast %cst_245 : f32 to vector<8x8xf32>
    %199 = arith.mulf %198, %195 : vector<8x8xf32>
    %200 = arith.select %197, %195, %199 : vector<8x8xi1>, vector<8x8xf32>
    %201 = arith.truncf %200 : vector<8x8xf32> to vector<8x8xbf16>
    %c0_246 = arith.constant 0 : index
    %c6_247 = arith.constant 6 : index
    %c0_248 = arith.constant 0 : index
    %c0_249 = arith.constant 0 : index
    %202 = vector.load %arg4[%c0_246, %c6_247, %c0_248, %c0_249] : memref<1x8x8x8xbf16, #tpu.memory_space<vmem>>, vector<1x1x8x8xbf16>
    %203 = vector.shape_cast %202 : vector<1x1x8x8xbf16> to vector<8x8xbf16>
    %204 = vector.shape_cast %201 : vector<8x8xbf16> to vector<1x1x8x8xbf16>
    tpu.vector_store %arg4[%c0_246, %c6_247, %c0_248, %c0_249], %204 {strides = array<i32>} : memref<1x8x8x8xbf16, #tpu.memory_space<vmem>>, vector<1x1x8x8xbf16>,
    %cst_250 = arith.constant 0.000000e+00 : f32
    %205 = vector.broadcast %cst_250 : f32 to vector<8x8xf32>
    %c0_251 = arith.constant 0 : index
    %c0_252 = arith.constant 0 : index
    %c0_253 = arith.constant 0 : index
    %c7_254 = arith.constant 7 : index
    %c0_255 = arith.constant 0 : index
    %c0_256 = arith.constant 0 : index
    %206 = vector.load %arg1[%c0_251, %c0_252, %c0_253, %c7_254, %c0_255, %c0_256] : memref<1x1x1x9x9x8xbf16, #tpu.memory_space<vmem>>, vector<1x1x1x1x8x8xbf16>
    %207 = vector.shape_cast %206 : vector<1x1x1x1x8x8xbf16> to vector<8x8xbf16>
    %cst_257 = arith.constant dense<0.000000e+00> : vector<8x8xf32>
    %208 = tpu.matmul %207, %1, %cst_257 {dimension_numbers = #tpu.dot_dimension_numbers<[1], [0], [0], [1], [0, 0, 1, 1], [], []>} : vector<8x8xbf16>, vector<8x8xbf16>, vector<8x8xf32> -> vector<8x8xf32>
    %209 = arith.addf %205, %208 : vector<8x8xf32>
    %c0_258 = arith.constant 0 : index
    %c0_259 = arith.constant 0 : index
    %c0_260 = arith.constant 0 : index
    %c7_261 = arith.constant 7 : index
    %c1_262 = arith.constant 1 : index
    %c0_263 = arith.constant 0 : index
    %210 = vector.load %arg1[%c0_258, %c0_259, %c0_260, %c7_261, %c1_262, %c0_263] : memref<1x1x1x9x9x8xbf16, #tpu.memory_space<vmem>>, vector<1x1x1x1x8x8xbf16>
    %211 = vector.shape_cast %210 : vector<1x1x1x1x8x8xbf16> to vector<8x8xbf16>
    %cst_264 = arith.constant dense<0.000000e+00> : vector<8x8xf32>
    %212 = tpu.matmul %211, %3, %cst_264 {dimension_numbers = #tpu.dot_dimension_numbers<[1], [0], [0], [1], [0, 0, 1, 1], [], []>} : vector<8x8xbf16>, vector<8x8xbf16>, vector<8x8xf32> -> vector<8x8xf32>
    %213 = arith.addf %209, %212 : vector<8x8xf32>
    %c0_265 = arith.constant 0 : index
    %c0_266 = arith.constant 0 : index
    %c0_267 = arith.constant 0 : index
    %c8 = arith.constant 8 : index
    %c0_268 = arith.constant 0 : index
    %c0_269 = arith.constant 0 : index
    %214 = vector.load %arg1[%c0_265, %c0_266, %c0_267, %c8, %c0_268, %c0_269] : memref<1x1x1x9x9x8xbf16, #tpu.memory_space<vmem>>, vector<1x1x1x1x8x8xbf16>
    %215 = vector.shape_cast %214 : vector<1x1x1x1x8x8xbf16> to vector<8x8xbf16>
    %cst_270 = arith.constant dense<0.000000e+00> : vector<8x8xf32>
    %216 = tpu.matmul %215, %5, %cst_270 {dimension_numbers = #tpu.dot_dimension_numbers<[1], [0], [0], [1], [0, 0, 1, 1], [], []>} : vector<8x8xbf16>, vector<8x8xbf16>, vector<8x8xf32> -> vector<8x8xf32>
    %217 = arith.addf %213, %216 : vector<8x8xf32>
    %c0_271 = arith.constant 0 : index
    %c0_272 = arith.constant 0 : index
    %c0_273 = arith.constant 0 : index
    %c8_274 = arith.constant 8 : index
    %c1_275 = arith.constant 1 : index
    %c0_276 = arith.constant 0 : index
    %218 = vector.load %arg1[%c0_271, %c0_272, %c0_273, %c8_274, %c1_275, %c0_276] : memref<1x1x1x9x9x8xbf16, #tpu.memory_space<vmem>>, vector<1x1x1x1x8x8xbf16>
    %219 = vector.shape_cast %218 : vector<1x1x1x1x8x8xbf16> to vector<8x8xbf16>
    %cst_277 = arith.constant dense<0.000000e+00> : vector<8x8xf32>
    %220 = tpu.matmul %219, %7, %cst_277 {dimension_numbers = #tpu.dot_dimension_numbers<[1], [0], [0], [1], [0, 0, 1, 1], [], []>} : vector<8x8xbf16>, vector<8x8xbf16>, vector<8x8xf32> -> vector<8x8xf32>
    %221 = arith.addf %217, %220 : vector<8x8xf32>
    %222 = vector.broadcast %8 : vector<1x8xf32> to vector<8x8xf32>
    %223 = arith.addf %221, %222 : vector<8x8xf32>
    %cst_278 = arith.constant 0.000000e+00 : f32
    %224 = vector.broadcast %cst_278 : f32 to vector<8x8xf32>
    %225 = arith.cmpf oge, %223, %224 : vector<8x8xf32>
    %cst_279 = arith.constant 1.000000e-01 : f32
    %226 = vector.broadcast %cst_279 : f32 to vector<8x8xf32>
    %227 = arith.mulf %226, %223 : vector<8x8xf32>
    %228 = arith.select %225, %223, %227 : vector<8x8xi1>, vector<8x8xf32>
    %229 = arith.truncf %228 : vector<8x8xf32> to vector<8x8xbf16>
    %c0_280 = arith.constant 0 : index
    %c7_281 = arith.constant 7 : index
    %c0_282 = arith.constant 0 : index
    %c0_283 = arith.constant 0 : index
    %230 = vector.load %arg4[%c0_280, %c7_281, %c0_282, %c0_283] : memref<1x8x8x8xbf16, #tpu.memory_space<vmem>>, vector<1x1x8x8xbf16>
    %231 = vector.shape_cast %230 : vector<1x1x8x8xbf16> to vector<8x8xbf16>
    %232 = vector.shape_cast %229 : vector<8x8xbf16> to vector<1x1x8x8xbf16>
    tpu.vector_store %arg4[%c0_280, %c7_281, %c0_282, %c0_283], %232 {strides = array<i32>} : memref<1x8x8x8xbf16, #tpu.memory_space<vmem>>, vector<1x1x8x8xbf16>,
    return
  }
  func.func @transform_0(%arg0: i32) -> (i32, i32, i32, i32, i32, i32) {
    %c0_i32 = arith.constant 0 : i32
    %c0_i32_0 = arith.constant 0 : i32
    %c0_i32_1 = arith.constant 0 : i32
    %c0_i32_2 = arith.constant 0 : i32
    %c0_i32_3 = arith.constant 0 : i32
    %c0_i32_4 = arith.constant 0 : i32
    return %arg0, %c0_i32, %c0_i32_0, %c0_i32_1, %c0_i32_2, %c0_i32_3 : i32, i32, i32, i32, i32, i32
  }
  func.func @transform_1(%arg0: i32) -> (i32, i32, i32) {
    %c0_i32 = arith.constant 0 : i32
    %c0_i32_0 = arith.constant 0 : i32
    %c0_i32_1 = arith.constant 0 : i32
    %c0_i32_2 = arith.constant 0 : i32
    return %c0_i32, %c0_i32_0, %c0_i32_1 : i32, i32, i32
  }
  func.func @transform_2(%arg0: i32) -> (i32, i32) {
    %c0_i32 = arith.constant 0 : i32
    %c0_i32_0 = arith.constant 0 : i32
    %c0_i32_1 = arith.constant 0 : i32
    return %c0_i32, %c0_i32_0 : i32, i32
  }
  func.func @transform_3(%arg0: i32) -> (i32, i32, i32, i32) {
    %c0_i32 = arith.constant 0 : i32
    %c0_i32_0 = arith.constant 0 : i32
    %c0_i32_1 = arith.constant 0 : i32
    %c0_i32_2 = arith.constant 0 : i32
    return %arg0, %c0_i32, %c0_i32_0, %c0_i32_1 : i32, i32, i32, i32
  }
}

module attributes {stable_mosaic.version = 11 : i64} {
  func.func @_endconv_kernel(%arg0: i32, %arg1: memref<1x256x8xbf16, #tpu.memory_space<vmem>>, %arg2: memref<1x64x8xbf16, #tpu.memory_space<vmem>>, %arg3: memref<256x64xbf16, #tpu.memory_space<vmem>>, %arg4: memref<8x16xbf16, #tpu.memory_space<vmem>>, %arg5: memref<8x16xbf16, #tpu.memory_space<vmem>>, %arg6: memref<1x16xf32, #tpu.memory_space<vmem>>, %arg7: memref<1x256x16xf32, #tpu.memory_space<vmem>>) attributes {dimension_semantics = [#tpu.dimension_semantics<parallel>], iteration_bounds = array<i64: 2>, scalar_prefetch = 0 : i64, scratch_operands = 0 : i64, tpu.core_type = #tpu.core_type<tc>, window_params = [{transform_indices = @transform_0, window_bounds = array<i64: 1, 256, 8>}, {transform_indices = @transform_1, window_bounds = array<i64: 1, 64, 8>}, {pipeline_mode = #tpu.pipeline_mode<synchronous>, transform_indices = @transform_2, window_bounds = array<i64: 256, 64>}, {pipeline_mode = #tpu.pipeline_mode<synchronous>, transform_indices = @transform_3, window_bounds = array<i64: 8, 16>}, {pipeline_mode = #tpu.pipeline_mode<synchronous>, transform_indices = @transform_4, window_bounds = array<i64: 8, 16>}, {pipeline_mode = #tpu.pipeline_mode<synchronous>, transform_indices = @transform_5, window_bounds = array<i64: 1, 16>}, {transform_indices = @transform_6, window_bounds = array<i64: 1, 256, 16>}]} {
    %c0 = arith.constant 0 : index
    %c0_0 = arith.constant 0 : index
    %0 = vector.load %arg3[%c0, %c0_0] : memref<256x64xbf16, #tpu.memory_space<vmem>>, vector<256x64xbf16>
    %c0_1 = arith.constant 0 : index
    %c0_2 = arith.constant 0 : index
    %c0_3 = arith.constant 0 : index
    %1 = vector.load %arg2[%c0_1, %c0_2, %c0_3] : memref<1x64x8xbf16, #tpu.memory_space<vmem>>, vector<1x64x8xbf16>
    %2 = vector.shape_cast %1 : vector<1x64x8xbf16> to vector<64x8xbf16>
    %cst = arith.constant dense<0.000000e+00> : vector<256x8xf32>
    %3 = tpu.matmul %0, %2, %cst {dimension_numbers = #tpu.dot_dimension_numbers<[1], [0], [0], [1], [0, 0, 1, 1], [], []>} : vector<256x64xbf16>, vector<64x8xbf16>, vector<256x8xf32> -> vector<256x8xf32>
    %4 = arith.truncf %3 : vector<256x8xf32> to vector<256x8xbf16>
    %c0_4 = arith.constant 0 : index
    %c0_5 = arith.constant 0 : index
    %c0_6 = arith.constant 0 : index
    %5 = vector.load %arg1[%c0_4, %c0_5, %c0_6] : memref<1x256x8xbf16, #tpu.memory_space<vmem>>, vector<1x256x8xbf16>
    %6 = vector.shape_cast %5 : vector<1x256x8xbf16> to vector<256x8xbf16>
    %c0_7 = arith.constant 0 : index
    %c0_8 = arith.constant 0 : index
    %7 = vector.load %arg4[%c0_7, %c0_8] : memref<8x16xbf16, #tpu.memory_space<vmem>>, vector<8x16xbf16>
    %cst_9 = arith.constant dense<0.000000e+00> : vector<256x16xf32>
    %8 = tpu.matmul %6, %7, %cst_9 {dimension_numbers = #tpu.dot_dimension_numbers<[1], [0], [0], [1], [0, 0, 1, 1], [], []>} : vector<256x8xbf16>, vector<8x16xbf16>, vector<256x16xf32> -> vector<256x16xf32>
    %c0_10 = arith.constant 0 : index
    %c0_11 = arith.constant 0 : index
    %9 = vector.load %arg5[%c0_10, %c0_11] : memref<8x16xbf16, #tpu.memory_space<vmem>>, vector<8x16xbf16>
    %cst_12 = arith.constant dense<0.000000e+00> : vector<256x16xf32>
    %10 = tpu.matmul %4, %9, %cst_12 {dimension_numbers = #tpu.dot_dimension_numbers<[1], [0], [0], [1], [0, 0, 1, 1], [], []>} : vector<256x8xbf16>, vector<8x16xbf16>, vector<256x16xf32> -> vector<256x16xf32>
    %11 = arith.addf %8, %10 : vector<256x16xf32>
    %c0_13 = arith.constant 0 : index
    %c0_14 = arith.constant 0 : index
    %12 = vector.load %arg6[%c0_13, %c0_14] : memref<1x16xf32, #tpu.memory_space<vmem>>, vector<1x16xf32>
    %13 = vector.broadcast %12 : vector<1x16xf32> to vector<256x16xf32>
    %14 = arith.addf %11, %13 : vector<256x16xf32>
    %cst_15 = arith.constant 0.000000e+00 : f32
    %15 = vector.broadcast %cst_15 : f32 to vector<256x16xf32>
    %16 = arith.cmpf oge, %14, %15 : vector<256x16xf32>
    %cst_16 = arith.constant 1.000000e-01 : f32
    %17 = vector.broadcast %cst_16 : f32 to vector<256x16xf32>
    %18 = arith.mulf %17, %14 : vector<256x16xf32>
    %19 = arith.select %16, %14, %18 : vector<256x16xi1>, vector<256x16xf32>
    %c0_17 = arith.constant 0 : index
    %c0_18 = arith.constant 0 : index
    %c0_19 = arith.constant 0 : index
    %20 = vector.load %arg7[%c0_17, %c0_18, %c0_19] : memref<1x256x16xf32, #tpu.memory_space<vmem>>, vector<1x256x16xf32>
    %21 = vector.shape_cast %20 : vector<1x256x16xf32> to vector<256x16xf32>
    %22 = vector.shape_cast %19 : vector<256x16xf32> to vector<1x256x16xf32>
    tpu.vector_store %arg7[%c0_17, %c0_18, %c0_19], %22 {strides = array<i32>} : memref<1x256x16xf32, #tpu.memory_space<vmem>>, vector<1x256x16xf32>,
    return
  }
  func.func @transform_0(%arg0: i32) -> (i32, i32, i32) {
    %c0_i32 = arith.constant 0 : i32
    %c0_i32_0 = arith.constant 0 : i32
    %c0_i32_1 = arith.constant 0 : i32
    return %arg0, %c0_i32, %c0_i32_0 : i32, i32, i32
  }
  func.func @transform_1(%arg0: i32) -> (i32, i32, i32) {
    %c0_i32 = arith.constant 0 : i32
    %c0_i32_0 = arith.constant 0 : i32
    %c0_i32_1 = arith.constant 0 : i32
    return %arg0, %c0_i32, %c0_i32_0 : i32, i32, i32
  }
  func.func @transform_2(%arg0: i32) -> (i32, i32) {
    %c0_i32 = arith.constant 0 : i32
    %c0_i32_0 = arith.constant 0 : i32
    %c0_i32_1 = arith.constant 0 : i32
    return %c0_i32, %c0_i32_0 : i32, i32
  }
  func.func @transform_3(%arg0: i32) -> (i32, i32) {
    %c0_i32 = arith.constant 0 : i32
    %c0_i32_0 = arith.constant 0 : i32
    %c0_i32_1 = arith.constant 0 : i32
    return %c0_i32, %c0_i32_0 : i32, i32
  }
  func.func @transform_4(%arg0: i32) -> (i32, i32) {
    %c0_i32 = arith.constant 0 : i32
    %c0_i32_0 = arith.constant 0 : i32
    %c0_i32_1 = arith.constant 0 : i32
    return %c0_i32, %c0_i32_0 : i32, i32
  }
  func.func @transform_5(%arg0: i32) -> (i32, i32) {
    %c0_i32 = arith.constant 0 : i32
    %c0_i32_0 = arith.constant 0 : i32
    %c0_i32_1 = arith.constant 0 : i32
    return %c0_i32, %c0_i32_0 : i32, i32
  }
  func.func @transform_6(%arg0: i32) -> (i32, i32, i32) {
    %c0_i32 = arith.constant 0 : i32
    %c0_i32_0 = arith.constant 0 : i32
    %c0_i32_1 = arith.constant 0 : i32
    return %arg0, %c0_i32, %c0_i32_0 : i32, i32, i32
  }
}

</mosaic_0001>

<bundles_post_ra>
// kernel: context_detail_forward.4
= control target key start
LH: loop header
LB: loop body
LE: loop exit
PB: predicated region body
PF: predicated region fallthrough
CT: control target
= control target key end

     0   :  { %s1077_s15 = smov 0   ;;  %s1279_s0 = inlined_call_operand.vmem [shape: bf16[512,8], index: 0, kind: input, shape index: {}]   ;;  %s1280_s1 = inlined_call_operand.vmem [shape: bf16[8,12], index: 1, kind: input, shape index: {}]   ;;  %s1281_s2 = inlined_call_operand.vmem [shape: f32[1,12], index: 2, kind: input, shape index: {}]   ;;  %s1282_s3 = inlined_call_operand.vmem [shape: f32[1,12], index: 3, kind: input, shape index: {}]   ;;  %s1283_s4 = inlined_call_operand.vmem [shape: bf16[512,12], index: 4, kind: output, shape index: {}]  }
   0x1 LB: > { %s856_s16 = sadd.s32 4294967295, %s1050_s15   ;;  %p860_p0 = scmp.ge.s32.totalorder %s1050_s15, 1  ;;  %s1050_s15 = sphi %s1077_s15, %s14_s15  }
   0x2   : > { %p163_p1 = scmp.lt.s32.totalorder %s1050_s15, 3 }
   0x4   : > { %p164_p2 = pnand %p860_p0, %p163_p1 }
   0x5   : > { %v234_v0 = vld [vmem:[%s1280_s1] sm:$0xf] (!%p164_p2)  ;;  %vm371_vm0 = vcmask (!%p164_p2), 1043456   ;;  %s861_s19 = sshll.u32 (!%p164_p2), %s856_s16, 5  ;;  %vm322_vm1 = vcmask (!%p164_p2), 64512   ;;  %vm767_vm2 = vcmask (!%p164_p2), 93184  }
   0x6   : > { %167 = sbr.rel (%p164_p2) target bundleno = 276 (0x114), region = 36  ;;  %1018 = vmatprep.subr.msk.bf16.mxu0 (!%p164_p2), %vm371_vm0, %v234_v0  ;;  %1019 = vmatprep.subr.msk.bf16.mxu1 (!%p164_p2), %vm371_vm0, %v234_v0  ;;  %v373_v1 = vsel (!%p164_p2), %vm371_vm0, %v234_v0, 0  ;;  %p190_p3 = scmp.lt.s32.totalorder (!%p164_p2), %s861_s19, 63  ;;  %v1133_v18 = vld [vmem:[%s1281_s2] ss:$0 sm:$0xff] (!%p164_p2) }
   0x7   : > { %983 = vmatpush3.bf16.msra.mxu0 (!%p164_p2), %v373_v1  ;;  %1017 = vmatpush3.bf16.msra.mxu1 (!%p164_p2), %v373_v1  ;;  %v1138_v20 = vld [vmem:[%s1282_s3] ss:$0 sm:$0xff] (!%p164_p2) }
   0xd   : > { %s1285_s19 = smov (!%p190_p3, %s861_s19), 63 }
   0xe   : > { %s862_s20 = sshll.u32 %s1285_s19, 2 }
   0xf   : > { %s1096_s23 = scalar_lea.vmem %s1279_s0, %s862_s20  ;;  %s1153_s30 = scalar_lea.vmem %s1283_s4, %s862_s20 }
  0x10   : > { %v1028_v2 = vld [vmem:[%s1096_s23] sm:$0xff]   ;;  %v1030_v4 = vld [vmem:[%s1096_s23 + $0x8] sm:$0xff]   ;;  %v1032_v6 = vld [vmem:[%s1096_s23 + $0x10] sm:$0xff]  }
  0x11   : > { %v1029_v3 = vld [vmem:[%s1096_s23 + $0x40] sm:$0xff]   ;;  %984 = vmatprep.mubr.msk.bf16.mxu0 %vm322_vm1, %v1028_v2  ;;  %v1031_v5 = vld [vmem:[%s1096_s23 + $0x48] sm:$0xff]   ;;  %v1033_v7 = vld [vmem:[%s1096_s23 + $0x50] sm:$0xff]  }
  0x12   : > { %1000 = vmatprep.mubr.msk.bf16.mxu1 %vm322_vm1, %v1029_v3  ;;  %985 = vmatmul.mubr.msk.bf16.vlgmr.msra.gmra.mrb[0].mxu0 %vm322_vm1, %v1030_v4  ;;  %v1034_v8 = vld [vmem:[%s1096_s23 + $0x18] sm:$0xff]   ;;  %v1036_v10 = vld [vmem:[%s1096_s23 + $0x20] sm:$0xff]   ;;  %v1038_v12 = vld [vmem:[%s1096_s23 + $0x28] sm:$0xff]  }
  0x13   : > { %1001 = vmatmul.mubr.msk.bf16.vlgmr.msra.gmra.mrb[0].mxu1 %vm322_vm1, %v1031_v5  ;;  %988 = vmatprep.mubr.msk.bf16.mxu0 %vm322_vm1, %v1032_v6  ;;  %v1035_v9 = vld [vmem:[%s1096_s23 + $0x58] sm:$0xff]   ;;  %v1037_v11 = vld [vmem:[%s1096_s23 + $0x60] sm:$0xff]   ;;  %v1039_v13 = vld [vmem:[%s1096_s23 + $0x68] sm:$0xff]  }
  0x14   : > { %1004 = vmatprep.mubr.msk.bf16.mxu1 %vm322_vm1, %v1033_v7  ;;  %v1040_v14 = vld [vmem:[%s1096_s23 + $0x30] sm:$0xff]   ;;  %v1042_v16 = vld [vmem:[%s1096_s23 + $0x38] sm:$0xff]  }
  0x15   : > { %v1041_v15 = vld [vmem:[%s1096_s23 + $0x70] sm:$0xff]   ;;  %v1043_v17 = vld [vmem:[%s1096_s23 + $0x78] sm:$0xff]  }
  0x1a   : > { %989 = vmatmul.mubr.msk.bf16.gmra.mrb[4].mxu0 %vm322_vm1, %v1034_v8 }
  0x1b   : > { %1005 = vmatmul.mubr.msk.bf16.gmra.mrb[4].mxu1 %vm322_vm1, %v1035_v9  ;;  %992 = vmatprep.mubr.msk.bf16.mxu0 %vm322_vm1, %v1036_v10 }
  0x1c   : > { %1008 = vmatprep.mubr.msk.bf16.mxu1 %vm322_vm1, %v1037_v11 }
  0x22   : > { %993 = vmatmul.mubr.msk.bf16.gmra.mrb[8].mxu0 %vm322_vm1, %v1038_v12 }
  0x23   : > { %1009 = vmatmul.mubr.msk.bf16.gmra.mrb[8].mxu1 %vm322_vm1, %v1039_v13  ;;  %996 = vmatprep.mubr.msk.bf16.mxu0 %vm322_vm1, %v1040_v14 }
  0x24   : > { %1012 = vmatprep.mubr.msk.bf16.mxu1 %vm322_vm1, %v1041_v15 }
  0x2a   : > { %997 = vmatmul.mubr.msk.bf16.gmra.mrb[12].mxu0 %vm322_vm1, %v1042_v16 }
  0x2b   : > { %1013 = vmatmul.mubr.msk.bf16.gmra.mrb[12].mxu1 %vm322_vm1, %v1043_v17 }
  0xe5   : > { %v986_v19 = vpop.f32.mrb[0].mxu0 }
  0xe6   : > { %v418_v21 = vadd.f32 %v986_v19, %v1133_v18  ;;  %v1002_v22 = vpop.f32.mrb[0].mxu1  ;;  %v409_v23 = vpop.f32.mrb[1].mxu0 }
  0xe7   : > { %v482_v24 = vadd.f32 %v1002_v22, %v1133_v18  ;;  %v410_v25 = vadd.f32 %v1133_v18, %v409_v23  ;;  %v473_v26 = vpop.f32.mrb[1].mxu1  ;;  %v987_v27 = vpop.f32.mrb[2].mxu0 }
  0xe8   : > { %vm538_vm3 = vcmp.ge.f32.partialorder %v418_v21, 0.0  ;;  %v577_v28 = vmul.f32 %v1138_v20, %v418_v21  ;;  %v474_v29 = vadd.f32 %v1133_v18, %v473_v26  ;;  %v421_v30 = vadd.f32 %v987_v27, %v1133_v18  ;;  %v1003_v31 = vpop.f32.mrb[2].mxu1  ;;  %v412_v32 = vpop.f32.mrb[3].mxu0 }
  0xe9   : > { %vm554_vm4 = vcmp.ge.f32.partialorder %v482_v24, 0.0  ;;  %v593_v33 = vmul.f32 %v1138_v20, %v482_v24  ;;  %vm536_vm5 = vcmp.ge.f32.partialorder %v410_v25, 0.0  ;;  %v575_v34 = vmul.f32 %v1138_v20, %v410_v25  ;;  %v476_v35 = vpop.f32.mrb[3].mxu1 }
  0xea   : > { %v609_v36 = vsel %vm538_vm3, %v418_v21, %v577_v28  ;;  %vm552_vm6 = vcmp.ge.f32.partialorder %v474_v29, 0.0  ;;  %v591_v37 = vmul.f32 %v1138_v20, %v474_v29  ;;  %vm539_vm7 = vcmp.ge.f32.partialorder %v421_v30, 0.0 }
  0xeb   : > { %v935_v38 = vpack.c.bf16 %v609_v36, %v609_v36  ;;  %v625_v39 = vsel %vm554_vm4, %v482_v24, %v593_v33  ;;  %v607_v40 = vsel %vm536_vm5, %v410_v25, %v575_v34  ;;  %v578_v41 = vmul.f32 %v1138_v20, %v421_v30 }
  0xec   : > { %v951_v42 = vpack.c.bf16 %v625_v39, %v625_v39  ;;  %v933_v43 = vpack.c.bf16 %v607_v40, %v607_v40  ;;  %v623_v44 = vsel %vm552_vm6, %v474_v29, %v591_v37  ;;  %v485_v45 = vadd.f32 %v1003_v31, %v1133_v18 }
  0xed   : > { %770 = vst.msk [vmem:[%s1153_s30 + $0x8] sm:$0xf] %vm767_vm2, %v935_v38  ;;  %v949_v46 = vpack.c.bf16 %v623_v44, %v623_v44  ;;  %v610_v47 = vsel %vm539_vm7, %v421_v30, %v578_v41  ;;  %v413_v48 = vadd.f32 %v1133_v18, %v412_v32  ;;  %v477_v49 = vadd.f32 %v1133_v18, %v476_v35  ;;  %v990_v50 = vpop.f32.mrb[4].mxu0 }
  0xee   : > { %786 = vst.msk [vmem:[%s1153_s30 + $0x48] sm:$0xf] %vm767_vm2, %v951_v42  ;;  %768 = vst.msk [vmem:[%s1153_s30] sm:$0xf] %vm767_vm2, %v933_v43  ;;  %v936_v51 = vpack.c.bf16 %v610_v47, %v610_v47  ;;  %vm555_vm8 = vcmp.ge.f32.partialorder %v485_v45, 0.0  ;;  %v594_v52 = vmul.f32 %v1138_v20, %v485_v45  ;;  %v434_v53 = vadd.f32 %v990_v50, %v1133_v18  ;;  %v1006_v54 = vpop.f32.mrb[4].mxu1 }
  0xef   : > { %v425_v55 = vpop.f32.mrb[5].mxu0  ;;  %784 = vst.msk [vmem:[%s1153_s30 + $0x40] sm:$0xf] %vm767_vm2, %v949_v46  ;;  %vm537_vm9 = vcmp.ge.f32.partialorder %v413_v48, 0.0  ;;  %v576_v56 = vmul.f32 %v1138_v20, %v413_v48  ;;  %vm553_vm10 = vcmp.ge.f32.partialorder %v477_v49, 0.0  ;;  %v592_v57 = vmul.f32 %v1138_v20, %v477_v49  ;;  %v489_v58 = vpop.f32.mrb[5].mxu1 }
  0xf0   : > { %v991_v59 = vpop.f32.mrb[6].mxu0  ;;  %771 = vst.msk [vmem:[%s1153_s30 + $0xc] sm:$0xf] %vm767_vm2, %v936_v51  ;;  %v626_v60 = vsel %vm555_vm8, %v485_v45, %v594_v52  ;;  %vm542_vm11 = vcmp.ge.f32.partialorder %v434_v53, 0.0  ;;  %v581_v61 = vmul.f32 %v1138_v20, %v434_v53  ;;  %v498_v62 = vadd.f32 %v1006_v54, %v1133_v18  ;;  %v1007_v63 = vpop.f32.mrb[6].mxu1 }
  0xf1   : > { %v428_v0 = vpop.f32.mrb[7].mxu0  ;;  %v952_v1 = vpack.c.bf16 %v626_v60, %v626_v60  ;;  %v608_v2 = vsel %vm537_vm9, %v413_v48, %v576_v56  ;;  %v624_v3 = vsel %vm553_vm10, %v477_v49, %v592_v57  ;;  %v426_v4 = vadd.f32 %v1133_v18, %v425_v55  ;;  %v492_v5 = vpop.f32.mrb[7].mxu1 }
  0xf2   : > { %v934_v6 = vpack.c.bf16 %v608_v2, %v608_v2  ;;  %v950_v7 = vpack.c.bf16 %v624_v3, %v624_v3  ;;  %v613_v8 = vsel %vm542_vm11, %v434_v53, %v581_v61  ;;  %vm558_vm12 = vcmp.ge.f32.partialorder %v498_v62, 0.0 }
  0xf3   : > { %787 = vst.msk [vmem:[%s1153_s30 + $0x4c] sm:$0xf] %vm767_vm2, %v952_v1  ;;  %v939_v9 = vpack.c.bf16 %v613_v8, %v613_v8  ;;  %v597_v10 = vmul.f32 %v1138_v20, %v498_v62  ;;  %vm540_vm13 = vcmp.ge.f32.partialorder %v426_v4, 0.0  ;;  %v579_v11 = vmul.f32 %v1138_v20, %v426_v4 }
  0xf4   : > { %769 = vst.msk [vmem:[%s1153_s30 + $0x4] sm:$0xf] %vm767_vm2, %v934_v6  ;;  %785 = vst.msk [vmem:[%s1153_s30 + $0x44] sm:$0xf] %vm767_vm2, %v950_v7  ;;  %v490_v12 = vadd.f32 %v1133_v18, %v489_v58  ;;  %v437_v13 = vadd.f32 %v991_v59, %v1133_v18  ;;  %v501_v14 = vadd.f32 %v1007_v63, %v1133_v18 }
  0xf5   : > { %v429_v15 = vadd.f32 %v1133_v18, %v428_v0  ;;  %774 = vst.msk [vmem:[%s1153_s30 + $0x18] sm:$0xf] %vm767_vm2, %v939_v9  ;;  %v629_v16 = vsel %vm558_vm12, %v498_v62, %v597_v10  ;;  %v611_v17 = vsel %vm540_vm13, %v426_v4, %v579_v11  ;;  %v493_v19 = vadd.f32 %v1133_v18, %v492_v5  ;;  %v994_v21 = vpop.f32.mrb[8].mxu0 }
  0xf6   : > { %v955_v22 = vpack.c.bf16 %v629_v16, %v629_v16  ;;  %v937_v23 = vpack.c.bf16 %v611_v17, %v611_v17  ;;  %vm556_vm14 = vcmp.ge.f32.partialorder %v490_v12, 0.0  ;;  %v595_v24 = vmul.f32 %v1138_v20, %v490_v12  ;;  %v1010_v25 = vpop.f32.mrb[8].mxu1  ;;  %v441_v26 = vpop.f32.mrb[9].mxu0 }
  0xf7   : > { %vm543_vm15 = vcmp.ge.f32.partialorder %v437_v13, 0.0  ;;  %v582_v27 = vmul.f32 %v1138_v20, %v437_v13  ;;  %vm559_vm0 = vcmp.ge.f32.partialorder %v501_v14, 0.0  ;;  %v598_v28 = vmul.f32 %v1138_v20, %v501_v14  ;;  %v505_v29 = vpop.f32.mrb[9].mxu1  ;;  %v995_v30 = vpop.f32.mrb[10].mxu0 }
  0xf8   : > { %790 = vst.msk [vmem:[%s1153_s30 + $0x58] sm:$0xf] %vm767_vm2, %v955_v22  ;;  %772 = vst.msk [vmem:[%s1153_s30 + $0x10] sm:$0xf] %vm767_vm2, %v937_v23  ;;  %v627_v31 = vsel %vm556_vm14, %v490_v12, %v595_v24  ;;  %vm541_vm1 = vcmp.ge.f32.partialorder %v429_v15, 0.0  ;;  %v580_v32 = vmul.f32 %v1138_v20, %v429_v15  ;;  %vm557_vm3 = vcmp.ge.f32.partialorder %v493_v19, 0.0 }
  0xf9   : > { %v1011_v33 = vpop.f32.mrb[10].mxu1  ;;  %v444_v34 = vpop.f32.mrb[11].mxu0  ;;  %v953_v35 = vpack.c.bf16 %v627_v31, %v627_v31  ;;  %v614_v36 = vsel %vm543_vm15, %v437_v13, %v582_v27  ;;  %v630_v37 = vsel %vm559_vm0, %v501_v14, %v598_v28  ;;  %v596_v38 = vmul.f32 %v1138_v20, %v493_v19 }
  0xfa   : > { %v508_v39 = vpop.f32.mrb[11].mxu1  ;;  %v940_v40 = vpack.c.bf16 %v614_v36, %v614_v36  ;;  %v956_v41 = vpack.c.bf16 %v630_v37, %v630_v37  ;;  %v612_v42 = vsel %vm541_vm1, %v429_v15, %v580_v32  ;;  %v450_v43 = vadd.f32 %v994_v21, %v1133_v18 }
  0xfb   : > { %788 = vst.msk [vmem:[%s1153_s30 + $0x50] sm:$0xf] %vm767_vm2, %v953_v35  ;;  %v938_v44 = vpack.c.bf16 %v612_v42, %v612_v42  ;;  %v628_v45 = vsel %vm557_vm3, %v493_v19, %v596_v38  ;;  %v514_v46 = vadd.f32 %v1010_v25, %v1133_v18  ;;  %v442_v47 = vadd.f32 %v1133_v18, %v441_v26 }
  0xfc   : > { %775 = vst.msk [vmem:[%s1153_s30 + $0x1c] sm:$0xf] %vm767_vm2, %v940_v40  ;;  %791 = vst.msk [vmem:[%s1153_s30 + $0x5c] sm:$0xf] %vm767_vm2, %v956_v41  ;;  %v954_v48 = vpack.c.bf16 %v628_v45, %v628_v45  ;;  %vm546_vm4 = vcmp.ge.f32.partialorder %v450_v43, 0.0  ;;  %v585_v49 = vmul.f32 %v1138_v20, %v450_v43  ;;  %v506_v50 = vadd.f32 %v1133_v18, %v505_v29 }
  0xfd   : > { %773 = vst.msk [vmem:[%s1153_s30 + $0x14] sm:$0xf] %vm767_vm2, %v938_v44  ;;  %vm562_vm5 = vcmp.ge.f32.partialorder %v514_v46, 0.0  ;;  %v601_v51 = vmul.f32 %v1138_v20, %v514_v46  ;;  %vm544_vm6 = vcmp.ge.f32.partialorder %v442_v47, 0.0  ;;  %v583_v52 = vmul.f32 %v1138_v20, %v442_v47  ;;  %v998_v53 = vpop.f32.mrb[12].mxu0 }
  0xfe   : > { %789 = vst.msk [vmem:[%s1153_s30 + $0x54] sm:$0xf] %vm767_vm2, %v954_v48  ;;  %v617_v54 = vsel %vm546_vm4, %v450_v43, %v585_v49  ;;  %vm560_vm7 = vcmp.ge.f32.partialorder %v506_v50, 0.0  ;;  %v599_v55 = vmul.f32 %v1138_v20, %v506_v50  ;;  %v453_v56 = vadd.f32 %v995_v30, %v1133_v18  ;;  %v1014_v57 = vpop.f32.mrb[12].mxu1  ;;  %v457_v58 = vpop.f32.mrb[13].mxu0 }
  0xff   : > { %v943_v59 = vpack.c.bf16 %v617_v54, %v617_v54  ;;  %v633_v60 = vsel %vm562_vm5, %v514_v46, %v601_v51  ;;  %v615_v61 = vsel %vm544_vm6, %v442_v47, %v583_v52  ;;  %v517_v62 = vadd.f32 %v1011_v33, %v1133_v18  ;;  %v521_v63 = vpop.f32.mrb[13].mxu1  ;;  %v999_v0 = vpop.f32.mrb[14].mxu0 }
 0x100   : > { %v959_v1 = vpack.c.bf16 %v633_v60, %v633_v60  ;;  %v941_v2 = vpack.c.bf16 %v615_v61, %v615_v61  ;;  %v631_v3 = vsel %vm560_vm7, %v506_v50, %v599_v55  ;;  %vm547_vm8 = vcmp.ge.f32.partialorder %v453_v56, 0.0  ;;  %v1015_v4 = vpop.f32.mrb[14].mxu1  ;;  %v460_v5 = vpop.f32.mrb[15].mxu0 }
 0x101   : > { %778 = vst.msk [vmem:[%s1153_s30 + $0x28] sm:$0xf] %vm767_vm2, %v943_v59  ;;  %v957_v6 = vpack.c.bf16 %v631_v3, %v631_v3  ;;  %v586_v7 = vmul.f32 %v1138_v20, %v453_v56  ;;  %vm563_vm9 = vcmp.ge.f32.partialorder %v517_v62, 0.0  ;;  %v602_v8 = vmul.f32 %v1138_v20, %v517_v62  ;;  %v524_v9 = vpop.f32.mrb[15].mxu1 }
 0x102   : > { %794 = vst.msk [vmem:[%s1153_s30 + $0x68] sm:$0xf] %vm767_vm2, %v959_v1  ;;  %776 = vst.msk [vmem:[%s1153_s30 + $0x20] sm:$0xf] %vm767_vm2, %v941_v2  ;;  %v445_v10 = vadd.f32 %v1133_v18, %v444_v34  ;;  %v509_v11 = vadd.f32 %v1133_v18, %v508_v39  ;;  %v466_v12 = vadd.f32 %v998_v53, %v1133_v18 }
 0x103   : > { %v530_v13 = vadd.f32 %v1014_v57, %v1133_v18  ;;  %792 = vst.msk [vmem:[%s1153_s30 + $0x60] sm:$0xf] %vm767_vm2, %v957_v6  ;;  %v618_v14 = vsel %vm547_vm8, %v453_v56, %v586_v7  ;;  %v634_v15 = vsel %vm563_vm9, %v517_v62, %v602_v8  ;;  %v458_v16 = vadd.f32 %v1133_v18, %v457_v58 }
 0x104   : > { %v522_v17 = vadd.f32 %v1133_v18, %v521_v63  ;;  %v944_v19 = vpack.c.bf16 %v618_v14, %v618_v14  ;;  %v960_v21 = vpack.c.bf16 %v634_v15, %v634_v15  ;;  %vm545_vm10 = vcmp.ge.f32.partialorder %v445_v10, 0.0 }
 0x105   : > { %v584_v22 = vmul.f32 %v1138_v20, %v445_v10  ;;  %vm561_vm11 = vcmp.ge.f32.partialorder %v509_v11, 0.0  ;;  %v600_v23 = vmul.f32 %v1138_v20, %v509_v11  ;;  %vm550_vm12 = vcmp.ge.f32.partialorder %v466_v12, 0.0 }
 0x106   : > { %v589_v24 = vmul.f32 %v1138_v20, %v466_v12  ;;  %779 = vst.msk [vmem:[%s1153_s30 + $0x2c] sm:$0xf] %vm767_vm2, %v944_v19  ;;  %795 = vst.msk [vmem:[%s1153_s30 + $0x6c] sm:$0xf] %vm767_vm2, %v960_v21  ;;  %vm566_vm13 = vcmp.ge.f32.partialorder %v530_v13, 0.0  ;;  %v605_v26 = vmul.f32 %v1138_v20, %v530_v13  ;;  %vm548_vm14 = vcmp.ge.f32.partialorder %v458_v16, 0.0 }
 0x107   : > { %v616_v25 = vsel %vm545_vm10, %v445_v10, %v584_v22  ;;  %v632_v28 = vsel %vm561_vm11, %v509_v11, %v600_v23  ;;  %v587_v30 = vmul.f32 %v1138_v20, %v458_v16  ;;  %vm564_vm15 = vcmp.ge.f32.partialorder %v522_v17, 0.0 }
 0x108   : > { %v942_v27 = vpack.c.bf16 %v616_v25, %v616_v25  ;;  %v621_v29 = vsel %vm550_vm12, %v466_v12, %v589_v24  ;;  %v958_v31 = vpack.c.bf16 %v632_v28, %v632_v28  ;;  %v637_v33 = vsel %vm566_vm13, %v530_v13, %v605_v26 }
 0x109   : > { %v947_v32 = vpack.c.bf16 %v621_v29, %v621_v29  ;;  %v963_v34 = vpack.c.bf16 %v637_v33, %v637_v33  ;;  %v619_v35 = vsel %vm548_vm14, %v458_v16, %v587_v30  ;;  %v603_v36 = vmul.f32 %v1138_v20, %v522_v17 }
 0x10a   : > { %777 = vst.msk [vmem:[%s1153_s30 + $0x24] sm:$0xf] %vm767_vm2, %v942_v27  ;;  %v469_v37 = vadd.f32 %v999_v0, %v1133_v18  ;;  %793 = vst.msk [vmem:[%s1153_s30 + $0x64] sm:$0xf] %vm767_vm2, %v958_v31  ;;  %v945_v38 = vpack.c.bf16 %v619_v35, %v619_v35  ;;  %v533_v39 = vadd.f32 %v1015_v4, %v1133_v18 }
 0x10b   : > { %782 = vst.msk [vmem:[%s1153_s30 + $0x38] sm:$0xf] %vm767_vm2, %v947_v32  ;;  %v461_v40 = vadd.f32 %v1133_v18, %v460_v5  ;;  %v525_v41 = vadd.f32 %v1133_v18, %v524_v9  ;;  %798 = vst.msk [vmem:[%s1153_s30 + $0x78] sm:$0xf] %vm767_vm2, %v963_v34  ;;  %v635_v42 = vsel %vm564_vm15, %v522_v17, %v603_v36 }
 0x10c   : > { %vm551_vm0 = vcmp.ge.f32.partialorder %v469_v37, 0.0  ;;  %v590_v43 = vmul.f32 %v1138_v20, %v469_v37  ;;  %780 = vst.msk [vmem:[%s1153_s30 + $0x30] sm:$0xf] %vm767_vm2, %v945_v38  ;;  %v961_v44 = vpack.c.bf16 %v635_v42, %v635_v42  ;;  %vm567_vm1 = vcmp.ge.f32.partialorder %v533_v39, 0.0 }
 0x10d   : > { %v606_v45 = vmul.f32 %v1138_v20, %v533_v39  ;;  %vm549_vm3 = vcmp.ge.f32.partialorder %v461_v40, 0.0  ;;  %v588_v18 = vmul.f32 %v1138_v20, %v461_v40  ;;  %vm565_vm4 = vcmp.ge.f32.partialorder %v525_v41, 0.0 }
 0x10e   : > { %v622_v46 = vsel %vm551_vm0, %v469_v37, %v590_v43  ;;  %v604_v47 = vmul.f32 %v1138_v20, %v525_v41  ;;  %796 = vst.msk [vmem:[%s1153_s30 + $0x70] sm:$0xf] %vm767_vm2, %v961_v44 }
 0x10f   : > { %v948_v48 = vpack.c.bf16 %v622_v46, %v622_v46  ;;  %v638_v49 = vsel %vm567_vm1, %v533_v39, %v606_v45  ;;  %v620_v51 = vsel %vm549_vm3, %v461_v40, %v588_v18 }
 0x110   : > { %v964_v50 = vpack.c.bf16 %v638_v49, %v638_v49  ;;  %v636_v52 = vsel %vm565_vm4, %v525_v41, %v604_v47  ;;  %v946_v53 = vpack.c.bf16 %v620_v51, %v620_v51 }
 0x111   : > { %783 = vst.msk [vmem:[%s1153_s30 + $0x3c] sm:$0xf] %vm767_vm2, %v948_v48  ;;  %v962_v54 = vpack.c.bf16 %v636_v52, %v636_v52 }
 0x112   : > { %799 = vst.msk [vmem:[%s1153_s30 + $0x7c] sm:$0xf] %vm767_vm2, %v964_v50  ;;  %781 = vst.msk [vmem:[%s1153_s30 + $0x34] sm:$0xf] %vm767_vm2, %v946_v53 }
 0x113   : > { %797 = vst.msk [vmem:[%s1153_s30 + $0x74] sm:$0xf] %vm767_vm2, %v962_v54 }
 0x114 PF: > { %s14_s15 = sadd.s32 1, %s1050_s15  }
 0x115   : > { %p11_p4 = scmp.ge.s32.totalorder %s14_s15, 4  }
 0x117   :  { %13 = sbr.rel (!%p11_p4) target bundleno = 1 (0x1), region = 66 }

// kernel: context_detail_forward.7
= control target key start
LH: loop header
LB: loop body
LE: loop exit
PB: predicated region body
PF: predicated region fallthrough
CT: control target
= control target key end

     0   :  { %s1805_s21 = smov 0   ;;  %s2065_s0 = inlined_call_operand.vmem [shape: bf16[2,256,8], index: 0, kind: input, shape index: {}]   ;;  %s2066_s1 = inlined_call_operand.vmem [shape: bf16[2,64,8], index: 1, kind: input, shape index: {}]   ;;  %s2067_s2 = inlined_call_operand.vmem [shape: bf16[256,64], index: 2, kind: input, shape index: {}]   ;;  %s2068_s3 = inlined_call_operand.vmem [shape: bf16[8,16], index: 3, kind: input, shape index: {}]   ;;  %s2069_s4 = inlined_call_operand.vmem [shape: bf16[8,16], index: 4, kind: input, shape index: {}]   ;;  %s2070_s5 = inlined_call_operand.vmem [shape: f32[1,16], index: 5, kind: input, shape index: {}]   ;;  %s2071_s6 = inlined_call_operand.vmem [shape: f32[2,256,16], index: 6, kind: output, shape index: {}]  }
   0x1 LB: > { %s1418_s22 = sadd.s32 4294967295, %s1768_s21   ;;  %p1422_p0 = scmp.ge.s32.totalorder %s1768_s21, 1  ;;  %s1768_s21 = sphi %s1805_s21, %s16_s21  }
   0x2   : > { %p222_p1 = scmp.lt.s32.totalorder %s1768_s21, 3 }
   0x4   : > { %p223_p2 = pnand %p1422_p0, %p222_p1 }
   0x5   : > { %p257_p3 = scmp.lt.s32.totalorder (!%p223_p2), %s1418_s22, 1  ;;  %v1730_v0 = vld [vmem:[%s2067_s2] sm:$0xff] (!%p223_p2)   ;;  %vm417_vm0 = vcmask (!%p223_p2), 523264   ;;  %v1731_v5 = vld [vmem:[%s2067_s2 + $0x8] sm:$0xff] (!%p223_p2)   ;;  %v1732_v6 = vld [vmem:[%s2067_s2 + $0x10] sm:$0xff] (!%p223_p2)   ;;  %vm726_vm1 = vcmask (!%p223_p2), 1043456  }
   0x6   : > { %226 = sbr.rel (%p223_p2) target bundleno = 592 (0x250), region = 44  ;;  %1581 = vmatprep.mubr.msk.bf16.mxu0 (!%p223_p2), %vm417_vm0, %v1730_v0  ;;  %v1733_v7 = vld [vmem:[%s2067_s2 + $0x18] sm:$0xff] (!%p223_p2)   ;;  %v1734_v8 = vld [vmem:[%s2067_s2 + $0x20] sm:$0xff] (!%p223_p2)   ;;  %v1735_v9 = vld [vmem:[%s2067_s2 + $0x28] sm:$0xff] (!%p223_p2)   ;;  %vm677_vm2 = vcmask (!%p223_p2), 64512   ;;  %vm1318_vm4 = vcmask (!%p223_p2), 130048  }
   0x7   : > { %v1736_v10 = vld [vmem:[%s2067_s2 + $0x30] sm:$0xff] (!%p223_p2)   ;;  %v1737_v11 = vld [vmem:[%s2067_s2 + $0x38] sm:$0xff] (!%p223_p2)   ;;  %v1738_v12 = vld [vmem:[%s2067_s2 + $0x40] sm:$0xff] (!%p223_p2)  }
   0x8   : > { %v1739_v13 = vld [vmem:[%s2067_s2 + $0x48] sm:$0xff] (!%p223_p2)   ;;  %v1740_v14 = vld [vmem:[%s2067_s2 + $0x50] sm:$0xff] (!%p223_p2)   ;;  %v1741_v15 = vld [vmem:[%s2067_s2 + $0x58] sm:$0xff] (!%p223_p2)  }
   0x9   : > { %v1742_v16 = vld [vmem:[%s2067_s2 + $0x60] sm:$0xff] (!%p223_p2)   ;;  %v1743_v17 = vld [vmem:[%s2067_s2 + $0x68] sm:$0xff] (!%p223_p2)   ;;  %v1744_v18 = vld [vmem:[%s2067_s2 + $0x70] sm:$0xff] (!%p223_p2)  }
   0xa   : > { %v1745_v19 = vld [vmem:[%s2067_s2 + $0x78] sm:$0xff] (!%p223_p2)   ;;  %v676_v20 = vld [vmem:[%s2069_s4] sm:$0xf] (!%p223_p2) }
   0xb   : > { %v728_v21 = vsel (!%p223_p2), %vm726_vm1, %v676_v20, 0  ;;  %1716 = vmatprep.subr.msk.bf16.mxu1 (!%p223_p2), %vm726_vm1, %v676_v20  ;;  %v675_v22 = vld [vmem:[%s2068_s3] sm:$0xf] (!%p223_p2) }
   0xc   : > { %1682 = vmatpush3.bf16.msra.mxu1 (!%p223_p2), %v728_v21  ;;  %v1020_v23 = vsel (!%p223_p2), %vm726_vm1, %v675_v22, 0 }
   0xd   : > { %s2073_s22 = smov (!%p257_p3, %s1418_s22), 1  ;;  %1717 = vmatprep.subr.msk.bf16.mxu1 %vm726_vm1, %v675_v22 }
   0xe   : > { %s1517_s25 = sshll.u32 %s2073_s22, 5  ;;  %s1516_s29 = sshll.u32 %s2073_s22, 7 }
   0xf   : > { %s266_s28 = scalar_lea.vmem %s2066_s1, %s1517_s25  ;;  %s1827_s8 = scalar_lea.vmem %s2065_s0, %s1516_s29 }
  0x10   : > { %v1726_v1 = vld [vmem:[%s266_s28] sm:$0xff]   ;;  %v1727_v2 = vld [vmem:[%s266_s28 + $0x8] sm:$0xff]   ;;  %v1728_v3 = vld [vmem:[%s266_s28 + $0x10] sm:$0xff]   ;;  %s1518_s25 = sshll.u32 %s2073_s22, 8 }
  0x11   : > { %1573 = vmatprep.subr.bf16.mxu0 %v1726_v1  ;;  %v1729_v4 = vld [vmem:[%s266_s28 + $0x18] sm:$0xff]   ;;  %v1760_v22 = vld [vmem:[%s1827_s8 + $0x70] sm:$0xff]   ;;  %s1962_s28 = scalar_lea.vmem %s2071_s6, %s1518_s25 }
  0x12   : > { %1574 = vmatpush3.bf16.msra.mxu0 %v1726_v1 }
  0x13   : > { %1575 = vmatprep.subr.bf16.mxu0 %v1727_v2 }
  0x16   : > { %1576 = vmatpush3.bf16.msra.mxu0 %v1727_v2 }
  0x17   : > { %1577 = vmatprep.subr.bf16.mxu0 %v1728_v3 }
  0x1a   : > { %1578 = vmatpush3.bf16.msra.mxu0 %v1728_v3 }
  0x1b   : > { %1579 = vmatprep.subr.bf16.mxu0 %v1729_v4 }
  0x1e   : > { %1580 = vmatpush3.bf16.msra.mxu0 %v1729_v4 }
  0x1f   : > { %1715 = vmatprep.subr.msk.bf16.mxu0 %vm726_vm1, %v676_v20  ;;  %v1758_v20 = vld [vmem:[%s1827_s8 + $0x60] sm:$0xff]  }
  0x21   : > { %1582 = vmatmul.mubr.msk.bf16.vlgmr.msra.gmra.mrb[0].mxu0 %vm417_vm0, %v1731_v5 }
  0x22   : > { %1585 = vmatprep.mubr.msk.bf16.mxu0 %vm417_vm0, %v1732_v6  ;;  %1614 = vmatpush3.bf16.msra.mxu0 %v728_v21  ;;  %v1759_v21 = vld [vmem:[%s1827_s8 + $0x68] sm:$0xff]  }
  0x29   : > { %1586 = vmatmul.mubr.msk.bf16.gmra.mrb[4].mxu0 %vm417_vm0, %v1733_v7 }
  0x2a   : > { %1589 = vmatprep.mubr.msk.bf16.mxu0 %vm417_vm0, %v1734_v8  ;;  %v1746_v8 = vld [vmem:[%s1827_s8] sm:$0xff]  }
  0x31   : > { %1590 = vmatmul.mubr.msk.bf16.gmra.mrb[8].mxu0 %vm417_vm0, %v1735_v9  ;;  %v1747_v9 = vld [vmem:[%s1827_s8 + $0x8] sm:$0xff]  }
  0x32   : > { %1593 = vmatprep.mubr.msk.bf16.mxu0 %vm417_vm0, %v1736_v10  ;;  %v1748_v10 = vld [vmem:[%s1827_s8 + $0x10] sm:$0xff]  }
  0x39   : > { %1594 = vmatmul.mubr.msk.bf16.gmra.mrb[12].mxu0 %vm417_vm0, %v1737_v11  ;;  %v1749_v11 = vld [vmem:[%s1827_s8 + $0x18] sm:$0xff]  }
  0x3a   : > { %1597 = vmatprep.mubr.msk.bf16.mxu0 %vm417_vm0, %v1738_v12  ;;  %v1750_v12 = vld [vmem:[%s1827_s8 + $0x20] sm:$0xff]  }
  0x41   : > { %1598 = vmatmul.mubr.msk.bf16.gmra.mrb[16].mxu0 %vm417_vm0, %v1739_v13  ;;  %v1751_v13 = vld [vmem:[%s1827_s8 + $0x28] sm:$0xff]  }
  0x42   : > { %1601 = vmatprep.mubr.msk.bf16.mxu0 %vm417_vm0, %v1740_v14  ;;  %v1752_v14 = vld [vmem:[%s1827_s8 + $0x30] sm:$0xff]  }
  0x49   : > { %1602 = vmatmul.mubr.msk.bf16.gmra.mrb[20].mxu0 %vm417_vm0, %v1741_v15  ;;  %v1753_v15 = vld [vmem:[%s1827_s8 + $0x38] sm:$0xff]  }
  0x4a   : > { %1605 = vmatprep.mubr.msk.bf16.mxu0 %vm417_vm0, %v1742_v16  ;;  %v1754_v16 = vld [vmem:[%s1827_s8 + $0x40] sm:$0xff]  }
  0x51   : > { %1606 = vmatmul.mubr.msk.bf16.gmra.mrb[24].mxu0 %vm417_vm0, %v1743_v17  ;;  %v1755_v17 = vld [vmem:[%s1827_s8 + $0x48] sm:$0xff]  }
  0x52   : > { %1609 = vmatprep.mubr.msk.bf16.mxu0 %vm417_vm0, %v1744_v18  ;;  %v1756_v18 = vld [vmem:[%s1827_s8 + $0x50] sm:$0xff]  }
  0x59   : > { %1610 = vmatmul.mubr.msk.bf16.gmra.mrb[28].mxu0 %vm417_vm0, %v1745_v19  ;;  %v1757_v19 = vld [vmem:[%s1827_s8 + $0x58] sm:$0xff]  }
  0xf4   : > { %v1583_v24 = vpop.f32.mrb[0].mxu0 }
  0xf5   : > { %v500_v25 = vpop.f32.mrb[1].mxu0 }
  0xf6   : > { %v1584_v26 = vpop.f32.mrb[2].mxu0 }
  0xf7   : > { %v628_v27 = vpack.c.bf16 %v1584_v26, %v1583_v24  ;;  %v503_v28 = vpop.f32.mrb[3].mxu0 }
  0xf8   : > { %v627_v29 = vpack.c.bf16 %v503_v28, %v500_v25 }
  0xfa   : > { %1615 = vmatprep.mubr.msk.bf16.mxu0 %vm677_vm2, %v627_v29 }
  0xfb   : > { %1616 = vmatmul.mubr.msk.bf16.vlgmr.msra.gmra.mrb[32].mxu0 %vm677_vm2, %v628_v27 }
  0xfc   : > { %v1587_v30 = vpop.f32.mrb[4].mxu0 }
  0xfd   : > { %v516_v31 = vpop.f32.mrb[5].mxu0 }
  0xfe   : > { %v1588_v32 = vpop.f32.mrb[6].mxu0 }
  0xff   : > { %v630_v33 = vpack.c.bf16 %v1588_v32, %v1587_v30  ;;  %v519_v34 = vpop.f32.mrb[7].mxu0 }
 0x100   : > { %v629_v35 = vpack.c.bf16 %v519_v34, %v516_v31 }
 0x102   : > { %1619 = vmatprep.mubr.msk.bf16.mxu0 %vm677_vm2, %v629_v35 }
 0x103   : > { %1620 = vmatmul.mubr.msk.bf16.gmra.mrb[36].mxu0 %vm677_vm2, %v630_v33 }
 0x104   : > { %v1591_v36 = vpop.f32.mrb[8].mxu0 }
 0x105   : > { %v532_v37 = vpop.f32.mrb[9].mxu0 }
 0x106   : > { %v1592_v38 = vpop.f32.mrb[10].mxu0 }
 0x107   : > { %v632_v39 = vpack.c.bf16 %v1592_v38, %v1591_v36  ;;  %v535_v40 = vpop.f32.mrb[11].mxu0 }
 0x108   : > { %v631_v41 = vpack.c.bf16 %v535_v40, %v532_v37  ;;  %v1954_v37 = vld [vmem:[%s2070_s5] ss:$0 sm:$0xff] }
 0x10a   : > { %1623 = vmatprep.mubr.msk.bf16.mxu0 %vm677_vm2, %v631_v41 }
 0x10b   : > { %1624 = vmatmul.mubr.msk.bf16.gmra.mrb[40].mxu0 %vm677_vm2, %v632_v39 }
 0x10c   : > { %v1595_v42 = vpop.f32.mrb[12].mxu0 }
 0x10d   : > { %v548_v43 = vpop.f32.mrb[13].mxu0 }
 0x10e   : > { %v1596_v44 = vpop.f32.mrb[14].mxu0 }
 0x10f   : > { %v634_v45 = vpack.c.bf16 %v1596_v44, %v1595_v42  ;;  %v551_v46 = vpop.f32.mrb[15].mxu0 }
 0x110   : > { %v633_v47 = vpack.c.bf16 %v551_v46, %v548_v43 }
 0x112   : > { %1627 = vmatprep.mubr.msk.bf16.mxu1 %vm677_vm2, %v633_v47 }
 0x113   : > { %1628 = vmatmul.mubr.msk.bf16.vlgmr.msra.gmra.mrb[0].mxu1 %vm677_vm2, %v634_v45 }
 0x114   : > { %1648 = vmatpush3.bf16.msra.mxu1 %v1020_v23  ;;  %v1599_v48 = vpop.f32.mrb[16].mxu0  ;;  %v1761_v23 = vld [vmem:[%s1827_s8 + $0x78] sm:$0xff]  }
 0x115   : > { %v564_v49 = vpop.f32.mrb[17].mxu0 }
 0x116   : > { %v1600_v50 = vpop.f32.mrb[18].mxu0 }
 0x117   : > { %v636_v51 = vpack.c.bf16 %v1600_v50, %v1599_v48  ;;  %v567_v52 = vpop.f32.mrb[19].mxu0 }
 0x118   : > { %v635_v53 = vpack.c.bf16 %v567_v52, %v564_v49 }
 0x11a   : > { %1631 = vmatprep.mubr.msk.bf16.mxu1 %vm677_vm2, %v635_v53 }
 0x11b   : > { %1632 = vmatmul.mubr.msk.bf16.gmra.mrb[4].mxu1 %vm677_vm2, %v636_v51 }
 0x11c   : > { %v1603_v54 = vpop.f32.mrb[20].mxu0 }
 0x11d   : > { %v580_v55 = vpop.f32.mrb[21].mxu0 }
 0x11e   : > { %v1604_v56 = vpop.f32.mrb[22].mxu0 }
 0x11f   : > { %v638_v57 = vpack.c.bf16 %v1604_v56, %v1603_v54  ;;  %v583_v58 = vpop.f32.mrb[23].mxu0 }
 0x120   : > { %v637_v59 = vpack.c.bf16 %v583_v58, %v580_v55 }
 0x122   : > { %1635 = vmatprep.mubr.msk.bf16.mxu1 %vm677_vm2, %v637_v59 }
 0x123   : > { %1636 = vmatmul.mubr.msk.bf16.gmra.mrb[8].mxu1 %vm677_vm2, %v638_v57 }
 0x124   : > { %v1607_v60 = vpop.f32.mrb[24].mxu0 }
 0x125   : > { %v596_v61 = vpop.f32.mrb[25].mxu0 }
 0x126   : > { %v1608_v62 = vpop.f32.mrb[26].mxu0 }
 0x127   : > { %v640_v63 = vpack.c.bf16 %v1608_v62, %v1607_v60  ;;  %v599_v0 = vpop.f32.mrb[27].mxu0 }
 0x128   : > { %v639_v1 = vpack.c.bf16 %v599_v0, %v596_v61 }
 0x12a   : > { %1639 = vmatprep.mubr.msk.bf16.mxu1 %vm677_vm2, %v639_v1 }
 0x12b   : > { %1640 = vmatmul.mubr.msk.bf16.gmra.mrb[12].mxu1 %vm677_vm2, %v640_v63 }
 0x12c   : > { %v1611_v2 = vpop.f32.mrb[28].mxu0 }
 0x12d   : > { %v612_v3 = vpop.f32.mrb[29].mxu0 }
 0x12e   : > { %v1612_v4 = vpop.f32.mrb[30].mxu0 }
 0x12f   : > { %v642_v5 = vpack.c.bf16 %v1612_v4, %v1611_v2  ;;  %v615_v6 = vpop.f32.mrb[31].mxu0 }
 0x130   : > { %v641_v7 = vpack.c.bf16 %v615_v6, %v612_v3 }
 0x132   : > { %1643 = vmatprep.mubr.msk.bf16.mxu1 %vm677_vm2, %v641_v7 }
 0x133   : > { %1644 = vmatmul.mubr.msk.bf16.gmra.mrb[16].mxu1 %vm677_vm2, %v642_v5 }
 0x134   : > { %1649 = vmatprep.mubr.msk.bf16.mxu1 %vm677_vm2, %v1746_v8 }
 0x13b   : > { %1650 = vmatmul.mubr.msk.bf16.vlgmr.msra.gmra.mrb[20].mxu1 %vm677_vm2, %v1747_v9 }
 0x13c   : > { %1653 = vmatprep.mubr.msk.bf16.mxu1 %vm677_vm2, %v1748_v10 }
 0x143   : > { %1654 = vmatmul.mubr.msk.bf16.gmra.mrb[24].mxu1 %vm677_vm2, %v1749_v11 }
 0x144   : > { %1657 = vmatprep.mubr.msk.bf16.mxu1 %vm677_vm2, %v1750_v12 }
 0x14b   : > { %1658 = vmatmul.mubr.msk.bf16.gmra.mrb[28].mxu1 %vm677_vm2, %v1751_v13 }
 0x14c   : > { %1661 = vmatprep.mubr.msk.bf16.mxu1 %vm677_vm2, %v1752_v14 }
 0x153   : > { %1662 = vmatmul.mubr.msk.bf16.gmra.mrb[0].mxu1 %vm677_vm2, %v1753_v15 }
 0x154   : > { %1665 = vmatprep.mubr.msk.bf16.mxu1 %vm677_vm2, %v1754_v16 }
 0x15b   : > { %1666 = vmatmul.mubr.msk.bf16.gmra.mrb[4].mxu1 %vm677_vm2, %v1755_v17 }
 0x15c   : > { %1669 = vmatprep.mubr.msk.bf16.mxu1 %vm677_vm2, %v1756_v18 }
 0x163   : > { %1670 = vmatmul.mubr.msk.bf16.gmra.mrb[8].mxu1 %vm677_vm2, %v1757_v19 }
 0x164   : > { %1673 = vmatprep.mubr.msk.bf16.mxu1 %vm677_vm2, %v1758_v20 }
 0x16b   : > { %1674 = vmatmul.mubr.msk.bf16.gmra.mrb[12].mxu1 %vm677_vm2, %v1759_v21 }
 0x16c   : > { %1677 = vmatprep.mubr.msk.bf16.mxu1 %vm677_vm2, %v1760_v22 }
 0x173   : > { %1678 = vmatmul.mubr.msk.bf16.gmra.mrb[16].mxu1 %vm677_vm2, %v1761_v23 }
 0x1ce   : > { %v1617_v24 = vpop.f32.mrb[32].mxu0 }
 0x1cf   : > { %v764_v25 = vpop.f32.mrb[33].mxu0 }
 0x1d0   : > { %v1618_v26 = vpop.f32.mrb[34].mxu0 }
 0x1d1   : > { %v767_v27 = vpop.f32.mrb[35].mxu0 }
 0x1d6   : > { %v1621_v28 = vpop.f32.mrb[36].mxu0 }
 0x1d7   : > { %v780_v29 = vpop.f32.mrb[37].mxu0 }
 0x1d8   : > { %v1622_v30 = vpop.f32.mrb[38].mxu0 }
 0x1d9   : > { %v783_v31 = vpop.f32.mrb[39].mxu0 }
 0x1de   : > { %v1943_v32 = vpop.f32.mrb[40].mxu0 }
 0x1df   : > { %v1945_v33 = vpop.f32.mrb[41].mxu0 }
 0x1e0   : > { %v1947_v34 = vpop.f32.mrb[42].mxu0 }
 0x1e1   : > { %v1949_v35 = vpop.f32.mrb[43].mxu0 }
 0x20e   : > { %v1651_v36 = vpop.f32.mrb[20].mxu1 }
 0x20f   : > { %v1065_v38 = vadd.f32 %v1651_v36, %v1617_v24  ;;  %v1056_v39 = vpop.f32.mrb[21].mxu1 }
 0x210   : > { %v1057_v40 = vadd.f32 %v1056_v39, %v764_v25  ;;  %v1652_v41 = vpop.f32.mrb[22].mxu1 }
 0x211   : > { %v1192_v42 = vadd.f32 %v1954_v37, %v1065_v38  ;;  %v1068_v43 = vadd.f32 %v1652_v41, %v1618_v26  ;;  %v1059_v44 = vpop.f32.mrb[23].mxu1 }
 0x212   : > { %v1190_v45 = vadd.f32 %v1954_v37, %v1057_v40  ;;  %v1060_v46 = vadd.f32 %v1059_v44, %v767_v27 }
 0x213   : > { %vm1224_vm3 = vcmp.ge.f32.partialorder %v1192_v42, 0.0  ;;  %v1256_v47 = vmul.f32 0.1, %v1192_v42  ;;  %v1193_v48 = vadd.f32 %v1954_v37, %v1068_v43 }
 0x214   : > { %vm1222_vm5 = vcmp.ge.f32.partialorder %v1190_v45, 0.0  ;;  %v1254_v49 = vmul.f32 0.1, %v1190_v45  ;;  %v1191_v50 = vadd.f32 %v1954_v37, %v1060_v46 }
 0x215   : > { %v1288_v51 = vsel %vm1224_vm3, %v1192_v42, %v1256_v47  ;;  %vm1225_vm6 = vcmp.ge.f32.partialorder %v1193_v48, 0.0  ;;  %v1257_v52 = vmul.f32 0.1, %v1193_v48 }
 0x216   : > { %1321 = vst.msk [vmem:[%s1962_s28 + $0x10] sm:$0xff] %vm1318_vm4, %v1288_v51  ;;  %v1286_v53 = vsel %vm1222_vm5, %v1190_v45, %v1254_v49  ;;  %vm1223_vm7 = vcmp.ge.f32.partialorder %v1191_v50, 0.0  ;;  %v1255_v54 = vmul.f32 0.1, %v1191_v50  ;;  %v1655_v55 = vpop.f32.mrb[24].mxu1 }
 0x217   : > { %1319 = vst.msk [vmem:[%s1962_s28] sm:$0xff] %vm1318_vm4, %v1286_v53  ;;  %v1289_v56 = vsel %vm1225_vm6, %v1193_v48, %v1257_v52  ;;  %v1081_v57 = vadd.f32 %v1655_v55, %v1621_v28  ;;  %v1072_v58 = vpop.f32.mrb[25].mxu1 }
 0x218   : > { %1322 = vst.msk [vmem:[%s1962_s28 + $0x18] sm:$0xff] %vm1318_vm4, %v1289_v56  ;;  %v1287_v59 = vsel %vm1223_vm7, %v1191_v50, %v1255_v54  ;;  %v1073_v60 = vadd.f32 %v1072_v58, %v780_v29  ;;  %v1656_v61 = vpop.f32.mrb[26].mxu1 }
 0x219   : > { %1320 = vst.msk [vmem:[%s1962_s28 + $0x8] sm:$0xff] %vm1318_vm4, %v1287_v59  ;;  %v1196_v62 = vadd.f32 %v1954_v37, %v1081_v57  ;;  %v1084_v63 = vadd.f32 %v1656_v61, %v1622_v30  ;;  %v1075_v0 = vpop.f32.mrb[27].mxu1 }
 0x21a   : > { %v1194_v1 = vadd.f32 %v1954_v37, %v1073_v60  ;;  %v1076_v2 = vadd.f32 %v1075_v0, %v783_v31 }
 0x21b   : > { %vm1228_vm8 = vcmp.ge.f32.partialorder %v1196_v62, 0.0  ;;  %v1260_v3 = vmul.f32 0.1, %v1196_v62  ;;  %v1197_v4 = vadd.f32 %v1954_v37, %v1084_v63 }
 0x21c   : > { %vm1226_vm9 = vcmp.ge.f32.partialorder %v1194_v1, 0.0  ;;  %v1258_v5 = vmul.f32 0.1, %v1194_v1  ;;  %v1195_v6 = vadd.f32 %v1954_v37, %v1076_v2 }
 0x21d   : > { %v1292_v7 = vsel %vm1228_vm8, %v1196_v62, %v1260_v3  ;;  %vm1229_vm10 = vcmp.ge.f32.partialorder %v1197_v4, 0.0  ;;  %v1261_v8 = vmul.f32 0.1, %v1197_v4 }
 0x21e   : > { %1325 = vst.msk [vmem:[%s1962_s28 + $0x30] sm:$0xff] %vm1318_vm4, %v1292_v7  ;;  %v1290_v9 = vsel %vm1226_vm9, %v1194_v1, %v1258_v5  ;;  %vm1227_vm11 = vcmp.ge.f32.partialorder %v1195_v6, 0.0  ;;  %v1259_v10 = vmul.f32 0.1, %v1195_v6  ;;  %v1659_v11 = vpop.f32.mrb[28].mxu1 }
 0x21f   : > { %1323 = vst.msk [vmem:[%s1962_s28 + $0x20] sm:$0xff] %vm1318_vm4, %v1290_v9  ;;  %v1293_v12 = vsel %vm1229_vm10, %v1197_v4, %v1261_v8  ;;  %v1097_v13 = vadd.f32 %v1659_v11, %v1943_v32  ;;  %v1088_v14 = vpop.f32.mrb[29].mxu1 }
 0x220   : > { %1326 = vst.msk [vmem:[%s1962_s28 + $0x38] sm:$0xff] %vm1318_vm4, %v1293_v12  ;;  %v1291_v15 = vsel %vm1227_vm11, %v1195_v6, %v1259_v10  ;;  %v1089_v16 = vadd.f32 %v1088_v14, %v1945_v33  ;;  %v1660_v17 = vpop.f32.mrb[30].mxu1 }
 0x221   : > { %1324 = vst.msk [vmem:[%s1962_s28 + $0x28] sm:$0xff] %vm1318_vm4, %v1291_v15  ;;  %v1200_v18 = vadd.f32 %v1954_v37, %v1097_v13  ;;  %v1100_v19 = vadd.f32 %v1660_v17, %v1947_v34  ;;  %v1091_v20 = vpop.f32.mrb[31].mxu1 }
 0x222   : > { %v1198_v21 = vadd.f32 %v1954_v37, %v1089_v16  ;;  %v1092_v22 = vadd.f32 %v1091_v20, %v1949_v35 }
 0x223   : > { %vm1232_vm12 = vcmp.ge.f32.partialorder %v1200_v18, 0.0  ;;  %v1264_v23 = vmul.f32 0.1, %v1200_v18  ;;  %v1201_v24 = vadd.f32 %v1954_v37, %v1100_v19 }
 0x224   : > { %vm1230_vm13 = vcmp.ge.f32.partialorder %v1198_v21, 0.0  ;;  %v1262_v25 = vmul.f32 0.1, %v1198_v21  ;;  %v1199_v26 = vadd.f32 %v1954_v37, %v1092_v22 }
 0x225   : > { %v1296_v27 = vsel %vm1232_vm12, %v1200_v18, %v1264_v23  ;;  %vm1233_vm14 = vcmp.ge.f32.partialorder %v1201_v24, 0.0  ;;  %v1265_v28 = vmul.f32 0.1, %v1201_v24 }
 0x226   : > { %1329 = vst.msk [vmem:[%s1962_s28 + $0x50] sm:$0xff] %vm1318_vm4, %v1296_v27  ;;  %v1294_v29 = vsel %vm1230_vm13, %v1198_v21, %v1262_v25  ;;  %vm1231_vm15 = vcmp.ge.f32.partialorder %v1199_v26, 0.0  ;;  %v1263_v30 = vmul.f32 0.1, %v1199_v26  ;;  %v1663_v31 = vpop.f32.mrb[0].mxu1 }
 0x227   : > { %1327 = vst.msk [vmem:[%s1962_s28 + $0x40] sm:$0xff] %vm1318_vm4, %v1294_v29  ;;  %v1297_v32 = vsel %vm1233_vm14, %v1201_v24, %v1265_v28  ;;  %v1204_v33 = vadd.f32 %v1663_v31, %v1954_v37  ;;  %v1104_v34 = vpop.f32.mrb[1].mxu1 }
 0x228   : > { %1330 = vst.msk [vmem:[%s1962_s28 + $0x58] sm:$0xff] %vm1318_vm4, %v1297_v32  ;;  %v1295_v35 = vsel %vm1231_vm15, %v1199_v26, %v1263_v30  ;;  %v1202_v36 = vadd.f32 %v1954_v37, %v1104_v34  ;;  %v1664_v38 = vpop.f32.mrb[2].mxu1 }
 0x229   : > { %1328 = vst.msk [vmem:[%s1962_s28 + $0x48] sm:$0xff] %vm1318_vm4, %v1295_v35  ;;  %vm1236_vm0 = vcmp.ge.f32.partialorder %v1204_v33, 0.0  ;;  %v1268_v39 = vmul.f32 0.1, %v1204_v33  ;;  %v1205_v40 = vadd.f32 %v1664_v38, %v1954_v37  ;;  %v1107_v41 = vpop.f32.mrb[3].mxu1 }
 0x22a   : > { %vm1234_vm1 = vcmp.ge.f32.partialorder %v1202_v36, 0.0  ;;  %v1266_v42 = vmul.f32 0.1, %v1202_v36  ;;  %v1203_v43 = vadd.f32 %v1954_v37, %v1107_v41 }
 0x22b   : > { %v1300_v44 = vsel %vm1236_vm0, %v1204_v33, %v1268_v39  ;;  %vm1237_vm2 = vcmp.ge.f32.partialorder %v1205_v40, 0.0  ;;  %v1269_v45 = vmul.f32 0.1, %v1205_v40 }
 0x22c   : > { %1333 = vst.msk [vmem:[%s1962_s28 + $0x70] sm:$0xff] %vm1318_vm4, %v1300_v44  ;;  %v1298_v46 = vsel %vm1234_vm1, %v1202_v36, %v1266_v42  ;;  %vm1235_vm3 = vcmp.ge.f32.partialorder %v1203_v43, 0.0  ;;  %v1267_v47 = vmul.f32 0.1, %v1203_v43 }
 0x22d   : > { %1331 = vst.msk [vmem:[%s1962_s28 + $0x60] sm:$0xff] %vm1318_vm4, %v1298_v46  ;;  %v1301_v48 = vsel %vm1237_vm2, %v1205_v40, %v1269_v45 }
 0x22e   : > { %1334 = vst.msk [vmem:[%s1962_s28 + $0x78] sm:$0xff] %vm1318_vm4, %v1301_v48  ;;  %v1299_v49 = vsel %vm1235_vm3, %v1203_v43, %v1267_v47  ;;  %v1667_v50 = vpop.f32.mrb[4].mxu1 }
 0x22f   : > { %1332 = vst.msk [vmem:[%s1962_s28 + $0x68] sm:$0xff] %vm1318_vm4, %v1299_v49  ;;  %v1208_v51 = vadd.f32 %v1667_v50, %v1954_v37  ;;  %v1120_v52 = vpop.f32.mrb[5].mxu1 }
 0x230   : > { %v1206_v53 = vadd.f32 %v1954_v37, %v1120_v52  ;;  %v1668_v54 = vpop.f32.mrb[6].mxu1 }
 0x231   : > { %vm1240_vm5 = vcmp.ge.f32.partialorder %v1208_v51, 0.0  ;;  %v1272_v55 = vmul.f32 0.1, %v1208_v51  ;;  %v1209_v56 = vadd.f32 %v1668_v54, %v1954_v37  ;;  %v1123_v57 = vpop.f32.mrb[7].mxu1 }
 0x232   : > { %vm1238_vm6 = vcmp.ge.f32.partialorder %v1206_v53, 0.0  ;;  %v1270_v58 = vmul.f32 0.1, %v1206_v53  ;;  %v1207_v59 = vadd.f32 %v1954_v37, %v1123_v57 }
 0x233   : > { %v1304_v60 = vsel %vm1240_vm5, %v1208_v51, %v1272_v55  ;;  %vm1241_vm7 = vcmp.ge.f32.partialorder %v1209_v56, 0.0  ;;  %v1273_v61 = vmul.f32 0.1, %v1209_v56 }
 0x234   : > { %1337 = vst.msk [vmem:[%s1962_s28 + $0x90] sm:$0xff] %vm1318_vm4, %v1304_v60  ;;  %v1302_v62 = vsel %vm1238_vm6, %v1206_v53, %v1270_v58  ;;  %vm1239_vm8 = vcmp.ge.f32.partialorder %v1207_v59, 0.0  ;;  %v1271_v63 = vmul.f32 0.1, %v1207_v59 }
 0x235   : > { %1335 = vst.msk [vmem:[%s1962_s28 + $0x80] sm:$0xff] %vm1318_vm4, %v1302_v62  ;;  %v1305_v0 = vsel %vm1241_vm7, %v1209_v56, %v1273_v61 }
 0x236   : > { %1338 = vst.msk [vmem:[%s1962_s28 + $0x98] sm:$0xff] %vm1318_vm4, %v1305_v0  ;;  %v1303_v1 = vsel %vm1239_vm8, %v1207_v59, %v1271_v63  ;;  %v1671_v2 = vpop.f32.mrb[8].mxu1 }
 0x237   : > { %1336 = vst.msk [vmem:[%s1962_s28 + $0x88] sm:$0xff] %vm1318_vm4, %v1303_v1  ;;  %v1212_v3 = vadd.f32 %v1671_v2, %v1954_v37  ;;  %v1136_v4 = vpop.f32.mrb[9].mxu1 }
 0x238   : > { %v1210_v5 = vadd.f32 %v1954_v37, %v1136_v4  ;;  %v1672_v6 = vpop.f32.mrb[10].mxu1 }
 0x239   : > { %vm1244_vm9 = vcmp.ge.f32.partialorder %v1212_v3, 0.0  ;;  %v1276_v7 = vmul.f32 0.1, %v1212_v3  ;;  %v1213_v8 = vadd.f32 %v1672_v6, %v1954_v37  ;;  %v1139_v9 = vpop.f32.mrb[11].mxu1 }
 0x23a   : > { %vm1242_vm10 = vcmp.ge.f32.partialorder %v1210_v5, 0.0  ;;  %v1274_v10 = vmul.f32 0.1, %v1210_v5  ;;  %v1211_v11 = vadd.f32 %v1954_v37, %v1139_v9 }
 0x23b   : > { %v1308_v12 = vsel %vm1244_vm9, %v1212_v3, %v1276_v7  ;;  %vm1245_vm11 = vcmp.ge.f32.partialorder %v1213_v8, 0.0  ;;  %v1277_v13 = vmul.f32 0.1, %v1213_v8 }
 0x23c   : > { %1341 = vst.msk [vmem:[%s1962_s28 + $0xb0] sm:$0xff] %vm1318_vm4, %v1308_v12  ;;  %v1306_v14 = vsel %vm1242_vm10, %v1210_v5, %v1274_v10  ;;  %vm1243_vm12 = vcmp.ge.f32.partialorder %v1211_v11, 0.0  ;;  %v1275_v15 = vmul.f32 0.1, %v1211_v11 }
 0x23d   : > { %1339 = vst.msk [vmem:[%s1962_s28 + $0xa0] sm:$0xff] %vm1318_vm4, %v1306_v14  ;;  %v1309_v16 = vsel %vm1245_vm11, %v1213_v8, %v1277_v13 }
 0x23e   : > { %1342 = vst.msk [vmem:[%s1962_s28 + $0xb8] sm:$0xff] %vm1318_vm4, %v1309_v16  ;;  %v1307_v17 = vsel %vm1243_vm12, %v1211_v11, %v1275_v15  ;;  %v1675_v18 = vpop.f32.mrb[12].mxu1 }
 0x23f   : > { %1340 = vst.msk [vmem:[%s1962_s28 + $0xa8] sm:$0xff] %vm1318_vm4, %v1307_v17  ;;  %v1216_v19 = vadd.f32 %v1675_v18, %v1954_v37  ;;  %v1152_v20 = vpop.f32.mrb[13].mxu1 }
 0x240   : > { %v1214_v21 = vadd.f32 %v1954_v37, %v1152_v20  ;;  %v1676_v22 = vpop.f32.mrb[14].mxu1 }
 0x241   : > { %vm1248_vm13 = vcmp.ge.f32.partialorder %v1216_v19, 0.0  ;;  %v1280_v23 = vmul.f32 0.1, %v1216_v19  ;;  %v1217_v24 = vadd.f32 %v1676_v22, %v1954_v37  ;;  %v1155_v25 = vpop.f32.mrb[15].mxu1 }
 0x242   : > { %vm1246_vm14 = vcmp.ge.f32.partialorder %v1214_v21, 0.0  ;;  %v1278_v26 = vmul.f32 0.1, %v1214_v21  ;;  %v1215_v27 = vadd.f32 %v1954_v37, %v1155_v25 }
 0x243   : > { %v1312_v28 = vsel %vm1248_vm13, %v1216_v19, %v1280_v23  ;;  %vm1249_vm15 = vcmp.ge.f32.partialorder %v1217_v24, 0.0  ;;  %v1281_v29 = vmul.f32 0.1, %v1217_v24 }
 0x244   : > { %1345 = vst.msk [vmem:[%s1962_s28 + $0xd0] sm:$0xff] %vm1318_vm4, %v1312_v28  ;;  %v1310_v30 = vsel %vm1246_vm14, %v1214_v21, %v1278_v26  ;;  %vm1247_vm0 = vcmp.ge.f32.partialorder %v1215_v27, 0.0  ;;  %v1279_v31 = vmul.f32 0.1, %v1215_v27 }
 0x245   : > { %1343 = vst.msk [vmem:[%s1962_s28 + $0xc0] sm:$0xff] %vm1318_vm4, %v1310_v30  ;;  %v1313_v32 = vsel %vm1249_vm15, %v1217_v24, %v1281_v29 }
 0x246   : > { %1346 = vst.msk [vmem:[%s1962_s28 + $0xd8] sm:$0xff] %vm1318_vm4, %v1313_v32  ;;  %v1311_v33 = vsel %vm1247_vm0, %v1215_v27, %v1279_v31  ;;  %v1679_v34 = vpop.f32.mrb[16].mxu1 }
 0x247   : > { %1344 = vst.msk [vmem:[%s1962_s28 + $0xc8] sm:$0xff] %vm1318_vm4, %v1311_v33  ;;  %v1220_v35 = vadd.f32 %v1679_v34, %v1954_v37  ;;  %v1168_v36 = vpop.f32.mrb[17].mxu1 }
 0x248   : > { %v1218_v38 = vadd.f32 %v1954_v37, %v1168_v36  ;;  %v1680_v39 = vpop.f32.mrb[18].mxu1 }
 0x249   : > { %vm1252_vm1 = vcmp.ge.f32.partialorder %v1220_v35, 0.0  ;;  %v1284_v40 = vmul.f32 0.1, %v1220_v35  ;;  %v1221_v41 = vadd.f32 %v1680_v39, %v1954_v37  ;;  %v1171_v42 = vpop.f32.mrb[19].mxu1 }
 0x24a   : > { %vm1250_vm2 = vcmp.ge.f32.partialorder %v1218_v38, 0.0  ;;  %v1282_v43 = vmul.f32 0.1, %v1218_v38  ;;  %v1219_v44 = vadd.f32 %v1954_v37, %v1171_v42 }
 0x24b   : > { %v1316_v45 = vsel %vm1252_vm1, %v1220_v35, %v1284_v40  ;;  %vm1253_vm3 = vcmp.ge.f32.partialorder %v1221_v41, 0.0  ;;  %v1285_v46 = vmul.f32 0.1, %v1221_v41 }
 0x24c   : > { %1349 = vst.msk [vmem:[%s1962_s28 + $0xf0] sm:$0xff] %vm1318_vm4, %v1316_v45  ;;  %v1314_v47 = vsel %vm1250_vm2, %v1218_v38, %v1282_v43  ;;  %vm1251_vm5 = vcmp.ge.f32.partialorder %v1219_v44, 0.0  ;;  %v1283_v48 = vmul.f32 0.1, %v1219_v44 }
 0x24d   : > { %1347 = vst.msk [vmem:[%s1962_s28 + $0xe0] sm:$0xff] %vm1318_vm4, %v1314_v47  ;;  %v1317_v49 = vsel %vm1253_vm3, %v1221_v41, %v1285_v46 }
 0x24e   : > { %1350 = vst.msk [vmem:[%s1962_s28 + $0xf8] sm:$0xff] %vm1318_vm4, %v1317_v49  ;;  %v1315_v50 = vsel %vm1251_vm5, %v1219_v44, %v1283_v48 }
 0x24f   : > { %1348 = vst.msk [vmem:[%s1962_s28 + $0xe8] sm:$0xff] %vm1318_vm4, %v1315_v50 }
 0x250 PF: > { %s16_s21 = sadd.s32 1, %s1768_s21  }
 0x251   : > { %p13_p4 = scmp.ge.s32.totalorder %s16_s21, 4  }
 0x253   :  { %15 = sbr.rel (!%p13_p4) target bundleno = 1 (0x1), region = 77 }

// kernel: context_detail_forward.6
= control target key start
LH: loop header
LB: loop body
LE: loop exit
PB: predicated region body
PF: predicated region fallthrough
CT: control target
= control target key end

     0   :  { %s2364_s12 = smov 0   ;;  %s2634_s0 = inlined_call_operand.vmem [shape: bf16[2,1,1,9,9,8], index: 0, kind: input, shape index: {}]   ;;  %s2635_s1 = inlined_call_operand.vmem [shape: bf16[4,8,8], index: 1, kind: input, shape index: {}]   ;;  %s2636_s2 = inlined_call_operand.vmem [shape: f32[1,8], index: 2, kind: input, shape index: {}]   ;;  %s2637_s3 = inlined_call_operand.vmem [shape: bf16[2,8,8,8], index: 3, kind: output, shape index: {}]  }
   0x1 LB: > { %s1943_s13 = sadd.s32 4294967295, %s2340_s12   ;;  %p1947_p0 = scmp.ge.s32.totalorder %s2340_s12, 1  ;;  %s2340_s12 = sphi %s2364_s12, %s13_s12  }
   0x2   : > { %p137_p1 = scmp.lt.s32.totalorder %s2340_s12, 3 }
   0x4   : > { %p138_p2 = pnand %p1947_p0, %p137_p1 }
   0x5   : > { %v1951_v0 = vld [vmem:[%s2635_s1 + $0x4] sm:$0xf] (!%p138_p2)  ;;  %vm198_vm0 = vcmask (!%p138_p2), 1043456   ;;  %v172_v1 = vld [vmem:[%s2635_s1] sm:$0xf] (!%p138_p2)  ;;  %v2342_v2 = vmov (!%p138_p2), 0.0  }
   0x6   : > { %141 = sbr.rel (%p138_p2) target bundleno = 370 (0x172), region = 32  ;;  %2115 = vmatprep.subr.bf16.mxu0 (!%p138_p2), %v2342_v2  ;;  %2121 = vmatprep.subr.bf16.mxu1 (!%p138_p2), %v2342_v2  ;;  %v2381_v3 = vsel (!%p138_p2), %vm198_vm0, %v1951_v0, 0  ;;  %v2384_v4 = vsel (!%p138_p2), %vm198_vm0, %v172_v1, 0  ;;  %p161_p3 = scmp.lt.s32.totalorder (!%p138_p2), %s1943_s13, 1  ;;  %vm2343_vm1 = vmmov (!%p138_p2), 0   ;;  %vm194_vm2 = vcmask (!%p138_p2), 64512  }
   0x7   : > { %2116 = vmatpush3.bf16.msra.mxu0 (!%p138_p2), %v2381_v3  ;;  %2122 = vmatpush3.bf16.msra.mxu1 (!%p138_p2), %v2384_v4  ;;  %v1953_v5 = vld [vmem:[%s2635_s1 + $0xc] sm:$0xf] (!%p138_p2)  ;;  %v1952_v15 = vld [vmem:[%s2635_s1 + $0x8] sm:$0xf] (!%p138_p2)  ;;  %vm409_vm4 = vcmask (!%p138_p2), 60416  }
   0x8   : > { %2123 = vmatprep.mubr.msk.bf16.mxu1 (!%p138_p2), %vm2343_vm1, %v2342_v2  ;;  %2117 = vmatprep.mubr.msk.bf16.mxu0 (!%p138_p2), %vm2343_vm1, %v2342_v2  ;;  %v2406_v6 = vsel (!%p138_p2), %vm198_vm0, %v1953_v5, 0  ;;  %v2422_v21 = vsel (!%p138_p2), %vm198_vm0, %v1952_v15, 0 }
   0x9   : > { %2127 = vmatprep.subr.bf16.mxu0 (!%p138_p2), %v2342_v2  ;;  %2133 = vmatprep.subr.bf16.mxu1 (!%p138_p2), %v2342_v2 }
   0xd   : > { %s2639_s13 = smov (!%p161_p3, %s1943_s13), 1 }
   0xe   : > { %s2307_s20 = smul.u32 72, %s2639_s13  ;;  %s2050_s28 = sshll.u32 %s2639_s13, 5 }
   0xf   : > { %s2606_s4 = scalar_lea.vmem %s2637_s3, %s2050_s28 }
  0x10   : > { %s2403_s23 = scalar_lea.vmem %s2634_s0, %s2307_s20 }
  0x11   : > { %v180_v7 = vld [vmem:[%s2403_s23] sm:$0xf]  ;;  %v181_v8 = vld [vmem:[%s2403_s23 + $0x4] sm:$0x1]  ;;  %v2319_v10 = vld [vmem:[%s2403_s23 + $0x8] sm:$0x1f]  }
  0x12   : > { %v1954_v9 = vcombine.low %v180_v7, %v181_v8  ;;  %2124 = vmatmul.mubr.msk.bf16.vlgmr.msra.gmra.mrb[0].mxu1 %vm194_vm2, %v180_v7  ;;  %v345_v13 = vshrl.u32 %v2319_v10, 16  ;;  %v347_v14 = vshll.u32 %v2319_v10, 16  ;;  %v1964_v18 = vld [vmem:[%s2403_s23 + $0x8] sm:$0xf]  ;;  %v1965_v19 = vld [vmem:[%s2403_s23 + $0xc] sm:$0x1] }
  0x13   : > { %2134 = vmatpush3.bf16.msra.mxu1 %v2406_v6  ;;  %2135 = vmatprep.mubr.msk.bf16.mxu1 %vm2343_vm1, %v2342_v2  ;;  %v1966_v23 = vcombine.low %v1964_v18, %v1965_v19  ;;  %v2321_v24 = vld [vmem:[%s2403_s23 + $0x10] sm:$0x1f]   ;;  %v1957_v27 = vld [vmem:[%s2403_s23 + $0x8] sm:$0xf]  ;;  %v2323_v37 = vld [vmem:[%s2403_s23 + $0x18] sm:$0x1f]  }
  0x14   : > { %v188_v11 = vshrl.u32 %v1954_v9, 16  ;;  %v190_v12 = vshll.u32 %v1954_v9, 16  ;;  %2145 = vmatprep.subr.bf16.mxu1 %v2342_v2  ;;  %v349_v17 = vrot.slane %v347_v14, 1  ;;  %v567_v26 = vshll.u32 %v2321_v24, 16  ;;  %v1976_v34 = vld [vmem:[%s2403_s23 + $0x10] sm:$0xf] }
  0x15   : > { %v421_v25 = vshll.u32 %v1966_v23, 16  ;;  %v419_v28 = vshrl.u32 %v1966_v23, 16  ;;  %v565_v30 = vshrl.u32 %v2321_v24, 16  ;;  %v1977_v35 = vld [vmem:[%s2403_s23 + $0x14] sm:$0x1]  ;;  %v778_v39 = vshll.u32 %v2323_v37, 16 }
  0x16   : > { %v192_v16 = vrot.slane %v190_v12, 1  ;;  %v350_v22 = vor.u32 %v349_v17, %v345_v13  ;;  %v569_v31 = vrot.slane %v567_v26, 1  ;;  %v1978_v36 = vcombine.low %v1976_v34, %v1977_v35  ;;  %v1969_v40 = vld [vmem:[%s2403_s23 + $0x10] sm:$0xf]  ;;  %v1988_v47 = vld [vmem:[%s2403_s23 + $0x18] sm:$0xf] }
  0x17   : > { %v423_v29 = vrot.slane %v421_v25, 1  ;;  %v776_v43 = vshrl.u32 %v2323_v37, 16  ;;  %v780_v44 = vrot.slane %v778_v39, 1  ;;  %v1989_v48 = vld [vmem:[%s2403_s23 + $0x1c] sm:$0x1] }
  0x18   : > { %v193_v20 = vor.u32 %v192_v16, %v188_v11  ;;  %v570_v33 = vor.u32 %v569_v31, %v565_v30  ;;  %v632_v38 = vshll.u32 %v1978_v36, 16  ;;  %v630_v41 = vshrl.u32 %v1978_v36, 16  ;;  %v2325_v50 = vld [vmem:[%s2403_s23 + $0x20] sm:$0x1f]   ;;  %v1981_v53 = vld [vmem:[%s2403_s23 + $0x18] sm:$0xf] }
  0x19   : > { %v424_v32 = vor.u32 %v423_v29, %v419_v28  ;;  %v781_v46 = vor.u32 %v780_v44, %v776_v43  ;;  %v1990_v49 = vcombine.low %v1988_v47, %v1989_v48  ;;  %v989_v52 = vshll.u32 %v2325_v50, 16  ;;  %v2000_v60 = vld [vmem:[%s2403_s23 + $0x20] sm:$0xf]  ;;  %v2001_v61 = vld [vmem:[%s2403_s23 + $0x24] sm:$0x1] }
  0x1a   : > { %2118 = vmatmul.mubr.msk.bf16.vlgmr.msra.gmra.mrb[0].mxu0 %vm194_vm2, %v193_v20  ;;  %2136 = vmatmul.mubr.msk.bf16.vlgmr.msra.gmra.mrb[4].mxu1 %vm194_vm2, %v350_v22  ;;  %v634_v42 = vrot.slane %v632_v38, 1  ;;  %v987_v56 = vshrl.u32 %v2325_v50, 16  ;;  %v2002_v62 = vcombine.low %v2000_v60, %v2001_v61  ;;  %v2327_v63 = vld [vmem:[%s2403_s23 + $0x28] sm:$0x1f]   ;;  %v1993_v5 = vld [vmem:[%s2403_s23 + $0x20] sm:$0xf] }
  0x1b   : > { %2128 = vmatpush3.bf16.msra.mxu0 %v2422_v21  ;;  %2129 = vmatprep.mubr.msk.bf16.mxu0 %vm2343_vm1, %v2342_v2  ;;  %v843_v51 = vshll.u32 %v1990_v49, 16  ;;  %v841_v54 = vshrl.u32 %v1990_v49, 16  ;;  %v991_v57 = vrot.slane %v989_v52, 1  ;;  %v1200_v1 = vshll.u32 %v2327_v63, 16  ;;  %v2012_v13 = vld [vmem:[%s2403_s23 + $0x28] sm:$0xf] }
  0x1c   : > { %2139 = vmatprep.subr.bf16.mxu0 %v2342_v2  ;;  %2146 = vmatpush3.bf16.msra.mxu1 %v2384_v4  ;;  %v635_v45 = vor.u32 %v634_v42, %v630_v41  ;;  %v1054_v0 = vshll.u32 %v2002_v62, 16  ;;  %v1052_v7 = vshrl.u32 %v2002_v62, 16  ;;  %v1198_v9 = vshrl.u32 %v2327_v63, 16  ;;  %v2013_v14 = vld [vmem:[%s2403_s23 + $0x2c] sm:$0x1] }
  0x1d   : > { %2147 = vmatprep.mubr.msk.bf16.mxu1 %vm2343_vm1, %v2342_v2  ;;  %2157 = vmatprep.subr.bf16.mxu1 %v2342_v2  ;;  %v845_v55 = vrot.slane %v843_v51, 1  ;;  %v992_v59 = vor.u32 %v991_v57, %v987_v56  ;;  %v1202_v10 = vrot.slane %v1200_v1, 1  ;;  %v2014_v15 = vcombine.low %v2012_v13, %v2013_v14  ;;  %v2329_v16 = vld [vmem:[%s2403_s23 + $0x30] sm:$0x1f]   ;;  %v2005_v19 = vld [vmem:[%s2403_s23 + $0x28] sm:$0xf] }
  0x1e   : > { %v1056_v8 = vrot.slane %v1054_v0, 1  ;;  %v1409_v23 = vshrl.u32 %v2329_v16, 16  ;;  %v2025_v28 = vld [vmem:[%s2403_s23 + $0x34] sm:$0x1]  ;;  %v2331_v30 = vld [vmem:[%s2403_s23 + $0x38] sm:$0x1f]  }
  0x1f   : > { %v846_v58 = vor.u32 %v845_v55, %v841_v54  ;;  %v1203_v12 = vor.u32 %v1202_v10, %v1198_v9  ;;  %v1265_v17 = vshll.u32 %v2014_v15, 16  ;;  %v1263_v20 = vshrl.u32 %v2014_v15, 16  ;;  %v2037_v41 = vld [vmem:[%s2403_s23 + $0x3c] sm:$0x1]  ;;  %v2333_v43 = vld [vmem:[%s2403_s23 + $0x40] sm:$0x1f]  }
  0x20   : > { %v1057_v11 = vor.u32 %v1056_v8, %v1052_v7  ;;  %v1620_v36 = vshrl.u32 %v2331_v30, 16  ;;  %v1831_v49 = vshrl.u32 %v2333_v43, 16  ;;  %v2599_v7 = vld [vmem:[%s2636_s2] ss:$0 sm:$0xff] }
  0x21   : > { %v1267_v22 = vrot.slane %v1265_v17, 1 }
  0x22   : > { %2130 = vmatmul.mubr.msk.bf16.vlgmr.msra.gmra.mrb[4].mxu0 %vm194_vm2, %v1957_v27  ;;  %2148 = vmatmul.mubr.msk.bf16.vlgmr.msra.gmra.mrb[8].mxu1 %vm194_vm2, %v1964_v18  ;;  %v1411_v18 = vshll.u32 %v2329_v16, 16  ;;  %v2024_v27 = vld [vmem:[%s2403_s23 + $0x30] sm:$0xf] }
  0x23   : > { %2140 = vmatpush3.bf16.msra.mxu0 %v2381_v3  ;;  %2141 = vmatprep.mubr.msk.bf16.mxu0 %vm2343_vm1, %v2342_v2  ;;  %v1268_v25 = vor.u32 %v1267_v22, %v1263_v20  ;;  %v2026_v29 = vcombine.low %v2024_v27, %v2025_v28 }
  0x24   : > { %2151 = vmatprep.subr.bf16.mxu0 %v2342_v2  ;;  %2158 = vmatpush3.bf16.msra.mxu1 %v2406_v6  ;;  %v1413_v24 = vrot.slane %v1411_v18, 1 }
  0x25   : > { %2159 = vmatprep.mubr.msk.bf16.mxu1 %vm2343_vm1, %v2342_v2  ;;  %2169 = vmatprep.subr.bf16.mxu1 %v2342_v2  ;;  %v1476_v31 = vshll.u32 %v2026_v29, 16 }
  0x26   : > { %v1414_v26 = vor.u32 %v1413_v24, %v1409_v23 }
  0x27   : > { %v1478_v35 = vrot.slane %v1476_v31, 1 }
  0x2a   : > { %2142 = vmatmul.mubr.msk.bf16.vlgmr.msra.gmra.mrb[8].mxu0 %vm194_vm2, %v424_v32  ;;  %2160 = vmatmul.mubr.msk.bf16.vlgmr.msra.gmra.mrb[12].mxu1 %vm194_vm2, %v570_v33  ;;  %v1622_v32 = vshll.u32 %v2331_v30, 16  ;;  %v2017_v33 = vld [vmem:[%s2403_s23 + $0x30] sm:$0xf] }
  0x2b   : > { %2152 = vmatpush3.bf16.msra.mxu0 %v2422_v21  ;;  %2153 = vmatprep.mubr.msk.bf16.mxu0 %vm2343_vm1, %v2342_v2 }
  0x2c   : > { %2163 = vmatprep.subr.bf16.mxu0 %v2342_v2  ;;  %2170 = vmatpush3.bf16.msra.mxu1 %v2384_v4  ;;  %v1624_v37 = vrot.slane %v1622_v32, 1 }
  0x2d   : > { %2171 = vmatprep.mubr.msk.bf16.mxu1 %vm2343_vm1, %v2342_v2  ;;  %2181 = vmatprep.subr.bf16.mxu1 %v2342_v2 }
  0x2e   : > { %v1625_v39 = vor.u32 %v1624_v37, %v1620_v36 }
  0x32   : > { %2154 = vmatmul.mubr.msk.bf16.vlgmr.msra.gmra.mrb[12].mxu0 %vm194_vm2, %v1969_v40  ;;  %2172 = vmatmul.mubr.msk.bf16.vlgmr.msra.gmra.mrb[16].mxu1 %vm194_vm2, %v1976_v34  ;;  %v1474_v34 = vshrl.u32 %v2026_v29, 16  ;;  %v2036_v40 = vld [vmem:[%s2403_s23 + $0x38] sm:$0xf] }
  0x33   : > { %2164 = vmatpush3.bf16.msra.mxu0 %v2381_v3  ;;  %2165 = vmatprep.mubr.msk.bf16.mxu0 %vm2343_vm1, %v2342_v2  ;;  %v2038_v42 = vcombine.low %v2036_v40, %v2037_v41 }
  0x34   : > { %2175 = vmatprep.subr.bf16.mxu0 %v2342_v2  ;;  %2182 = vmatpush3.bf16.msra.mxu1 %v2406_v6  ;;  %v1479_v38 = vor.u32 %v1478_v35, %v1474_v34 }
  0x35   : > { %2183 = vmatprep.mubr.msk.bf16.mxu1 %vm2343_vm1, %v2342_v2  ;;  %2193 = vmatprep.subr.bf16.mxu1 %v2342_v2  ;;  %v1687_v44 = vshll.u32 %v2038_v42, 16 }
  0x37   : > { %v1689_v48 = vrot.slane %v1687_v44, 1 }
  0x3a   : > { %2166 = vmatmul.mubr.msk.bf16.vlgmr.msra.gmra.mrb[16].mxu0 %vm194_vm2, %v635_v45  ;;  %2184 = vmatmul.mubr.msk.bf16.vlgmr.msra.gmra.mrb[20].mxu1 %vm194_vm2, %v781_v46  ;;  %v1833_v45 = vshll.u32 %v2333_v43, 16  ;;  %v2029_v46 = vld [vmem:[%s2403_s23 + $0x38] sm:$0xf] }
  0x3b   : > { %2176 = vmatpush3.bf16.msra.mxu0 %v2422_v21  ;;  %2177 = vmatprep.mubr.msk.bf16.mxu0 %vm2343_vm1, %v2342_v2 }
  0x3c   : > { %2187 = vmatprep.subr.bf16.mxu0 %v2342_v2  ;;  %2194 = vmatpush3.bf16.msra.mxu1 %v2384_v4  ;;  %v1835_v50 = vrot.slane %v1833_v45, 1 }
  0x3d   : > { %2195 = vmatprep.mubr.msk.bf16.mxu1 %vm2343_vm1, %v2342_v2  ;;  %2205 = vmatprep.subr.bf16.mxu1 %v2342_v2 }
  0x3e   : > { %v1836_v51 = vor.u32 %v1835_v50, %v1831_v49 }
  0x42   : > { %2178 = vmatmul.mubr.msk.bf16.vlgmr.msra.gmra.mrb[20].mxu0 %vm194_vm2, %v1981_v53  ;;  %2196 = vmatmul.mubr.msk.bf16.vlgmr.msra.gmra.mrb[24].mxu1 %vm194_vm2, %v1988_v47  ;;  %v1685_v47 = vshrl.u32 %v2038_v42, 16 }
  0x43   : > { %2188 = vmatpush3.bf16.msra.mxu0 %v2381_v3  ;;  %2189 = vmatprep.mubr.msk.bf16.mxu0 %vm2343_vm1, %v2342_v2 }
  0x44   : > { %2199 = vmatprep.subr.bf16.mxu0 %v2342_v2  ;;  %2206 = vmatpush3.bf16.msra.mxu1 %v2406_v6 }
  0x45   : > { %2207 = vmatprep.mubr.msk.bf16.mxu1 %vm2343_vm1, %v2342_v2  ;;  %2217 = vmatprep.subr.bf16.mxu1 %v2342_v2 }
  0x4a   : > { %2190 = vmatmul.mubr.msk.bf16.vlgmr.msra.gmra.mrb[24].mxu0 %vm194_vm2, %v846_v58  ;;  %2208 = vmatmul.mubr.msk.bf16.vlgmr.msra.gmra.mrb[28].mxu1 %vm194_vm2, %v992_v59 }
  0x4b   : > { %2200 = vmatpush3.bf16.msra.mxu0 %v2422_v21  ;;  %2201 = vmatprep.mubr.msk.bf16.mxu0 %vm2343_vm1, %v2342_v2 }
  0x4c   : > { %2211 = vmatprep.subr.bf16.mxu0 %v2342_v2  ;;  %2218 = vmatpush3.bf16.msra.mxu1 %v2384_v4 }
  0x4d   : > { %2219 = vmatprep.mubr.msk.bf16.mxu1 %vm2343_vm1, %v2342_v2  ;;  %2229 = vmatprep.subr.bf16.mxu1 %v2342_v2 }
  0x52   : > { %2202 = vmatmul.mubr.msk.bf16.vlgmr.msra.gmra.mrb[28].mxu0 %vm194_vm2, %v1993_v5  ;;  %2220 = vmatmul.mubr.msk.bf16.vlgmr.msra.gmra.mrb[32].mxu1 %vm194_vm2, %v2000_v60 }
  0x53   : > { %2212 = vmatpush3.bf16.msra.mxu0 %v2381_v3  ;;  %2213 = vmatprep.mubr.msk.bf16.mxu0 %vm2343_vm1, %v2342_v2 }
  0x54   : > { %2223 = vmatprep.subr.bf16.mxu0 %v2342_v2  ;;  %2230 = vmatpush3.bf16.msra.mxu1 %v2406_v6 }
  0x55   : > { %2231 = vmatprep.mubr.msk.bf16.mxu1 %vm2343_vm1, %v2342_v2  ;;  %2241 = vmatprep.subr.bf16.mxu1 %v2342_v2 }
  0x5a   : > { %2214 = vmatmul.mubr.msk.bf16.vlgmr.msra.gmra.mrb[32].mxu0 %vm194_vm2, %v1057_v11  ;;  %2232 = vmatmul.mubr.msk.bf16.vlgmr.msra.gmra.mrb[36].mxu1 %vm194_vm2, %v1203_v12 }
  0x5b   : > { %2224 = vmatpush3.bf16.msra.mxu0 %v2422_v21  ;;  %2225 = vmatprep.mubr.msk.bf16.mxu0 %vm2343_vm1, %v2342_v2 }
  0x5c   : > { %2235 = vmatprep.subr.bf16.mxu0 %v2342_v2  ;;  %2242 = vmatpush3.bf16.msra.mxu1 %v2384_v4 }
  0x5d   : > { %2243 = vmatprep.mubr.msk.bf16.mxu1 %vm2343_vm1, %v2342_v2  ;;  %2253 = vmatprep.subr.bf16.mxu1 %v2342_v2 }
  0x62   : > { %2226 = vmatmul.mubr.msk.bf16.vlgmr.msra.gmra.mrb[36].mxu0 %vm194_vm2, %v2005_v19  ;;  %2244 = vmatmul.mubr.msk.bf16.vlgmr.msra.gmra.mrb[40].mxu1 %vm194_vm2, %v2012_v13 }
  0x63   : > { %2236 = vmatpush3.bf16.msra.mxu0 %v2381_v3  ;;  %2237 = vmatprep.mubr.msk.bf16.mxu0 %vm2343_vm1, %v2342_v2 }
  0x64   : > { %2247 = vmatprep.subr.bf16.mxu0 %v2342_v2  ;;  %2254 = vmatpush3.bf16.msra.mxu1 %v2406_v6 }
  0x65   : > { %2255 = vmatprep.mubr.msk.bf16.mxu1 %vm2343_vm1, %v2342_v2  ;;  %2265 = vmatprep.subr.bf16.mxu1 %v2342_v2 }
  0x6a   : > { %2238 = vmatmul.mubr.msk.bf16.vlgmr.msra.gmra.mrb[40].mxu0 %vm194_vm2, %v1268_v25  ;;  %2256 = vmatmul.mubr.msk.bf16.vlgmr.msra.gmra.mrb[44].mxu1 %vm194_vm2, %v1414_v26 }
  0x6b   : > { %2248 = vmatpush3.bf16.msra.mxu0 %v2422_v21  ;;  %2249 = vmatprep.mubr.msk.bf16.mxu0 %vm2343_vm1, %v2342_v2 }
  0x6c   : > { %2259 = vmatprep.subr.bf16.mxu0 %v2342_v2  ;;  %2266 = vmatpush3.bf16.msra.mxu1 %v2384_v4 }
  0x6d   : > { %2267 = vmatprep.mubr.msk.bf16.mxu1 %vm2343_vm1, %v2342_v2  ;;  %2277 = vmatprep.subr.bf16.mxu1 %v2342_v2 }
  0x72   : > { %2250 = vmatmul.mubr.msk.bf16.vlgmr.msra.gmra.mrb[44].mxu0 %vm194_vm2, %v2017_v33  ;;  %2268 = vmatmul.mubr.msk.bf16.vlgmr.msra.gmra.mrb[48].mxu1 %vm194_vm2, %v2024_v27 }
  0x73   : > { %2260 = vmatpush3.bf16.msra.mxu0 %v2381_v3  ;;  %2261 = vmatprep.mubr.msk.bf16.mxu0 %vm2343_vm1, %v2342_v2 }
  0x74   : > { %2271 = vmatprep.subr.bf16.mxu0 %v2342_v2  ;;  %2278 = vmatpush3.bf16.msra.mxu1 %v2406_v6 }
  0x75   : > { %2279 = vmatprep.mubr.msk.bf16.mxu1 %vm2343_vm1, %v2342_v2  ;;  %2289 = vmatprep.subr.bf16.mxu1 %v2342_v2 }
  0x7a   : > { %2262 = vmatmul.mubr.msk.bf16.vlgmr.msra.gmra.mrb[48].mxu0 %vm194_vm2, %v1479_v38  ;;  %2280 = vmatmul.mubr.msk.bf16.vlgmr.msra.gmra.mrb[52].mxu1 %vm194_vm2, %v1625_v39 }
  0x7b   : > { %2272 = vmatpush3.bf16.msra.mxu0 %v2422_v21  ;;  %2273 = vmatprep.mubr.msk.bf16.mxu0 %vm2343_vm1, %v2342_v2 }
  0x7c   : > { %2283 = vmatprep.subr.bf16.mxu0 %v2342_v2  ;;  %2290 = vmatpush3.bf16.msra.mxu1 %v2384_v4  ;;  %v1690_v4 = vor.u32 %v1689_v48, %v1685_v47 }
  0x7d   : > { %2291 = vmatprep.mubr.msk.bf16.mxu1 %vm2343_vm1, %v2342_v2  ;;  %2301 = vmatprep.subr.bf16.mxu1 %v2342_v2 }
  0x82   : > { %2274 = vmatmul.mubr.msk.bf16.vlgmr.msra.gmra.mrb[52].mxu0 %vm194_vm2, %v2029_v46  ;;  %2292 = vmatmul.mubr.msk.bf16.vlgmr.msra.gmra.mrb[56].mxu1 %vm194_vm2, %v2036_v40 }
  0x83   : > { %2284 = vmatpush3.bf16.msra.mxu0 %v2381_v3  ;;  %2285 = vmatprep.mubr.msk.bf16.mxu0 %vm2343_vm1, %v2342_v2  ;;  %v2041_v3 = vld [vmem:[%s2403_s23 + $0x40] sm:$0xf] }
  0x84   : > { %2295 = vmatprep.subr.bf16.mxu0 %v2342_v2  ;;  %2302 = vmatpush3.bf16.msra.mxu1 %v2406_v6 }
  0x85   : > { %2303 = vmatprep.mubr.msk.bf16.mxu1 %vm2343_vm1, %v2342_v2 }
  0x8a   : > { %2286 = vmatmul.mubr.msk.bf16.vlgmr.msra.gmra.mrb[56].mxu0 %vm194_vm2, %v1690_v4  ;;  %2304 = vmatmul.mubr.msk.bf16.vlgmr.msra.gmra.mrb[60].mxu1 %vm194_vm2, %v1836_v51 }
  0x8b   : > { %2296 = vmatpush3.bf16.msra.mxu0 %v2422_v21  ;;  %2297 = vmatprep.mubr.msk.bf16.mxu0 %vm2343_vm1, %v2342_v2 }
  0x92   : > { %2298 = vmatmul.mubr.msk.bf16.vlgmr.msra.gmra.mrb[60].mxu0 %vm194_vm2, %v2041_v3 }
  0xe5   : > { %v282_v52 = vpop.f32.mrb[0].mxu1 }
  0xe6   : > { %v2125_v53 = vpop.f32.mrb[1].mxu1 }
  0xe7   : > { %v285_v6 = vpop.f32.mrb[2].mxu1 }
  0xe8   : > { %v2126_v54 = vpop.f32.mrb[3].mxu1 }
  0xed   : > { %v236_v55 = vpop.f32.mrb[0].mxu0  ;;  %v391_v56 = vpop.f32.mrb[4].mxu1 }
  0xee   : > { %v283_v57 = vadd.f32 %v282_v52, %v236_v55  ;;  %v2119_v58 = vpop.f32.mrb[1].mxu0  ;;  %v2137_v59 = vpop.f32.mrb[5].mxu1 }
  0xef   : > { %v239_v60 = vpop.f32.mrb[2].mxu0  ;;  %v394_v61 = vpop.f32.mrb[6].mxu1 }
  0xf0   : > { %v2120_v62 = vpop.f32.mrb[3].mxu0  ;;  %v2138_v21 = vpop.f32.mrb[7].mxu1 }
  0xf5   : > { %v330_v63 = vpop.f32.mrb[4].mxu0  ;;  %v505_v0 = vpop.f32.mrb[8].mxu1 }
  0xf6   : > { %v336_v2 = vadd.f32 %v330_v63, %v283_v57  ;;  %v2131_v1 = vpop.f32.mrb[5].mxu0  ;;  %v2149_v5 = vpop.f32.mrb[9].mxu1 }
  0xf7   : > { %v333_v8 = vpop.f32.mrb[6].mxu0  ;;  %v508_v9 = vpop.f32.mrb[10].mxu1 }
  0xf8   : > { %v397_v10 = vadd.f32 %v391_v56, %v336_v2  ;;  %v2132_v11 = vpop.f32.mrb[7].mxu0  ;;  %v2150_v12 = vpop.f32.mrb[11].mxu1 }
  0xfa   : > { %v404_v13 = vadd.f32 %v2599_v7, %v397_v10 }
  0xfc   : > { %vm405_vm3 = vcmp.ge.f32.partialorder %v404_v13, 0.0  ;;  %v406_v14 = vmul.f32 0.1, %v404_v13 }
  0xfd   : > { %v462_v15 = vpop.f32.mrb[8].mxu0  ;;  %v608_v16 = vpop.f32.mrb[12].mxu1 }
  0xfe   : > { %v407_v17 = vsel %vm405_vm3, %v404_v13, %v406_v14  ;;  %v506_v18 = vadd.f32 %v505_v0, %v462_v15  ;;  %v2143_v19 = vpop.f32.mrb[9].mxu0  ;;  %v2161_v20 = vpop.f32.mrb[13].mxu1 }
  0xff   : > { %v408_v22 = vpack.c.bf16 %v407_v17, %v407_v17  ;;  %v465_v23 = vpop.f32.mrb[10].mxu0  ;;  %v611_v24 = vpop.f32.mrb[14].mxu1 }
 0x100   : > { %v2144_v25 = vpop.f32.mrb[11].mxu0  ;;  %v2162_v26 = vpop.f32.mrb[15].mxu1 }
 0x101   : > { %410 = vst.msk [vmem:[%s2606_s4] sm:$0xf] %vm409_vm4, %v408_v22 }
 0x105   : > { %v550_v27 = vpop.f32.mrb[12].mxu0  ;;  %v716_v28 = vpop.f32.mrb[16].mxu1 }
 0x106   : > { %v556_v29 = vadd.f32 %v550_v27, %v506_v18  ;;  %v2155_v30 = vpop.f32.mrb[13].mxu0  ;;  %v2173_v31 = vpop.f32.mrb[17].mxu1 }
 0x107   : > { %v553_v32 = vpop.f32.mrb[14].mxu0  ;;  %v719_v33 = vpop.f32.mrb[18].mxu1 }
 0x108   : > { %v614_v34 = vadd.f32 %v608_v16, %v556_v29  ;;  %v2156_v35 = vpop.f32.mrb[15].mxu0  ;;  %v2174_v36 = vpop.f32.mrb[19].mxu1 }
 0x10a   : > { %v615_v37 = vadd.f32 %v2599_v7, %v614_v34 }
 0x10c   : > { %vm616_vm5 = vcmp.ge.f32.partialorder %v615_v37, 0.0  ;;  %v617_v38 = vmul.f32 0.1, %v615_v37 }
 0x10d   : > { %v673_v39 = vpop.f32.mrb[16].mxu0  ;;  %v819_v40 = vpop.f32.mrb[20].mxu1 }
 0x10e   : > { %v618_v41 = vsel %vm616_vm5, %v615_v37, %v617_v38  ;;  %v717_v42 = vadd.f32 %v716_v28, %v673_v39  ;;  %v2167_v43 = vpop.f32.mrb[17].mxu0  ;;  %v2185_v44 = vpop.f32.mrb[21].mxu1 }
 0x10f   : > { %v619_v45 = vpack.c.bf16 %v618_v41, %v618_v41  ;;  %v676_v46 = vpop.f32.mrb[18].mxu0  ;;  %v822_v47 = vpop.f32.mrb[22].mxu1 }
 0x110   : > { %v2168_v48 = vpop.f32.mrb[19].mxu0  ;;  %v2186_v49 = vpop.f32.mrb[23].mxu1 }
 0x111   : > { %1975 = vst.msk [vmem:[%s2606_s4 + $0x4] sm:$0xf] %vm409_vm4, %v619_v45 }
 0x115   : > { %v761_v50 = vpop.f32.mrb[20].mxu0  ;;  %v927_v4 = vpop.f32.mrb[24].mxu1 }
 0x116   : > { %v767_v51 = vadd.f32 %v761_v50, %v717_v42  ;;  %v2179_v3 = vpop.f32.mrb[21].mxu0  ;;  %v2197_v52 = vpop.f32.mrb[25].mxu1 }
 0x117   : > { %v764_v53 = vpop.f32.mrb[22].mxu0  ;;  %v930_v6 = vpop.f32.mrb[26].mxu1 }
 0x118   : > { %v825_v54 = vadd.f32 %v819_v40, %v767_v51  ;;  %v2180_v55 = vpop.f32.mrb[23].mxu0  ;;  %v2198_v56 = vpop.f32.mrb[27].mxu1 }
 0x11a   : > { %v826_v57 = vadd.f32 %v2599_v7, %v825_v54 }
 0x11c   : > { %vm827_vm6 = vcmp.ge.f32.partialorder %v826_v57, 0.0  ;;  %v828_v58 = vmul.f32 0.1, %v826_v57 }
 0x11d   : > { %v884_v59 = vpop.f32.mrb[24].mxu0  ;;  %v1030_v60 = vpop.f32.mrb[28].mxu1 }
 0x11e   : > { %v829_v61 = vsel %vm827_vm6, %v826_v57, %v828_v58  ;;  %v928_v62 = vadd.f32 %v927_v4, %v884_v59  ;;  %v2191_v21 = vpop.f32.mrb[25].mxu0  ;;  %v2209_v63 = vpop.f32.mrb[29].mxu1 }
 0x11f   : > { %v830_v0 = vpack.c.bf16 %v829_v61, %v829_v61  ;;  %v887_v2 = vpop.f32.mrb[26].mxu0  ;;  %v1033_v1 = vpop.f32.mrb[30].mxu1 }
 0x120   : > { %v2192_v5 = vpop.f32.mrb[27].mxu0  ;;  %v2210_v8 = vpop.f32.mrb[31].mxu1 }
 0x121   : > { %1987 = vst.msk [vmem:[%s2606_s4 + $0x8] sm:$0xf] %vm409_vm4, %v830_v0 }
 0x125   : > { %v972_v9 = vpop.f32.mrb[28].mxu0  ;;  %v1138_v10 = vpop.f32.mrb[32].mxu1 }
 0x126   : > { %v978_v11 = vadd.f32 %v972_v9, %v928_v62  ;;  %v2203_v12 = vpop.f32.mrb[29].mxu0  ;;  %v2221_v13 = vpop.f32.mrb[33].mxu1 }
 0x127   : > { %v975_v14 = vpop.f32.mrb[30].mxu0  ;;  %v1141_v15 = vpop.f32.mrb[34].mxu1 }
 0x128   : > { %v1036_v16 = vadd.f32 %v1030_v60, %v978_v11  ;;  %v2204_v17 = vpop.f32.mrb[31].mxu0  ;;  %v2222_v18 = vpop.f32.mrb[35].mxu1 }
 0x12a   : > { %v1037_v19 = vadd.f32 %v2599_v7, %v1036_v16 }
 0x12c   : > { %vm1038_vm7 = vcmp.ge.f32.partialorder %v1037_v19, 0.0  ;;  %v1039_v20 = vmul.f32 0.1, %v1037_v19 }
 0x12d   : > { %v1095_v22 = vpop.f32.mrb[32].mxu0  ;;  %v1241_v23 = vpop.f32.mrb[36].mxu1 }
 0x12e   : > { %v1040_v24 = vsel %vm1038_vm7, %v1037_v19, %v1039_v20  ;;  %v1139_v25 = vadd.f32 %v1138_v10, %v1095_v22  ;;  %v2215_v26 = vpop.f32.mrb[33].mxu0  ;;  %v2233_v27 = vpop.f32.mrb[37].mxu1 }
 0x12f   : > { %v1041_v28 = vpack.c.bf16 %v1040_v24, %v1040_v24  ;;  %v1098_v29 = vpop.f32.mrb[34].mxu0  ;;  %v1244_v30 = vpop.f32.mrb[38].mxu1 }
 0x130   : > { %v2216_v31 = vpop.f32.mrb[35].mxu0  ;;  %v2234_v32 = vpop.f32.mrb[39].mxu1 }
 0x131   : > { %1999 = vst.msk [vmem:[%s2606_s4 + $0xc] sm:$0xf] %vm409_vm4, %v1041_v28 }
 0x135   : > { %v1183_v33 = vpop.f32.mrb[36].mxu0  ;;  %v1349_v34 = vpop.f32.mrb[40].mxu1 }
 0x136   : > { %v1189_v35 = vadd.f32 %v1183_v33, %v1139_v25  ;;  %v2227_v36 = vpop.f32.mrb[37].mxu0  ;;  %v2245_v37 = vpop.f32.mrb[41].mxu1 }
 0x137   : > { %v1186_v38 = vpop.f32.mrb[38].mxu0  ;;  %v1352_v39 = vpop.f32.mrb[42].mxu1 }
 0x138   : > { %v1247_v40 = vadd.f32 %v1241_v23, %v1189_v35  ;;  %v2228_v41 = vpop.f32.mrb[39].mxu0  ;;  %v2246_v42 = vpop.f32.mrb[43].mxu1 }
 0x13a   : > { %v1248_v43 = vadd.f32 %v2599_v7, %v1247_v40 }
 0x13c   : > { %vm1249_vm8 = vcmp.ge.f32.partialorder %v1248_v43, 0.0  ;;  %v1250_v44 = vmul.f32 0.1, %v1248_v43 }
 0x13d   : > { %v1306_v45 = vpop.f32.mrb[40].mxu0  ;;  %v1452_v46 = vpop.f32.mrb[44].mxu1 }
 0x13e   : > { %v1251_v47 = vsel %vm1249_vm8, %v1248_v43, %v1250_v44  ;;  %v1350_v48 = vadd.f32 %v1349_v34, %v1306_v45  ;;  %v2239_v49 = vpop.f32.mrb[41].mxu0  ;;  %v2257_v50 = vpop.f32.mrb[45].mxu1 }
 0x13f   : > { %v1252_v4 = vpack.c.bf16 %v1251_v47, %v1251_v47  ;;  %v1309_v51 = vpop.f32.mrb[42].mxu0  ;;  %v1455_v3 = vpop.f32.mrb[46].mxu1 }
 0x140   : > { %v2240_v52 = vpop.f32.mrb[43].mxu0  ;;  %v2258_v53 = vpop.f32.mrb[47].mxu1 }
 0x141   : > { %2011 = vst.msk [vmem:[%s2606_s4 + $0x10] sm:$0xf] %vm409_vm4, %v1252_v4 }
 0x145   : > { %v1394_v6 = vpop.f32.mrb[44].mxu0  ;;  %v1560_v54 = vpop.f32.mrb[48].mxu1 }
 0x146   : > { %v1400_v55 = vadd.f32 %v1394_v6, %v1350_v48  ;;  %v2251_v56 = vpop.f32.mrb[45].mxu0  ;;  %v2269_v57 = vpop.f32.mrb[49].mxu1 }
 0x147   : > { %v1397_v58 = vpop.f32.mrb[46].mxu0  ;;  %v1563_v59 = vpop.f32.mrb[50].mxu1 }
 0x148   : > { %v1458_v60 = vadd.f32 %v1452_v46, %v1400_v55  ;;  %v2252_v61 = vpop.f32.mrb[47].mxu0  ;;  %v2270_v62 = vpop.f32.mrb[51].mxu1 }
 0x14a   : > { %v1459_v21 = vadd.f32 %v2599_v7, %v1458_v60 }
 0x14c   : > { %vm1460_vm9 = vcmp.ge.f32.partialorder %v1459_v21, 0.0  ;;  %v1461_v63 = vmul.f32 0.1, %v1459_v21 }
 0x14d   : > { %v1517_v0 = vpop.f32.mrb[48].mxu0  ;;  %v1663_v2 = vpop.f32.mrb[52].mxu1 }
 0x14e   : > { %v1462_v1 = vsel %vm1460_vm9, %v1459_v21, %v1461_v63  ;;  %v1561_v5 = vadd.f32 %v1560_v54, %v1517_v0  ;;  %v2263_v8 = vpop.f32.mrb[49].mxu0  ;;  %v2281_v9 = vpop.f32.mrb[53].mxu1 }
 0x14f   : > { %v1463_v10 = vpack.c.bf16 %v1462_v1, %v1462_v1  ;;  %v1520_v11 = vpop.f32.mrb[50].mxu0  ;;  %v1666_v12 = vpop.f32.mrb[54].mxu1 }
 0x150   : > { %v2264_v13 = vpop.f32.mrb[51].mxu0  ;;  %v2282_v14 = vpop.f32.mrb[55].mxu1 }
 0x151   : > { %2023 = vst.msk [vmem:[%s2606_s4 + $0x14] sm:$0xf] %vm409_vm4, %v1463_v10 }
 0x155   : > { %v1605_v15 = vpop.f32.mrb[52].mxu0  ;;  %v1771_v16 = vpop.f32.mrb[56].mxu1 }
 0x156   : > { %v1611_v17 = vadd.f32 %v1605_v15, %v1561_v5  ;;  %v2275_v18 = vpop.f32.mrb[53].mxu0  ;;  %v2293_v19 = vpop.f32.mrb[57].mxu1 }
 0x157   : > { %v1608_v20 = vpop.f32.mrb[54].mxu0  ;;  %v1774_v22 = vpop.f32.mrb[58].mxu1 }
 0x158   : > { %v1669_v23 = vadd.f32 %v1663_v2, %v1611_v17  ;;  %v2276_v24 = vpop.f32.mrb[55].mxu0  ;;  %v2294_v25 = vpop.f32.mrb[59].mxu1 }
 0x15a   : > { %v1670_v26 = vadd.f32 %v2599_v7, %v1669_v23 }
 0x15c   : > { %vm1671_vm10 = vcmp.ge.f32.partialorder %v1670_v26, 0.0  ;;  %v1672_v27 = vmul.f32 0.1, %v1670_v26 }
 0x15d   : > { %v1728_v28 = vpop.f32.mrb[56].mxu0  ;;  %v1874_v29 = vpop.f32.mrb[60].mxu1 }
 0x15e   : > { %v1673_v30 = vsel %vm1671_vm10, %v1670_v26, %v1672_v27  ;;  %v1772_v31 = vadd.f32 %v1771_v16, %v1728_v28  ;;  %v2287_v32 = vpop.f32.mrb[57].mxu0  ;;  %v2305_v33 = vpop.f32.mrb[61].mxu1 }
 0x15f   : > { %v1674_v34 = vpack.c.bf16 %v1673_v30, %v1673_v30  ;;  %v1731_v35 = vpop.f32.mrb[58].mxu0  ;;  %v1877_v36 = vpop.f32.mrb[62].mxu1 }
 0x160   : > { %v2288_v37 = vpop.f32.mrb[59].mxu0  ;;  %v2306_v38 = vpop.f32.mrb[63].mxu1 }
 0x161   : > { %2035 = vst.msk [vmem:[%s2606_s4 + $0x18] sm:$0xf] %vm409_vm4, %v1674_v34 }
 0x165   : > { %v1816_v39 = vpop.f32.mrb[60].mxu0 }
 0x166   : > { %v1822_v40 = vadd.f32 %v1816_v39, %v1772_v31  ;;  %v2299_v41 = vpop.f32.mrb[61].mxu0 }
 0x167   : > { %v1819_v42 = vpop.f32.mrb[62].mxu0 }
 0x168   : > { %v1880_v43 = vadd.f32 %v1874_v29, %v1822_v40  ;;  %v2300_v44 = vpop.f32.mrb[63].mxu0 }
 0x16a   : > { %v1881_v45 = vadd.f32 %v2599_v7, %v1880_v43 }
 0x16c   : > { %vm1882_vm11 = vcmp.ge.f32.partialorder %v1881_v45, 0.0  ;;  %v1883_v46 = vmul.f32 0.1, %v1881_v45 }
 0x16e   : > { %v1884_v47 = vsel %vm1882_vm11, %v1881_v45, %v1883_v46 }
 0x16f   : > { %v1885_v48 = vpack.c.bf16 %v1884_v47, %v1884_v47 }
 0x171   : > { %2047 = vst.msk [vmem:[%s2606_s4 + $0x1c] sm:$0xf] %vm409_vm4, %v1885_v48 }
 0x172 PF: > { %s13_s12 = sadd.s32 1, %s2340_s12  }
 0x173   : > { %p10_p4 = scmp.ge.s32.totalorder %s13_s12, 4  }
 0x175   :  { %12 = sbr.rel (!%p10_p4) target bundleno = 1 (0x1), region = 80 }

// kernel: context_detail_forward.5
= control target key start
LH: loop header
LB: loop body
LE: loop exit
PB: predicated region body
PF: predicated region fallthrough
CT: control target
= control target key end

     0   :  { %s4762_s12 = smov 0   ;;  %s5302_s0 = inlined_call_operand.vmem [shape: bf16[2,2,2,9,9,4], index: 0, kind: input, shape index: {}]   ;;  %s5303_s1 = inlined_call_operand.vmem [shape: bf16[9,4,8], index: 1, kind: input, shape index: {}]   ;;  %s5304_s2 = inlined_call_operand.vmem [shape: f32[1,8], index: 2, kind: input, shape index: {}]   ;;  %s5305_s3 = inlined_call_operand.vmem [shape: bf16[2,8,8,8], index: 3, kind: output, shape index: {}]  }
   0x1 LB: > { %s3905_s13 = sadd.s32 4294967295, %s4738_s12   ;;  %p3909_p0 = scmp.ge.s32.totalorder %s4738_s12, 1  ;;  %s4738_s12 = sphi %s4762_s12, %s13_s12  }
   0x2   : > { %p137_p1 = scmp.lt.s32.totalorder %s4738_s12, 3 }
   0x4   : > { %p138_p2 = pnand %p3909_p0, %p137_p1 }
   0x5   : > { %v3913_v0 = vld [vmem:[%s5303_s1 + $0x2] sm:$0x3] (!%p138_p2)  ;;  %vm197_vm0 = vcmask (!%p138_p2), 1041408   ;;  %v172_v1 = vld [vmem:[%s5303_s1] sm:$0x3] (!%p138_p2)  ;;  %v4740_v2 = vmov (!%p138_p2), 0.0  }
   0x6   : > { %141 = sbr.rel (%p138_p2) target bundleno = 522 (0x20a), region = 32  ;;  %4265 = vmatprep.subr.bf16.mxu0 (!%p138_p2), %v4740_v2  ;;  %v4778_v3 = vsel (!%p138_p2), %vm197_vm0, %v3913_v0, 0  ;;  %4271 = vmatprep.subr.bf16.mxu1 (!%p138_p2), %v4740_v2  ;;  %v4782_v4 = vsel (!%p138_p2), %vm197_vm0, %v172_v1, 0  ;;  %p161_p3 = scmp.lt.s32.totalorder (!%p138_p2), %s3905_s13, 1  ;;  %vm4741_vm1 = vmmov (!%p138_p2), 0   ;;  %vm193_vm2 = vcmask (!%p138_p2), 31744  }
   0x7   : > { %4266 = vmatpush3.bf16.msra.mxu0 (!%p138_p2), %v4778_v3  ;;  %4272 = vmatpush3.bf16.msra.mxu1 (!%p138_p2), %v4782_v4  ;;  %v3914_v5 = vld [vmem:[%s5303_s1 + $0x4] sm:$0x3] (!%p138_p2)  ;;  %v3915_v6 = vld [vmem:[%s5303_s1 + $0x6] sm:$0x3] (!%p138_p2)  ;;  %v3916_v14 = vld [vmem:[%s5303_s1 + $0x8] sm:$0x3] (!%p138_p2) }
   0x8   : > { %4267 = vmatprep.mubr.msk.bf16.mxu0 (!%p138_p2), %vm4741_vm1, %v4740_v2  ;;  %4273 = vmatprep.mubr.msk.bf16.mxu1 (!%p138_p2), %vm4741_vm1, %v4740_v2  ;;  %v4807_v7 = vsel (!%p138_p2), %vm197_vm0, %v3914_v5, 0  ;;  %v4810_v8 = vsel (!%p138_p2), %vm197_vm0, %v3915_v6, 0  ;;  %v3917_v16 = vld [vmem:[%s5303_s1 + $0xa] sm:$0x3] (!%p138_p2)  ;;  %v4834_v21 = vsel (!%p138_p2), %vm197_vm0, %v3916_v14, 0  ;;  %vm677_vm4 = vcmask (!%p138_p2), 60416  }
   0x9   : > { %4277 = vmatprep.subr.bf16.mxu0 (!%p138_p2), %v4740_v2  ;;  %4283 = vmatprep.subr.bf16.mxu1 (!%p138_p2), %v4740_v2  ;;  %v4837_v22 = vsel (!%p138_p2), %vm197_vm0, %v3917_v16, 0  ;;  %v3918_v25 = vld [vmem:[%s5303_s1 + $0xc] sm:$0x3] (!%p138_p2)  ;;  %v3919_v26 = vld [vmem:[%s5303_s1 + $0xe] sm:$0x3] (!%p138_p2) }
   0xa   : > { %v4857_v29 = vsel (!%p138_p2), %vm197_vm0, %v3918_v25, 0  ;;  %v4860_v30 = vsel (!%p138_p2), %vm197_vm0, %v3919_v26, 0  ;;  %v3920_v32 = vld [vmem:[%s5303_s1 + $0x10] sm:$0x3] (!%p138_p2) }
   0xb   : > { %v4879_v36 = vsel (!%p138_p2), %vm197_vm0, %v3920_v32, 0 }
   0xd   : > { %s5307_s13 = smov (!%p161_p3, %s3905_s13), 1 }
   0xe   : > { %s4697_s22 = smul.u32 288, %s5307_s13  ;;  %s4120_s11 = sshll.u32 %s5307_s13, 5 }
   0xf   : > { %s5231_s16 = scalar_lea.vmem %s5305_s3, %s4120_s11 }
  0x10   : > { %s4804_s25 = scalar_lea.vmem %s5302_s0, %s4697_s22 }
  0x11   : > { %v3921_v9 = vld [vmem:[%s4804_s25 + $0x48] sm:$0xf]  ;;  %v190_v10 = vld [vmem:[%s4804_s25] sm:$0xf]  ;;  %v4709_v15 = vld [vmem:[%s4804_s25 + $0x90] sm:$0x1f]  }
  0x12   : > { %4268 = vmatmul.mubr.msk.bf16.vlgmr.msra.gmra.mrb[0].mxu0 %vm193_vm2, %v3921_v9  ;;  %4274 = vmatmul.mubr.msk.bf16.vlgmr.msra.gmra.mrb[0].mxu1 %vm193_vm2, %v190_v10  ;;  %v4708_v11 = vld [vmem:[%s4804_s25] sm:$0x1f]   ;;  %v456_v18 = vshll.u32 %v4709_v15, 16  ;;  %v3926_v19 = vld [vmem:[%s4804_s25 + $0x90] sm:$0xf]  ;;  %v454_v23 = vshrl.u32 %v4709_v15, 16 }
  0x13   : > { %4278 = vmatpush3.bf16.msra.mxu0 %v4807_v7  ;;  %4284 = vmatpush3.bf16.msra.mxu1 %v4810_v8  ;;  %v295_v12 = vshrl.u32 %v4708_v11, 16  ;;  %v297_v13 = vshll.u32 %v4708_v11, 16  ;;  %v3928_v28 = vld [vmem:[%s4804_s25 + $0xd8] sm:$0xf]  ;;  %v4710_v31 = vld [vmem:[%s4804_s25 + $0x8] sm:$0x1f]  }
  0x14   : > { %4279 = vmatprep.mubr.msk.bf16.mxu0 %vm4741_vm1, %v4740_v2  ;;  %4285 = vmatprep.mubr.msk.bf16.mxu1 %vm4741_vm1, %v4740_v2  ;;  %v458_v24 = vrot.slane %v456_v18, 1  ;;  %v615_v33 = vshll.u32 %v4710_v31, 16  ;;  %v3934_v34 = vld [vmem:[%s4804_s25 + $0x8] sm:$0xf]  ;;  %v3936_v35 = vld [vmem:[%s4804_s25 + $0x50] sm:$0xf] }
  0x15   : > { %4289 = vmatprep.subr.bf16.mxu0 %v4740_v2  ;;  %4295 = vmatprep.subr.bf16.mxu1 %v4740_v2  ;;  %v299_v17 = vrot.slane %v297_v13, 1  ;;  %v4711_v37 = vld [vmem:[%s4804_s25 + $0x8] sm:$0x1f]   ;;  %v613_v38 = vshrl.u32 %v4710_v31, 16  ;;  %v3944_v42 = vld [vmem:[%s4804_s25 + $0x50] sm:$0xf] }
  0x16   : > { %v459_v27 = vor.u32 %v458_v24, %v454_v23  ;;  %v617_v39 = vrot.slane %v615_v33, 1  ;;  %v777_v41 = vshll.u32 %v4711_v37, 16  ;;  %v775_v43 = vshrl.u32 %v4711_v37, 16  ;;  %v3943_v45 = vld [vmem:[%s4804_s25 + $0x8] sm:$0xf] }
  0x17   : > { %v300_v20 = vor.u32 %v299_v17, %v295_v12  ;;  %v4712_v47 = vld [vmem:[%s4804_s25 + $0x98] sm:$0x1f]   ;;  %v3953_v50 = vld [vmem:[%s4804_s25 + $0xe0] sm:$0xf]  ;;  %v4713_v53 = vld [vmem:[%s4804_s25 + $0x10] sm:$0x1f]  }
  0x18   : > { %v618_v40 = vor.u32 %v617_v39, %v613_v38  ;;  %v779_v44 = vrot.slane %v777_v41, 1  ;;  %v927_v48 = vshll.u32 %v4712_v47, 16  ;;  %v3951_v49 = vld [vmem:[%s4804_s25 + $0x98] sm:$0xf]  ;;  %v925_v51 = vshrl.u32 %v4712_v47, 16 }
  0x19   : > { %v1077_v55 = vshll.u32 %v4713_v53, 16  ;;  %v3959_v56 = vld [vmem:[%s4804_s25 + $0x10] sm:$0xf]  ;;  %v1075_v57 = vshrl.u32 %v4713_v53, 16  ;;  %v3961_v60 = vld [vmem:[%s4804_s25 + $0x58] sm:$0xf] }
  0x1a   : > { %4280 = vmatmul.mubr.msk.bf16.vlgmr.msra.gmra.mrb[4].mxu0 %vm193_vm2, %v300_v20  ;;  %4286 = vmatmul.mubr.msk.bf16.vlgmr.msra.gmra.mrb[4].mxu1 %vm193_vm2, %v3926_v19  ;;  %v780_v46 = vor.u32 %v779_v44, %v775_v43  ;;  %v929_v52 = vrot.slane %v927_v48, 1  ;;  %v4714_v61 = vld [vmem:[%s4804_s25 + $0x10] sm:$0x1f]   ;;  %v3969_v63 = vld [vmem:[%s4804_s25 + $0x58] sm:$0xf] }
  0x1b   : > { %4290 = vmatpush3.bf16.msra.mxu0 %v4834_v21  ;;  %4296 = vmatpush3.bf16.msra.mxu1 %v4837_v22  ;;  %v1079_v58 = vrot.slane %v1077_v55, 1  ;;  %v1230_v62 = vshll.u32 %v4714_v61, 16  ;;  %v3968_v0 = vld [vmem:[%s4804_s25 + $0x10] sm:$0xf]  ;;  %v1228_v1 = vshrl.u32 %v4714_v61, 16 }
  0x1c   : > { %4291 = vmatprep.mubr.msk.bf16.mxu0 %vm4741_vm1, %v4740_v2  ;;  %4297 = vmatprep.mubr.msk.bf16.mxu1 %vm4741_vm1, %v4740_v2  ;;  %v930_v54 = vor.u32 %v929_v52, %v925_v51  ;;  %v4715_v6 = vld [vmem:[%s4804_s25 + $0xa0] sm:$0x1f]   ;;  %v3978_v15 = vld [vmem:[%s4804_s25 + $0xe8] sm:$0xf]  ;;  %v4716_v16 = vld [vmem:[%s4804_s25 + $0x18] sm:$0x1f]  }
  0x1d   : > { %4301 = vmatprep.subr.bf16.mxu0 %v4740_v2  ;;  %4307 = vmatprep.subr.bf16.mxu1 %v4740_v2  ;;  %v1080_v59 = vor.u32 %v1079_v58, %v1075_v57  ;;  %v1232_v5 = vrot.slane %v1230_v62, 1  ;;  %v1380_v10 = vshll.u32 %v4715_v6, 16  ;;  %v3976_v11 = vld [vmem:[%s4804_s25 + $0xa0] sm:$0xf]  ;;  %v1378_v12 = vshrl.u32 %v4715_v6, 16 }
  0x1e   : > { %v1530_v17 = vshll.u32 %v4716_v16, 16  ;;  %v3984_v18 = vld [vmem:[%s4804_s25 + $0x18] sm:$0xf]  ;;  %v3986_v19 = vld [vmem:[%s4804_s25 + $0x60] sm:$0xf]  ;;  %v1528_v20 = vshrl.u32 %v4716_v16, 16 }
  0x1f   : > { %v1233_v9 = vor.u32 %v1232_v5, %v1228_v1  ;;  %v1382_v13 = vrot.slane %v1380_v10, 1  ;;  %v4717_v24 = vld [vmem:[%s4804_s25 + $0x18] sm:$0x1f]   ;;  %v4001_v37 = vld [vmem:[%s4804_s25 + $0xa8] sm:$0xf] }
  0x20   : > { %v1532_v23 = vrot.slane %v1530_v17, 1  ;;  %v1683_v26 = vshll.u32 %v4717_v24, 16  ;;  %v3993_v33 = vld [vmem:[%s4804_s25 + $0x18] sm:$0xf]  ;;  %v4003_v38 = vld [vmem:[%s4804_s25 + $0xf0] sm:$0xf] }
  0x21   : > { %v1383_v14 = vor.u32 %v1382_v13, %v1378_v12  ;;  %v4719_v41 = vld [vmem:[%s4804_s25 + $0x20] sm:$0x1f]   ;;  %v4011_v48 = vld [vmem:[%s4804_s25 + $0x68] sm:$0xf]  ;;  %v4721_v55 = vld [vmem:[%s4804_s25 + $0xb0] sm:$0x1f]  }
  0x22   : > { %4292 = vmatmul.mubr.msk.bf16.vlgmr.msra.gmra.mrb[8].mxu0 %vm193_vm2, %v3928_v28  ;;  %4298 = vmatmul.mubr.msk.bf16.vlgmr.msra.gmra.mrb[8].mxu1 %vm193_vm2, %v459_v27  ;;  %v1533_v25 = vor.u32 %v1532_v23, %v1528_v20  ;;  %v3994_v27 = vld [vmem:[%s4804_s25 + $0x60] sm:$0xf]  ;;  %v1681_v28 = vshrl.u32 %v4717_v24, 16  ;;  %v1685_v31 = vrot.slane %v1683_v26, 1  ;;  %v1983_v43 = vshll.u32 %v4719_v41, 16 }
  0x23   : > { %4302 = vmatpush3.bf16.msra.mxu0 %v4857_v29  ;;  %4308 = vmatpush3.bf16.msra.mxu1 %v4860_v30  ;;  %v4009_v44 = vld [vmem:[%s4804_s25 + $0x20] sm:$0xf]  ;;  %v4019_v51 = vld [vmem:[%s4804_s25 + $0x68] sm:$0xf]  ;;  %v2286_v57 = vshll.u32 %v4721_v55, 16 }
  0x24   : > { %4303 = vmatprep.mubr.msk.bf16.mxu0 %vm4741_vm1, %v4740_v2  ;;  %4309 = vmatprep.mubr.msk.bf16.mxu1 %vm4741_vm1, %v4740_v2  ;;  %v1686_v32 = vor.u32 %v1685_v31, %v1681_v28  ;;  %v4018_v52 = vld [vmem:[%s4804_s25 + $0x20] sm:$0xf]  ;;  %v4026_v58 = vld [vmem:[%s4804_s25 + $0xb0] sm:$0xf]  ;;  %v4028_v62 = vld [vmem:[%s4804_s25 + $0xf8] sm:$0xf] }
  0x25   : > { %4313 = vmatprep.subr.bf16.mxu0 %v4740_v2  ;;  %4319 = vmatprep.subr.bf16.mxu1 %v4740_v2  ;;  %v4034_v1 = vld [vmem:[%s4804_s25 + $0x28] sm:$0xf]  ;;  %v4036_v5 = vld [vmem:[%s4804_s25 + $0x70] sm:$0xf]  ;;  %v4051_v20 = vld [vmem:[%s4804_s25 + $0xb8] sm:$0xf] }
  0x26   : > { %v4723_v10 = vld [vmem:[%s4804_s25 + $0x28] sm:$0x1f]   ;;  %v4044_v13 = vld [vmem:[%s4804_s25 + $0x70] sm:$0xf]  ;;  %v4053_v23 = vld [vmem:[%s4804_s25 + $0x100] sm:$0xf] }
  0x27   : > { %v2589_v12 = vshll.u32 %v4723_v10, 16  ;;  %v4043_v17 = vld [vmem:[%s4804_s25 + $0x28] sm:$0xf]  ;;  %v4725_v26 = vld [vmem:[%s4804_s25 + $0x30] sm:$0x1f]  }
  0x28   : > { %v2889_v28 = vshll.u32 %v4725_v26, 16  ;;  %v4059_v31 = vld [vmem:[%s4804_s25 + $0x30] sm:$0xf] }
  0x2a   : > { %4304 = vmatmul.mubr.msk.bf16.vlgmr.msra.gmra.mrb[12].mxu0 %vm193_vm2, %v3934_v34  ;;  %4310 = vmatmul.mubr.msk.bf16.vlgmr.msra.gmra.mrb[12].mxu1 %vm193_vm2, %v3936_v35  ;;  %v4718_v34 = vld [vmem:[%s4804_s25 + $0xa8] sm:$0x1f]  }
  0x2b   : > { %4314 = vmatpush3.bf16.msra.mxu0 %v4879_v36  ;;  %4320 = vmatpush3.bf16.msra.mxu1 %v4778_v3  ;;  %v1833_v35 = vshll.u32 %v4718_v34, 16  ;;  %v1831_v39 = vshrl.u32 %v4718_v34, 16 }
  0x2c   : > { %4315 = vmatprep.mubr.msk.bf16.mxu0 %vm4741_vm1, %v4740_v2  ;;  %4321 = vmatprep.mubr.msk.bf16.mxu1 %vm4741_vm1, %v4740_v2 }
  0x2d   : > { %4325 = vmatprep.subr.bf16.mxu0 %v4740_v2  ;;  %4331 = vmatprep.subr.bf16.mxu1 %v4740_v2 }
  0x32   : > { %4316 = vmatmul.mubr.msk.bf16.vlgmr.msra.gmra.mrb[16].mxu0 %vm193_vm2, %v618_v40  ;;  %4322 = vmatmul.mubr.msk.bf16.vlgmr.msra.gmra.mrb[16].mxu1 %vm193_vm2, %v3944_v42  ;;  %v1835_v40 = vrot.slane %v1833_v35, 1  ;;  %v4061_v35 = vld [vmem:[%s4804_s25 + $0x78] sm:$0xf] }
  0x33   : > { %4326 = vmatpush3.bf16.msra.mxu0 %v4782_v4  ;;  %4332 = vmatpush3.bf16.msra.mxu1 %v4807_v7 }
  0x34   : > { %4327 = vmatprep.mubr.msk.bf16.mxu0 %vm4741_vm1, %v4740_v2  ;;  %4333 = vmatprep.mubr.msk.bf16.mxu1 %vm4741_vm1, %v4740_v2  ;;  %v1836_v42 = vor.u32 %v1835_v40, %v1831_v39 }
  0x35   : > { %4337 = vmatprep.subr.bf16.mxu0 %v4740_v2  ;;  %4343 = vmatprep.subr.bf16.mxu1 %v4740_v2 }
  0x3a   : > { %4328 = vmatmul.mubr.msk.bf16.vlgmr.msra.gmra.mrb[20].mxu0 %vm193_vm2, %v3943_v45  ;;  %4334 = vmatmul.mubr.msk.bf16.vlgmr.msra.gmra.mrb[20].mxu1 %vm193_vm2, %v780_v46  ;;  %v1981_v45 = vshrl.u32 %v4719_v41, 16  ;;  %v1985_v46 = vrot.slane %v1983_v43, 1 }
  0x3b   : > { %4338 = vmatpush3.bf16.msra.mxu0 %v4810_v8  ;;  %4344 = vmatpush3.bf16.msra.mxu1 %v4834_v21 }
  0x3c   : > { %4339 = vmatprep.mubr.msk.bf16.mxu0 %vm4741_vm1, %v4740_v2  ;;  %4345 = vmatprep.mubr.msk.bf16.mxu1 %vm4741_vm1, %v4740_v2  ;;  %v1986_v47 = vor.u32 %v1985_v46, %v1981_v45  ;;  %v4069_v46 = vld [vmem:[%s4804_s25 + $0x78] sm:$0xf] }
  0x3d   : > { %4349 = vmatprep.subr.bf16.mxu0 %v4740_v2  ;;  %4355 = vmatprep.subr.bf16.mxu1 %v4740_v2 }
  0x42   : > { %4340 = vmatmul.mubr.msk.bf16.vlgmr.msra.gmra.mrb[24].mxu0 %vm193_vm2, %v3951_v49  ;;  %4346 = vmatmul.mubr.msk.bf16.vlgmr.msra.gmra.mrb[24].mxu1 %vm193_vm2, %v3953_v50  ;;  %v4720_v49 = vld [vmem:[%s4804_s25 + $0x20] sm:$0x1f]  }
  0x43   : > { %4350 = vmatpush3.bf16.msra.mxu0 %v4837_v22  ;;  %4356 = vmatpush3.bf16.msra.mxu1 %v4857_v29  ;;  %v2136_v50 = vshll.u32 %v4720_v49, 16  ;;  %v2134_v53 = vshrl.u32 %v4720_v49, 16 }
  0x44   : > { %4351 = vmatprep.mubr.msk.bf16.mxu0 %vm4741_vm1, %v4740_v2  ;;  %4357 = vmatprep.mubr.msk.bf16.mxu1 %vm4741_vm1, %v4740_v2 }
  0x45   : > { %4361 = vmatprep.subr.bf16.mxu0 %v4740_v2  ;;  %4367 = vmatprep.subr.bf16.mxu1 %v4740_v2 }
  0x4a   : > { %4352 = vmatmul.mubr.msk.bf16.vlgmr.msra.gmra.mrb[28].mxu0 %vm193_vm2, %v930_v54  ;;  %4358 = vmatmul.mubr.msk.bf16.vlgmr.msra.gmra.mrb[28].mxu1 %vm193_vm2, %v3959_v56  ;;  %v2138_v54 = vrot.slane %v2136_v50, 1 }
  0x4b   : > { %4362 = vmatpush3.bf16.msra.mxu0 %v4860_v30  ;;  %4368 = vmatpush3.bf16.msra.mxu1 %v4879_v36 }
  0x4c   : > { %4363 = vmatprep.mubr.msk.bf16.mxu0 %vm4741_vm1, %v4740_v2  ;;  %4369 = vmatprep.mubr.msk.bf16.mxu1 %vm4741_vm1, %v4740_v2  ;;  %v2139_v56 = vor.u32 %v2138_v54, %v2134_v53 }
  0x4d   : > { %4373 = vmatprep.subr.bf16.mxu0 %v4740_v2  ;;  %4379 = vmatprep.subr.bf16.mxu1 %v4740_v2 }
  0x52   : > { %4364 = vmatmul.mubr.msk.bf16.vlgmr.msra.gmra.mrb[32].mxu0 %vm193_vm2, %v3961_v60  ;;  %4370 = vmatmul.mubr.msk.bf16.vlgmr.msra.gmra.mrb[32].mxu1 %vm193_vm2, %v1080_v59  ;;  %v2284_v59 = vshrl.u32 %v4721_v55, 16  ;;  %v2288_v60 = vrot.slane %v2286_v57, 1 }
  0x53   : > { %4374 = vmatpush3.bf16.msra.mxu0 %v4778_v3  ;;  %4380 = vmatpush3.bf16.msra.mxu1 %v4782_v4 }
  0x54   : > { %4375 = vmatprep.mubr.msk.bf16.mxu0 %vm4741_vm1, %v4740_v2  ;;  %4381 = vmatprep.mubr.msk.bf16.mxu1 %vm4741_vm1, %v4740_v2  ;;  %v2289_v61 = vor.u32 %v2288_v60, %v2284_v59 }
  0x55   : > { %4385 = vmatprep.subr.bf16.mxu0 %v4740_v2  ;;  %4391 = vmatprep.subr.bf16.mxu1 %v4740_v2 }
  0x5a   : > { %4376 = vmatmul.mubr.msk.bf16.vlgmr.msra.gmra.mrb[36].mxu0 %vm193_vm2, %v3969_v63  ;;  %4382 = vmatmul.mubr.msk.bf16.vlgmr.msra.gmra.mrb[36].mxu1 %vm193_vm2, %v3968_v0  ;;  %v4722_v63 = vld [vmem:[%s4804_s25 + $0x28] sm:$0x1f]  }
  0x5b   : > { %4386 = vmatpush3.bf16.msra.mxu0 %v4807_v7  ;;  %4392 = vmatpush3.bf16.msra.mxu1 %v4810_v8  ;;  %v2436_v0 = vshll.u32 %v4722_v63, 16  ;;  %v2434_v6 = vshrl.u32 %v4722_v63, 16 }
  0x5c   : > { %4387 = vmatprep.mubr.msk.bf16.mxu0 %vm4741_vm1, %v4740_v2  ;;  %4393 = vmatprep.mubr.msk.bf16.mxu1 %vm4741_vm1, %v4740_v2 }
  0x5d   : > { %4397 = vmatprep.subr.bf16.mxu0 %v4740_v2  ;;  %4403 = vmatprep.subr.bf16.mxu1 %v4740_v2 }
  0x62   : > { %4388 = vmatmul.mubr.msk.bf16.vlgmr.msra.gmra.mrb[40].mxu0 %vm193_vm2, %v1233_v9  ;;  %4394 = vmatmul.mubr.msk.bf16.vlgmr.msra.gmra.mrb[40].mxu1 %vm193_vm2, %v3976_v11  ;;  %v2438_v9 = vrot.slane %v2436_v0, 1 }
  0x63   : > { %4398 = vmatpush3.bf16.msra.mxu0 %v4834_v21  ;;  %4404 = vmatpush3.bf16.msra.mxu1 %v4837_v22 }
  0x64   : > { %4399 = vmatprep.mubr.msk.bf16.mxu0 %vm4741_vm1, %v4740_v2  ;;  %4405 = vmatprep.mubr.msk.bf16.mxu1 %vm4741_vm1, %v4740_v2  ;;  %v2439_v11 = vor.u32 %v2438_v9, %v2434_v6 }
  0x65   : > { %4409 = vmatprep.subr.bf16.mxu0 %v4740_v2  ;;  %4415 = vmatprep.subr.bf16.mxu1 %v4740_v2 }
  0x6a   : > { %4400 = vmatmul.mubr.msk.bf16.vlgmr.msra.gmra.mrb[44].mxu0 %vm193_vm2, %v3978_v15  ;;  %4406 = vmatmul.mubr.msk.bf16.vlgmr.msra.gmra.mrb[44].mxu1 %vm193_vm2, %v1383_v14  ;;  %v2587_v14 = vshrl.u32 %v4723_v10, 16  ;;  %v2591_v15 = vrot.slane %v2589_v12, 1 }
  0x6b   : > { %4410 = vmatpush3.bf16.msra.mxu0 %v4857_v29  ;;  %4416 = vmatpush3.bf16.msra.mxu1 %v4860_v30 }
  0x6c   : > { %4411 = vmatprep.mubr.msk.bf16.mxu0 %vm4741_vm1, %v4740_v2  ;;  %4417 = vmatprep.mubr.msk.bf16.mxu1 %vm4741_vm1, %v4740_v2  ;;  %v2592_v16 = vor.u32 %v2591_v15, %v2587_v14 }
  0x6d   : > { %4421 = vmatprep.subr.bf16.mxu0 %v4740_v2  ;;  %4427 = vmatprep.subr.bf16.mxu1 %v4740_v2 }
  0x72   : > { %4412 = vmatmul.mubr.msk.bf16.vlgmr.msra.gmra.mrb[48].mxu0 %vm193_vm2, %v3984_v18  ;;  %4418 = vmatmul.mubr.msk.bf16.vlgmr.msra.gmra.mrb[48].mxu1 %vm193_vm2, %v3986_v19  ;;  %v4724_v18 = vld [vmem:[%s4804_s25 + $0xb8] sm:$0x1f]  }
  0x73   : > { %4422 = vmatpush3.bf16.msra.mxu0 %v4879_v36  ;;  %4428 = vmatpush3.bf16.msra.mxu1 %v4778_v3  ;;  %v2739_v19 = vshll.u32 %v4724_v18, 16  ;;  %v2737_v24 = vshrl.u32 %v4724_v18, 16 }
  0x74   : > { %4423 = vmatprep.mubr.msk.bf16.mxu0 %vm4741_vm1, %v4740_v2  ;;  %4429 = vmatprep.mubr.msk.bf16.mxu1 %vm4741_vm1, %v4740_v2 }
  0x75   : > { %4433 = vmatprep.subr.bf16.mxu0 %v4740_v2  ;;  %4439 = vmatprep.subr.bf16.mxu1 %v4740_v2 }
  0x7a   : > { %4424 = vmatmul.mubr.msk.bf16.vlgmr.msra.gmra.mrb[52].mxu0 %vm193_vm2, %v1533_v25  ;;  %4430 = vmatmul.mubr.msk.bf16.vlgmr.msra.gmra.mrb[52].mxu1 %vm193_vm2, %v3994_v27  ;;  %v2741_v25 = vrot.slane %v2739_v19, 1 }
  0x7b   : > { %4434 = vmatpush3.bf16.msra.mxu0 %v4782_v4  ;;  %4440 = vmatpush3.bf16.msra.mxu1 %v4807_v7 }
  0x7c   : > { %4435 = vmatprep.mubr.msk.bf16.mxu0 %vm4741_vm1, %v4740_v2  ;;  %4441 = vmatprep.mubr.msk.bf16.mxu1 %vm4741_vm1, %v4740_v2  ;;  %v2742_v27 = vor.u32 %v2741_v25, %v2737_v24 }
  0x7d   : > { %4445 = vmatprep.subr.bf16.mxu0 %v4740_v2  ;;  %4451 = vmatprep.subr.bf16.mxu1 %v4740_v2 }
  0x82   : > { %4436 = vmatmul.mubr.msk.bf16.vlgmr.msra.gmra.mrb[56].mxu0 %vm193_vm2, %v3993_v33  ;;  %4442 = vmatmul.mubr.msk.bf16.vlgmr.msra.gmra.mrb[56].mxu1 %vm193_vm2, %v1686_v32  ;;  %v2887_v32 = vshrl.u32 %v4725_v26, 16  ;;  %v2891_v33 = vrot.slane %v2889_v28, 1 }
  0x83   : > { %4446 = vmatpush3.bf16.msra.mxu0 %v4810_v8  ;;  %4452 = vmatpush3.bf16.msra.mxu1 %v4834_v21 }
  0x84   : > { %4447 = vmatprep.mubr.msk.bf16.mxu0 %vm4741_vm1, %v4740_v2  ;;  %4453 = vmatprep.mubr.msk.bf16.mxu1 %vm4741_vm1, %v4740_v2  ;;  %v2892_v34 = vor.u32 %v2891_v33, %v2887_v32 }
  0x85   : > { %4457 = vmatprep.subr.bf16.mxu0 %v4740_v2  ;;  %4463 = vmatprep.subr.bf16.mxu1 %v4740_v2 }
  0x8a   : > { %4448 = vmatmul.mubr.msk.bf16.vlgmr.msra.gmra.mrb[60].mxu0 %vm193_vm2, %v4001_v37  ;;  %4454 = vmatmul.mubr.msk.bf16.vlgmr.msra.gmra.mrb[60].mxu1 %vm193_vm2, %v4003_v38  ;;  %v4726_v37 = vld [vmem:[%s4804_s25 + $0x30] sm:$0x1f]  }
  0x8b   : > { %4458 = vmatpush3.bf16.msra.mxu0 %v4837_v22  ;;  %4464 = vmatpush3.bf16.msra.mxu1 %v4857_v29  ;;  %v3042_v43 = vshll.u32 %v4726_v37, 16  ;;  %v3040_v50 = vshrl.u32 %v4726_v37, 16 }
  0x8c   : > { %4459 = vmatprep.mubr.msk.bf16.mxu0 %vm4741_vm1, %v4740_v2  ;;  %4465 = vmatprep.mubr.msk.bf16.mxu1 %vm4741_vm1, %v4740_v2 }
  0x8d   : > { %4469 = vmatprep.subr.bf16.mxu0 %v4740_v2  ;;  %4475 = vmatprep.subr.bf16.mxu1 %v4740_v2 }
  0x92   : > { %4460 = vmatmul.mubr.msk.bf16.vlgmr.msra.gmra.mrb[64].mxu0 %vm193_vm2, %v1836_v42  ;;  %4466 = vmatmul.mubr.msk.bf16.vlgmr.msra.gmra.mrb[64].mxu1 %vm193_vm2, %v4009_v44 }
  0x93   : > { %4470 = vmatpush3.bf16.msra.mxu0 %v4860_v30  ;;  %4476 = vmatpush3.bf16.msra.mxu1 %v4879_v36 }
  0x94   : > { %4471 = vmatprep.mubr.msk.bf16.mxu0 %vm4741_vm1, %v4740_v2  ;;  %4477 = vmatprep.mubr.msk.bf16.mxu1 %vm4741_vm1, %v4740_v2 }
  0x95   : > { %4481 = vmatprep.subr.bf16.mxu0 %v4740_v2  ;;  %4487 = vmatprep.subr.bf16.mxu1 %v4740_v2 }
  0x9a   : > { %4472 = vmatmul.mubr.msk.bf16.vlgmr.msra.gmra.mrb[68].mxu0 %vm193_vm2, %v4011_v48  ;;  %4478 = vmatmul.mubr.msk.bf16.vlgmr.msra.gmra.mrb[68].mxu1 %vm193_vm2, %v1986_v47  ;;  %v4068_v47 = vld [vmem:[%s4804_s25 + $0x30] sm:$0xf] }
  0x9b   : > { %4482 = vmatpush3.bf16.msra.mxu0 %v4778_v3  ;;  %4488 = vmatpush3.bf16.msra.mxu1 %v4782_v4 }
  0x9c   : > { %4483 = vmatprep.mubr.msk.bf16.mxu0 %vm4741_vm1, %v4740_v2  ;;  %4489 = vmatprep.mubr.msk.bf16.mxu1 %vm4741_vm1, %v4740_v2 }
  0x9d   : > { %4493 = vmatprep.subr.bf16.mxu0 %v4740_v2  ;;  %4499 = vmatprep.subr.bf16.mxu1 %v4740_v2 }
  0xa2   : > { %4484 = vmatmul.mubr.msk.bf16.vlgmr.msra.gmra.mrb[72].mxu0 %vm193_vm2, %v4019_v51  ;;  %4490 = vmatmul.mubr.msk.bf16.vlgmr.msra.gmra.mrb[72].mxu1 %vm193_vm2, %v4018_v52  ;;  %v3044_v51 = vrot.slane %v3042_v43, 1  ;;  %v4727_v52 = vld [vmem:[%s4804_s25 + $0xc0] sm:$0x1f]  }
  0xa3   : > { %4494 = vmatpush3.bf16.msra.mxu0 %v4807_v7  ;;  %4500 = vmatpush3.bf16.msra.mxu1 %v4810_v8  ;;  %v3192_v59 = vshll.u32 %v4727_v52, 16  ;;  %v5217_v43 = vld [vmem:[%s5304_s2] ss:$0 sm:$0xff] }
  0xa4   : > { %4495 = vmatprep.mubr.msk.bf16.mxu0 %vm4741_vm1, %v4740_v2  ;;  %4501 = vmatprep.mubr.msk.bf16.mxu1 %vm4741_vm1, %v4740_v2 }
  0xa5   : > { %4505 = vmatprep.subr.bf16.mxu0 %v4740_v2  ;;  %4511 = vmatprep.subr.bf16.mxu1 %v4740_v2  ;;  %v3194_v6 = vrot.slane %v3192_v59, 1 }
  0xaa   : > { %4496 = vmatmul.mubr.msk.bf16.vlgmr.msra.gmra.mrb[76].mxu0 %vm193_vm2, %v2139_v56  ;;  %4502 = vmatmul.mubr.msk.bf16.vlgmr.msra.gmra.mrb[76].mxu1 %vm193_vm2, %v4026_v58  ;;  %v3045_v58 = vor.u32 %v3044_v51, %v3040_v50 }
  0xab   : > { %4506 = vmatpush3.bf16.msra.mxu0 %v4834_v21  ;;  %4512 = vmatpush3.bf16.msra.mxu1 %v4837_v22 }
  0xac   : > { %4507 = vmatprep.mubr.msk.bf16.mxu0 %vm4741_vm1, %v4740_v2  ;;  %4513 = vmatprep.mubr.msk.bf16.mxu1 %vm4741_vm1, %v4740_v2 }
  0xad   : > { %4517 = vmatprep.subr.bf16.mxu0 %v4740_v2  ;;  %4523 = vmatprep.subr.bf16.mxu1 %v4740_v2 }
  0xb2   : > { %4508 = vmatmul.mubr.msk.bf16.vlgmr.msra.gmra.mrb[80].mxu0 %vm193_vm2, %v4028_v62  ;;  %4514 = vmatmul.mubr.msk.bf16.vlgmr.msra.gmra.mrb[80].mxu1 %vm193_vm2, %v2289_v61  ;;  %v4076_v62 = vld [vmem:[%s4804_s25 + $0xc0] sm:$0xf] }
  0xb3   : > { %4518 = vmatpush3.bf16.msra.mxu0 %v4857_v29  ;;  %4524 = vmatpush3.bf16.msra.mxu1 %v4860_v30 }
  0xb4   : > { %4519 = vmatprep.mubr.msk.bf16.mxu0 %vm4741_vm1, %v4740_v2  ;;  %4525 = vmatprep.mubr.msk.bf16.mxu1 %vm4741_vm1, %v4740_v2 }
  0xb5   : > { %4529 = vmatprep.subr.bf16.mxu0 %v4740_v2  ;;  %4535 = vmatprep.subr.bf16.mxu1 %v4740_v2 }
  0xba   : > { %4520 = vmatmul.mubr.msk.bf16.vlgmr.msra.gmra.mrb[84].mxu0 %vm193_vm2, %v4034_v1  ;;  %4526 = vmatmul.mubr.msk.bf16.vlgmr.msra.gmra.mrb[84].mxu1 %vm193_vm2, %v4036_v5  ;;  %v3190_v5 = vshrl.u32 %v4727_v52, 16  ;;  %v4094_v52 = vld [vmem:[%s4804_s25 + $0x80] sm:$0xf] }
  0xbb   : > { %4530 = vmatpush3.bf16.msra.mxu0 %v4879_v36  ;;  %4536 = vmatpush3.bf16.msra.mxu1 %v4778_v3 }
  0xbc   : > { %4531 = vmatprep.mubr.msk.bf16.mxu0 %vm4741_vm1, %v4740_v2  ;;  %4537 = vmatprep.mubr.msk.bf16.mxu1 %vm4741_vm1, %v4740_v2  ;;  %v3195_v14 = vor.u32 %v3194_v6, %v3190_v5  ;;  %v4093_v6 = vld [vmem:[%s4804_s25 + $0x38] sm:$0xf] }
  0xbd   : > { %4541 = vmatprep.subr.bf16.mxu0 %v4740_v2  ;;  %4547 = vmatprep.subr.bf16.mxu1 %v4740_v2 }
  0xc2   : > { %4532 = vmatmul.mubr.msk.bf16.vlgmr.msra.gmra.mrb[88].mxu0 %vm193_vm2, %v2439_v11  ;;  %4538 = vmatmul.mubr.msk.bf16.vlgmr.msra.gmra.mrb[88].mxu1 %vm193_vm2, %v4044_v13 }
  0xc3   : > { %4542 = vmatpush3.bf16.msra.mxu0 %v4782_v4  ;;  %4548 = vmatpush3.bf16.msra.mxu1 %v4807_v7 }
  0xc4   : > { %4543 = vmatprep.mubr.msk.bf16.mxu0 %vm4741_vm1, %v4740_v2  ;;  %4549 = vmatprep.mubr.msk.bf16.mxu1 %vm4741_vm1, %v4740_v2 }
  0xc5   : > { %4553 = vmatprep.subr.bf16.mxu0 %v4740_v2  ;;  %4559 = vmatprep.subr.bf16.mxu1 %v4740_v2 }
  0xca   : > { %4544 = vmatmul.mubr.msk.bf16.vlgmr.msra.gmra.mrb[92].mxu0 %vm193_vm2, %v4043_v17  ;;  %4550 = vmatmul.mubr.msk.bf16.vlgmr.msra.gmra.mrb[92].mxu1 %vm193_vm2, %v2592_v16  ;;  %v4078_v17 = vld [vmem:[%s4804_s25 + $0x108] sm:$0xf] }
  0xcb   : > { %4554 = vmatpush3.bf16.msra.mxu0 %v4810_v8  ;;  %4560 = vmatpush3.bf16.msra.mxu1 %v4834_v21 }
  0xcc   : > { %4555 = vmatprep.mubr.msk.bf16.mxu0 %vm4741_vm1, %v4740_v2  ;;  %4561 = vmatprep.mubr.msk.bf16.mxu1 %vm4741_vm1, %v4740_v2 }
  0xcd   : > { %4565 = vmatprep.subr.bf16.mxu0 %v4740_v2  ;;  %4571 = vmatprep.subr.bf16.mxu1 %v4740_v2 }
  0xd2   : > { %4556 = vmatmul.mubr.msk.bf16.vlgmr.msra.gmra.mrb[96].mxu0 %vm193_vm2, %v4051_v20  ;;  %4562 = vmatmul.mubr.msk.bf16.vlgmr.msra.gmra.mrb[96].mxu1 %vm193_vm2, %v4053_v23  ;;  %v4728_v23 = vld [vmem:[%s4804_s25 + $0x38] sm:$0x1f]  }
  0xd3   : > { %4566 = vmatpush3.bf16.msra.mxu0 %v4837_v22  ;;  %4572 = vmatpush3.bf16.msra.mxu1 %v4857_v29 }
  0xd4   : > { %4567 = vmatprep.mubr.msk.bf16.mxu0 %vm4741_vm1, %v4740_v2  ;;  %4573 = vmatprep.mubr.msk.bf16.mxu1 %vm4741_vm1, %v4740_v2 }
  0xd5   : > { %4577 = vmatprep.subr.bf16.mxu0 %v4740_v2  ;;  %4583 = vmatprep.subr.bf16.mxu1 %v4740_v2 }
  0xda   : > { %4568 = vmatmul.mubr.msk.bf16.vlgmr.msra.gmra.mrb[100].mxu0 %vm193_vm2, %v2742_v27  ;;  %4574 = vmatmul.mubr.msk.bf16.vlgmr.msra.gmra.mrb[100].mxu1 %vm193_vm2, %v4059_v31  ;;  %v3342_v31 = vshll.u32 %v4728_v23, 16 }
  0xdb   : > { %4578 = vmatpush3.bf16.msra.mxu0 %v4860_v30  ;;  %4584 = vmatpush3.bf16.msra.mxu1 %v4879_v36 }
  0xdc   : > { %4579 = vmatprep.mubr.msk.bf16.mxu0 %vm4741_vm1, %v4740_v2  ;;  %4585 = vmatprep.mubr.msk.bf16.mxu1 %vm4741_vm1, %v4740_v2 }
  0xdd   : > { %4589 = vmatprep.subr.bf16.mxu0 %v4740_v2  ;;  %4595 = vmatprep.subr.bf16.mxu1 %v4740_v2 }
  0xe2   : > { %4580 = vmatmul.mubr.msk.bf16.vlgmr.msra.gmra.mrb[104].mxu0 %vm193_vm2, %v4061_v35  ;;  %4586 = vmatmul.mubr.msk.bf16.vlgmr.msra.gmra.mrb[104].mxu1 %vm193_vm2, %v2892_v34  ;;  %v4084_v34 = vld [vmem:[%s4804_s25 + $0x38] sm:$0xf]  ;;  %v4086_v35 = vld [vmem:[%s4804_s25 + $0x80] sm:$0xf] }
  0xe3   : > { %4590 = vmatpush3.bf16.msra.mxu0 %v4778_v3  ;;  %4596 = vmatpush3.bf16.msra.mxu1 %v4782_v4 }
  0xe4   : > { %4591 = vmatprep.mubr.msk.bf16.mxu0 %vm4741_vm1, %v4740_v2  ;;  %4597 = vmatprep.mubr.msk.bf16.mxu1 %vm4741_vm1, %v4740_v2 }
  0xe5   : > { %v235_v38 = vpop.f32.mrb[0].mxu0  ;;  %v281_v39 = vpop.f32.mrb[0].mxu1  ;;  %4601 = vmatprep.subr.bf16.mxu0 %v4740_v2  ;;  %4607 = vmatprep.subr.bf16.mxu1 %v4740_v2 }
  0xe6   : > { %v282_v40 = vadd.f32 %v281_v39, %v235_v38  ;;  %v4269_v41 = vpop.f32.mrb[1].mxu0  ;;  %v4275_v42 = vpop.f32.mrb[1].mxu1 }
  0xe7   : > { %v238_v44 = vpop.f32.mrb[2].mxu0  ;;  %v284_v45 = vpop.f32.mrb[2].mxu1  ;;  %v3344_v41 = vrot.slane %v3342_v31, 1  ;;  %v4729_v42 = vld [vmem:[%s4804_s25 + $0x38] sm:$0x1f]  }
  0xe8   : > { %v4270_v48 = vpop.f32.mrb[3].mxu0  ;;  %v4276_v49 = vpop.f32.mrb[3].mxu1 }
  0xe9   : > { %v3495_v49 = vshll.u32 %v4729_v42, 16 }
  0xea   : > { %4592 = vmatmul.mubr.msk.bf16.vlgmr.msra.gmra.mrb[108].mxu0 %vm193_vm2, %v4069_v46  ;;  %4598 = vmatmul.mubr.msk.bf16.vlgmr.msra.gmra.mrb[108].mxu1 %vm193_vm2, %v4068_v47 }
  0xeb   : > { %4602 = vmatpush3.bf16.msra.mxu0 %v4807_v7  ;;  %4608 = vmatpush3.bf16.msra.mxu1 %v4810_v8 }
  0xec   : > { %4603 = vmatprep.mubr.msk.bf16.mxu0 %vm4741_vm1, %v4740_v2  ;;  %4609 = vmatprep.mubr.msk.bf16.mxu1 %vm4741_vm1, %v4740_v2 }
  0xed   : > { %v341_v53 = vpop.f32.mrb[4].mxu0  ;;  %v390_v54 = vpop.f32.mrb[4].mxu1  ;;  %4613 = vmatprep.subr.bf16.mxu0 %v4740_v2  ;;  %4619 = vmatprep.subr.bf16.mxu1 %v4740_v2 }
  0xee   : > { %v347_v55 = vadd.f32 %v341_v53, %v282_v40  ;;  %v4281_v56 = vpop.f32.mrb[5].mxu0  ;;  %v4287_v57 = vpop.f32.mrb[5].mxu1  ;;  %v3340_v40 = vshrl.u32 %v4728_v23, 16 }
  0xef   : > { %v344_v60 = vpop.f32.mrb[6].mxu0  ;;  %v393_v61 = vpop.f32.mrb[6].mxu1  ;;  %v3493_v57 = vshrl.u32 %v4729_v42, 16 }
  0xf0   : > { %v396_v63 = vadd.f32 %v390_v54, %v347_v55  ;;  %v4282_v0 = vpop.f32.mrb[7].mxu0  ;;  %v4288_v1 = vpop.f32.mrb[7].mxu1  ;;  %v3345_v48 = vor.u32 %v3344_v41, %v3340_v40 }
  0xf2   : > { %4604 = vmatmul.mubr.msk.bf16.vlgmr.msra.gmra.mrb[112].mxu0 %vm193_vm2, %v3045_v58  ;;  %4610 = vmatmul.mubr.msk.bf16.vlgmr.msra.gmra.mrb[112].mxu1 %vm193_vm2, %v4076_v62  ;;  %v3497_v58 = vrot.slane %v3495_v49, 1 }
  0xf3   : > { %4614 = vmatpush3.bf16.msra.mxu0 %v4834_v21  ;;  %4620 = vmatpush3.bf16.msra.mxu1 %v4837_v22 }
  0xf4   : > { %4615 = vmatprep.mubr.msk.bf16.mxu0 %vm4741_vm1, %v4740_v2  ;;  %4621 = vmatprep.mubr.msk.bf16.mxu1 %vm4741_vm1, %v4740_v2  ;;  %v3498_v0 = vor.u32 %v3497_v58, %v3493_v57 }
  0xf5   : > { %v439_v9 = vpop.f32.mrb[8].mxu0  ;;  %v500_v10 = vpop.f32.mrb[8].mxu1  ;;  %4625 = vmatprep.subr.bf16.mxu0 %v4740_v2  ;;  %4631 = vmatprep.subr.bf16.mxu1 %v4740_v2 }
  0xf6   : > { %v445_v11 = vadd.f32 %v439_v9, %v396_v63  ;;  %v4293_v12 = vpop.f32.mrb[9].mxu0  ;;  %v4299_v13 = vpop.f32.mrb[9].mxu1 }
  0xf7   : > { %v442_v15 = vpop.f32.mrb[10].mxu0  ;;  %v503_v16 = vpop.f32.mrb[10].mxu1  ;;  %v4730_v12 = vld [vmem:[%s4804_s25 + $0xc8] sm:$0x1f]  }
  0xf8   : > { %v506_v18 = vadd.f32 %v500_v10, %v445_v11  ;;  %v4294_v19 = vpop.f32.mrb[11].mxu0  ;;  %v4300_v20 = vpop.f32.mrb[11].mxu1 }
  0xf9   : > { %v4103_v20 = vld [vmem:[%s4804_s25 + $0x110] sm:$0xf] }
  0xfa   : > { %4616 = vmatmul.mubr.msk.bf16.vlgmr.msra.gmra.mrb[116].mxu0 %vm193_vm2, %v4078_v17  ;;  %4622 = vmatmul.mubr.msk.bf16.vlgmr.msra.gmra.mrb[116].mxu1 %vm193_vm2, %v3195_v14 }
  0xfb   : > { %4626 = vmatpush3.bf16.msra.mxu0 %v4857_v29  ;;  %4632 = vmatpush3.bf16.msra.mxu1 %v4860_v30 }
  0xfc   : > { %4627 = vmatprep.mubr.msk.bf16.mxu0 %vm4741_vm1, %v4740_v2  ;;  %4633 = vmatprep.mubr.msk.bf16.mxu1 %vm4741_vm1, %v4740_v2 }
  0xfd   : > { %v549_v24 = vpop.f32.mrb[12].mxu0  ;;  %v598_v25 = vpop.f32.mrb[12].mxu1  ;;  %4637 = vmatprep.subr.bf16.mxu0 %v4740_v2  ;;  %4643 = vmatprep.subr.bf16.mxu1 %v4740_v2 }
  0xfe   : > { %v555_v26 = vadd.f32 %v549_v24, %v506_v18  ;;  %v4305_v27 = vpop.f32.mrb[13].mxu0  ;;  %v4311_v28 = vpop.f32.mrb[13].mxu1  ;;  %v3645_v18 = vshll.u32 %v4730_v12, 16 }
  0xff   : > { %v552_v32 = vpop.f32.mrb[14].mxu0  ;;  %v601_v33 = vpop.f32.mrb[14].mxu1  ;;  %v4731_v28 = vld [vmem:[%s4804_s25 + $0x40] sm:$0x1f]  }
 0x100   : > { %v604_v37 = vadd.f32 %v598_v25, %v555_v26  ;;  %v4306_v38 = vpop.f32.mrb[15].mxu0  ;;  %v4312_v39 = vpop.f32.mrb[15].mxu1  ;;  %v3643_v26 = vshrl.u32 %v4730_v12, 16  ;;  %v3647_v27 = vrot.slane %v3645_v18, 1 }
 0x101   : > { %v3795_v38 = vshll.u32 %v4731_v28, 16 }
 0x102   : > { %4628 = vmatmul.mubr.msk.bf16.vlgmr.msra.gmra.mrb[120].mxu0 %vm193_vm2, %v4084_v34  ;;  %4634 = vmatmul.mubr.msk.bf16.vlgmr.msra.gmra.mrb[120].mxu1 %vm193_vm2, %v4086_v35 }
 0x103   : > { %4638 = vmatpush3.bf16.msra.mxu0 %v4879_v36  ;;  %4644 = vmatpush3.bf16.msra.mxu1 %v4778_v3 }
 0x104   : > { %4639 = vmatprep.mubr.msk.bf16.mxu0 %vm4741_vm1, %v4740_v2  ;;  %4645 = vmatprep.mubr.msk.bf16.mxu1 %vm4741_vm1, %v4740_v2 }
 0x105   : > { %v659_v44 = vpop.f32.mrb[16].mxu0  ;;  %v718_v45 = vpop.f32.mrb[16].mxu1  ;;  %4649 = vmatprep.subr.bf16.mxu0 %v4740_v2  ;;  %4655 = vmatprep.subr.bf16.mxu1 %v4740_v2 }
 0x106   : > { %v665_v46 = vadd.f32 %v659_v44, %v604_v37  ;;  %v4317_v3 = vpop.f32.mrb[17].mxu0  ;;  %v4323_v47 = vpop.f32.mrb[17].mxu1  ;;  %v3648_v37 = vor.u32 %v3647_v27, %v3643_v26  ;;  %v3793_v44 = vshrl.u32 %v4731_v28, 16 }
 0x107   : > { %v662_v50 = vpop.f32.mrb[18].mxu0  ;;  %v721_v51 = vpop.f32.mrb[18].mxu1 }
 0x108   : > { %v672_v53 = vadd.f32 %v5217_v43, %v665_v46  ;;  %v4318_v54 = vpop.f32.mrb[19].mxu0  ;;  %v4324_v55 = vpop.f32.mrb[19].mxu1 }
 0x10a   : > { %vm673_vm3 = vcmp.ge.f32.partialorder %v672_v53, 0.0  ;;  %v674_v56 = vmul.f32 0.1, %v672_v53  ;;  %4640 = vmatmul.mubr.msk.bf16.vlgmr.msra.gmra.mrb[124].mxu0 %vm193_vm2, %v3345_v48  ;;  %4646 = vmatmul.mubr.msk.bf16.vlgmr.msra.gmra.mrb[124].mxu1 %vm193_vm2, %v4094_v52 }
 0x10b   : > { %4650 = vmatpush3.bf16.msra.mxu0 %v4782_v4  ;;  %4656 = vmatpush3.bf16.msra.mxu1 %v4807_v7 }
 0x10c   : > { %v675_v59 = vsel %vm673_vm3, %v672_v53, %v674_v56  ;;  %4651 = vmatprep.mubr.msk.bf16.mxu0 %vm4741_vm1, %v4740_v2  ;;  %4657 = vmatprep.mubr.msk.bf16.mxu1 %vm4741_vm1, %v4740_v2  ;;  %v4111_v53 = vld [vmem:[%s4804_s25 + $0x88] sm:$0xf] }
 0x10d   : > { %v676_v60 = vpack.c.bf16 %v675_v59, %v675_v59  ;;  %v761_v61 = vpop.f32.mrb[20].mxu0  ;;  %v818_v4 = vpop.f32.mrb[20].mxu1  ;;  %4661 = vmatprep.subr.bf16.mxu0 %v4740_v2  ;;  %4667 = vmatprep.subr.bf16.mxu1 %v4740_v2 }
 0x10e   : > { %v762_v7 = vadd.f32 %v761_v61, %v718_v45  ;;  %v4329_v62 = vpop.f32.mrb[21].mxu0  ;;  %v4335_v63 = vpop.f32.mrb[21].mxu1  ;;  %v3797_v45 = vrot.slane %v3795_v38, 1 }
 0x10f   : > { %678 = vst.msk [vmem:[%s5231_s16] sm:$0xf] %vm677_vm4, %v676_v60  ;;  %v764_v1 = vpop.f32.mrb[22].mxu0  ;;  %v821_v5 = vpop.f32.mrb[22].mxu1 }
 0x110   : > { %v824_v9 = vadd.f32 %v818_v4, %v762_v7  ;;  %v4330_v10 = vpop.f32.mrb[23].mxu0  ;;  %v4336_v11 = vpop.f32.mrb[23].mxu1  ;;  %v3798_v50 = vor.u32 %v3797_v45, %v3793_v44 }
 0x112   : > { %4652 = vmatmul.mubr.msk.bf16.vlgmr.msra.gmra.mrb[128].mxu0 %vm193_vm2, %v4093_v6  ;;  %4658 = vmatmul.mubr.msk.bf16.vlgmr.msra.gmra.mrb[128].mxu1 %vm193_vm2, %v3498_v0 }
 0x113   : > { %4662 = vmatpush3.bf16.msra.mxu0 %v4810_v8  ;;  %4668 = vmatpush3.bf16.msra.mxu1 %v4834_v21  ;;  %v4101_v21 = vld [vmem:[%s4804_s25 + $0xc8] sm:$0xf] }
 0x114   : > { %4663 = vmatprep.mubr.msk.bf16.mxu0 %vm4741_vm1, %v4740_v2  ;;  %4669 = vmatprep.mubr.msk.bf16.mxu1 %vm4741_vm1, %v4740_v2 }
 0x115   : > { %v864_v13 = vpop.f32.mrb[24].mxu0  ;;  %v910_v14 = vpop.f32.mrb[24].mxu1  ;;  %4673 = vmatprep.subr.bf16.mxu0 %v4740_v2  ;;  %4679 = vmatprep.subr.bf16.mxu1 %v4740_v2 }
 0x116   : > { %v870_v15 = vadd.f32 %v864_v13, %v824_v9  ;;  %v4341_v16 = vpop.f32.mrb[25].mxu0  ;;  %v4347_v17 = vpop.f32.mrb[25].mxu1 }
 0x117   : > { %v867_v8 = vpop.f32.mrb[26].mxu0  ;;  %v913_v19 = vpop.f32.mrb[26].mxu1 }
 0x118   : > { %v916_v23 = vadd.f32 %v910_v14, %v870_v15  ;;  %v4342_v24 = vpop.f32.mrb[27].mxu0  ;;  %v4348_v25 = vpop.f32.mrb[27].mxu1 }
 0x11a   : > { %4664 = vmatmul.mubr.msk.bf16.vlgmr.msra.gmra.mrb[132].mxu0 %vm193_vm2, %v4101_v21  ;;  %4670 = vmatmul.mubr.msk.bf16.vlgmr.msra.gmra.mrb[132].mxu1 %vm193_vm2, %v4103_v20 }
 0x11b   : > { %4674 = vmatpush3.bf16.msra.mxu0 %v4837_v22  ;;  %4680 = vmatpush3.bf16.msra.mxu1 %v4857_v29  ;;  %v4109_v29 = vld [vmem:[%s4804_s25 + $0x40] sm:$0xf] }
 0x11c   : > { %4675 = vmatprep.mubr.msk.bf16.mxu0 %vm4741_vm1, %v4740_v2  ;;  %4681 = vmatprep.mubr.msk.bf16.mxu1 %vm4741_vm1, %v4740_v2 }
 0x11d   : > { %v968_v31 = vpop.f32.mrb[28].mxu0  ;;  %v1014_v32 = vpop.f32.mrb[28].mxu1  ;;  %4685 = vmatprep.subr.bf16.mxu0 %v4740_v2  ;;  %4691 = vmatprep.subr.bf16.mxu1 %v4740_v2 }
 0x11e   : > { %v974_v33 = vadd.f32 %v968_v31, %v916_v23  ;;  %v4353_v34 = vpop.f32.mrb[29].mxu0  ;;  %v4359_v35 = vpop.f32.mrb[29].mxu1 }
 0x11f   : > { %v971_v22 = vpop.f32.mrb[30].mxu0  ;;  %v1017_v39 = vpop.f32.mrb[30].mxu1 }
 0x120   : > { %v1020_v40 = vadd.f32 %v1014_v32, %v974_v33  ;;  %v4354_v41 = vpop.f32.mrb[31].mxu0  ;;  %v4360_v42 = vpop.f32.mrb[31].mxu1 }
 0x122   : > { %4676 = vmatmul.mubr.msk.bf16.vlgmr.msra.gmra.mrb[136].mxu0 %vm193_vm2, %v3648_v37  ;;  %4682 = vmatmul.mubr.msk.bf16.vlgmr.msra.gmra.mrb[136].mxu1 %vm193_vm2, %v4109_v29 }
 0x123   : > { %4686 = vmatpush3.bf16.msra.mxu0 %v4860_v30  ;;  %4692 = vmatpush3.bf16.msra.mxu1 %v4879_v36 }
 0x124   : > { %4687 = vmatprep.mubr.msk.bf16.mxu0 %vm4741_vm1, %v4740_v2  ;;  %4693 = vmatprep.mubr.msk.bf16.mxu1 %vm4741_vm1, %v4740_v2 }
 0x125   : > { %v1060_v46 = vpop.f32.mrb[32].mxu0  ;;  %v1118_v3 = vpop.f32.mrb[32].mxu1 }
 0x126   : > { %v1066_v47 = vadd.f32 %v1060_v46, %v1020_v40  ;;  %v4365_v48 = vpop.f32.mrb[33].mxu0  ;;  %v4371_v49 = vpop.f32.mrb[33].mxu1 }
 0x127   : > { %v1063_v51 = vpop.f32.mrb[34].mxu0  ;;  %v1121_v52 = vpop.f32.mrb[34].mxu1 }
 0x128   : > { %v1124_v54 = vadd.f32 %v1118_v3, %v1066_v47  ;;  %v4366_v55 = vpop.f32.mrb[35].mxu0  ;;  %v4372_v30 = vpop.f32.mrb[35].mxu1 }
 0x12a   : > { %v1125_v36 = vadd.f32 %v5217_v43, %v1124_v54  ;;  %4688 = vmatmul.mubr.msk.bf16.vlgmr.msra.gmra.mrb[140].mxu0 %vm193_vm2, %v4111_v53  ;;  %4694 = vmatmul.mubr.msk.bf16.vlgmr.msra.gmra.mrb[140].mxu1 %vm193_vm2, %v3798_v50 }
 0x12c   : > { %vm1126_vm5 = vcmp.ge.f32.partialorder %v1125_v36, 0.0  ;;  %v1127_v2 = vmul.f32 0.1, %v1125_v36 }
 0x12d   : > { %v1171_v56 = vpop.f32.mrb[36].mxu0  ;;  %v1214_v57 = vpop.f32.mrb[36].mxu1 }
 0x12e   : > { %v1128_v58 = vsel %vm1126_vm5, %v1125_v36, %v1127_v2  ;;  %v1215_v59 = vadd.f32 %v1214_v57, %v1171_v56  ;;  %v4377_v60 = vpop.f32.mrb[37].mxu0  ;;  %v4383_v61 = vpop.f32.mrb[37].mxu1 }
 0x12f   : > { %v1129_v4 = vpack.c.bf16 %v1128_v58, %v1128_v58  ;;  %v1174_v7 = vpop.f32.mrb[38].mxu0  ;;  %v1217_v62 = vpop.f32.mrb[38].mxu1 }
 0x130   : > { %v4378_v63 = vpop.f32.mrb[39].mxu0  ;;  %v4384_v0 = vpop.f32.mrb[39].mxu1 }
 0x131   : > { %3967 = vst.msk [vmem:[%s5231_s16 + $0x4] sm:$0xf] %vm677_vm4, %v1129_v4 }
 0x135   : > { %v1271_v1 = vpop.f32.mrb[40].mxu0  ;;  %v1317_v5 = vpop.f32.mrb[40].mxu1 }
 0x136   : > { %v1277_v6 = vadd.f32 %v1271_v1, %v1215_v59  ;;  %v4389_v9 = vpop.f32.mrb[41].mxu0  ;;  %v4395_v10 = vpop.f32.mrb[41].mxu1 }
 0x137   : > { %v1274_v11 = vpop.f32.mrb[42].mxu0  ;;  %v1320_v12 = vpop.f32.mrb[42].mxu1 }
 0x138   : > { %v1323_v13 = vadd.f32 %v1317_v5, %v1277_v6  ;;  %v4390_v14 = vpop.f32.mrb[43].mxu0  ;;  %v4396_v15 = vpop.f32.mrb[43].mxu1 }
 0x13d   : > { %v1363_v16 = vpop.f32.mrb[44].mxu0  ;;  %v1421_v17 = vpop.f32.mrb[44].mxu1 }
 0x13e   : > { %v1369_v18 = vadd.f32 %v1363_v16, %v1323_v13  ;;  %v4401_v8 = vpop.f32.mrb[45].mxu0  ;;  %v4407_v19 = vpop.f32.mrb[45].mxu1 }
 0x13f   : > { %v1366_v21 = vpop.f32.mrb[46].mxu0  ;;  %v1424_v20 = vpop.f32.mrb[46].mxu1 }
 0x140   : > { %v1427_v23 = vadd.f32 %v1421_v17, %v1369_v18  ;;  %v4402_v24 = vpop.f32.mrb[47].mxu0  ;;  %v4408_v25 = vpop.f32.mrb[47].mxu1 }
 0x145   : > { %v1467_v26 = vpop.f32.mrb[48].mxu0  ;;  %v1513_v27 = vpop.f32.mrb[48].mxu1 }
 0x146   : > { %v1473_v28 = vadd.f32 %v1467_v26, %v1427_v23  ;;  %v4413_v31 = vpop.f32.mrb[49].mxu0  ;;  %v4419_v32 = vpop.f32.mrb[49].mxu1 }
 0x147   : > { %v1470_v33 = vpop.f32.mrb[50].mxu0  ;;  %v1516_v34 = vpop.f32.mrb[50].mxu1 }
 0x148   : > { %v1519_v35 = vadd.f32 %v1513_v27, %v1473_v28  ;;  %v4414_v37 = vpop.f32.mrb[51].mxu0  ;;  %v4420_v38 = vpop.f32.mrb[51].mxu1 }
 0x14d   : > { %v1571_v22 = vpop.f32.mrb[52].mxu0  ;;  %v1624_v39 = vpop.f32.mrb[52].mxu1 }
 0x14e   : > { %v1577_v29 = vadd.f32 %v1571_v22, %v1519_v35  ;;  %v4425_v40 = vpop.f32.mrb[53].mxu0  ;;  %v4431_v41 = vpop.f32.mrb[53].mxu1 }
 0x14f   : > { %v1574_v42 = vpop.f32.mrb[54].mxu0  ;;  %v1627_v44 = vpop.f32.mrb[54].mxu1 }
 0x150   : > { %v1578_v45 = vadd.f32 %v5217_v43, %v1577_v29  ;;  %v4426_v46 = vpop.f32.mrb[55].mxu0  ;;  %v4432_v3 = vpop.f32.mrb[55].mxu1 }
 0x152   : > { %vm1579_vm6 = vcmp.ge.f32.partialorder %v1578_v45, 0.0  ;;  %v1580_v47 = vmul.f32 0.1, %v1578_v45 }
 0x154   : > { %v1581_v48 = vsel %vm1579_vm6, %v1578_v45, %v1580_v47 }
 0x155   : > { %v1582_v49 = vpack.c.bf16 %v1581_v48, %v1581_v48  ;;  %v1667_v50 = vpop.f32.mrb[56].mxu0  ;;  %v1724_v51 = vpop.f32.mrb[56].mxu1 }
 0x156   : > { %v1668_v52 = vadd.f32 %v1667_v50, %v1624_v39  ;;  %v4437_v53 = vpop.f32.mrb[57].mxu0  ;;  %v4443_v54 = vpop.f32.mrb[57].mxu1 }
 0x157   : > { %3992 = vst.msk [vmem:[%s5231_s16 + $0x8] sm:$0xf] %vm677_vm4, %v1582_v49  ;;  %v1670_v55 = vpop.f32.mrb[58].mxu0  ;;  %v1727_v30 = vpop.f32.mrb[58].mxu1 }
 0x158   : > { %v1730_v36 = vadd.f32 %v1724_v51, %v1668_v52  ;;  %v4438_v2 = vpop.f32.mrb[59].mxu0  ;;  %v4444_v56 = vpop.f32.mrb[59].mxu1 }
 0x15d   : > { %v1770_v57 = vpop.f32.mrb[60].mxu0  ;;  %v1816_v58 = vpop.f32.mrb[60].mxu1 }
 0x15e   : > { %v1776_v59 = vadd.f32 %v1770_v57, %v1730_v36  ;;  %v4449_v60 = vpop.f32.mrb[61].mxu0  ;;  %v4455_v61 = vpop.f32.mrb[61].mxu1 }
 0x15f   : > { %v1773_v4 = vpop.f32.mrb[62].mxu0  ;;  %v1819_v7 = vpop.f32.mrb[62].mxu1 }
 0x160   : > { %v1822_v62 = vadd.f32 %v1816_v58, %v1776_v59  ;;  %v4450_v63 = vpop.f32.mrb[63].mxu0  ;;  %v4456_v0 = vpop.f32.mrb[63].mxu1 }
 0x165   : > { %v1874_v1 = vpop.f32.mrb[64].mxu0  ;;  %v1920_v5 = vpop.f32.mrb[64].mxu1 }
 0x166   : > { %v1880_v6 = vadd.f32 %v1874_v1, %v1822_v62  ;;  %v4461_v9 = vpop.f32.mrb[65].mxu0  ;;  %v4467_v10 = vpop.f32.mrb[65].mxu1 }
 0x167   : > { %v1877_v11 = vpop.f32.mrb[66].mxu0  ;;  %v1923_v12 = vpop.f32.mrb[66].mxu1 }
 0x168   : > { %v1926_v13 = vadd.f32 %v1920_v5, %v1880_v6  ;;  %v4462_v14 = vpop.f32.mrb[67].mxu0  ;;  %v4468_v15 = vpop.f32.mrb[67].mxu1 }
 0x16d   : > { %v1966_v16 = vpop.f32.mrb[68].mxu0  ;;  %v2024_v17 = vpop.f32.mrb[68].mxu1 }
 0x16e   : > { %v1972_v18 = vadd.f32 %v1966_v16, %v1926_v13  ;;  %v4473_v8 = vpop.f32.mrb[69].mxu0  ;;  %v4479_v19 = vpop.f32.mrb[69].mxu1 }
 0x16f   : > { %v1969_v21 = vpop.f32.mrb[70].mxu0  ;;  %v2027_v20 = vpop.f32.mrb[70].mxu1 }
 0x170   : > { %v2030_v23 = vadd.f32 %v2024_v17, %v1972_v18  ;;  %v4474_v24 = vpop.f32.mrb[71].mxu0  ;;  %v4480_v25 = vpop.f32.mrb[71].mxu1 }
 0x172   : > { %v2031_v26 = vadd.f32 %v5217_v43, %v2030_v23 }
 0x174   : > { %vm2032_vm7 = vcmp.ge.f32.partialorder %v2031_v26, 0.0  ;;  %v2033_v27 = vmul.f32 0.1, %v2031_v26 }
 0x175   : > { %v2077_v28 = vpop.f32.mrb[72].mxu0  ;;  %v2120_v31 = vpop.f32.mrb[72].mxu1 }
 0x176   : > { %v2034_v32 = vsel %vm2032_vm7, %v2031_v26, %v2033_v27  ;;  %v2121_v33 = vadd.f32 %v2120_v31, %v2077_v28  ;;  %v4485_v34 = vpop.f32.mrb[73].mxu0  ;;  %v4491_v35 = vpop.f32.mrb[73].mxu1 }
 0x177   : > { %v2035_v37 = vpack.c.bf16 %v2034_v32, %v2034_v32  ;;  %v2080_v38 = vpop.f32.mrb[74].mxu0  ;;  %v2123_v22 = vpop.f32.mrb[74].mxu1 }
 0x178   : > { %v4486_v39 = vpop.f32.mrb[75].mxu0  ;;  %v4492_v29 = vpop.f32.mrb[75].mxu1 }
 0x179   : > { %4017 = vst.msk [vmem:[%s5231_s16 + $0xc] sm:$0xf] %vm677_vm4, %v2035_v37 }
 0x17d   : > { %v2177_v40 = vpop.f32.mrb[76].mxu0  ;;  %v2223_v41 = vpop.f32.mrb[76].mxu1 }
 0x17e   : > { %v2183_v42 = vadd.f32 %v2177_v40, %v2121_v33  ;;  %v4497_v44 = vpop.f32.mrb[77].mxu0  ;;  %v4503_v45 = vpop.f32.mrb[77].mxu1 }
 0x17f   : > { %v2180_v46 = vpop.f32.mrb[78].mxu0  ;;  %v2226_v3 = vpop.f32.mrb[78].mxu1 }
 0x180   : > { %v2229_v47 = vadd.f32 %v2223_v41, %v2183_v42  ;;  %v4498_v48 = vpop.f32.mrb[79].mxu0  ;;  %v4504_v49 = vpop.f32.mrb[79].mxu1 }
 0x185   : > { %v2269_v50 = vpop.f32.mrb[80].mxu0  ;;  %v2327_v51 = vpop.f32.mrb[80].mxu1 }
 0x186   : > { %v2275_v52 = vadd.f32 %v2269_v50, %v2229_v47  ;;  %v4509_v53 = vpop.f32.mrb[81].mxu0  ;;  %v4515_v54 = vpop.f32.mrb[81].mxu1 }
 0x187   : > { %v2272_v55 = vpop.f32.mrb[82].mxu0  ;;  %v2330_v30 = vpop.f32.mrb[82].mxu1 }
 0x188   : > { %v2333_v36 = vadd.f32 %v2327_v51, %v2275_v52  ;;  %v4510_v2 = vpop.f32.mrb[83].mxu0  ;;  %v4516_v56 = vpop.f32.mrb[83].mxu1 }
 0x18d   : > { %v2373_v57 = vpop.f32.mrb[84].mxu0  ;;  %v2419_v58 = vpop.f32.mrb[84].mxu1 }
 0x18e   : > { %v2379_v59 = vadd.f32 %v2373_v57, %v2333_v36  ;;  %v4521_v60 = vpop.f32.mrb[85].mxu0  ;;  %v4527_v61 = vpop.f32.mrb[85].mxu1 }
 0x18f   : > { %v2376_v4 = vpop.f32.mrb[86].mxu0  ;;  %v2422_v7 = vpop.f32.mrb[86].mxu1 }
 0x190   : > { %v2425_v62 = vadd.f32 %v2419_v58, %v2379_v59  ;;  %v4522_v63 = vpop.f32.mrb[87].mxu0  ;;  %v4528_v0 = vpop.f32.mrb[87].mxu1 }
 0x195   : > { %v2477_v1 = vpop.f32.mrb[88].mxu0  ;;  %v2530_v5 = vpop.f32.mrb[88].mxu1 }
 0x196   : > { %v2483_v6 = vadd.f32 %v2477_v1, %v2425_v62  ;;  %v4533_v9 = vpop.f32.mrb[89].mxu0  ;;  %v4539_v10 = vpop.f32.mrb[89].mxu1 }
 0x197   : > { %v2480_v11 = vpop.f32.mrb[90].mxu0  ;;  %v2533_v12 = vpop.f32.mrb[90].mxu1 }
 0x198   : > { %v2484_v13 = vadd.f32 %v5217_v43, %v2483_v6  ;;  %v4534_v14 = vpop.f32.mrb[91].mxu0  ;;  %v4540_v15 = vpop.f32.mrb[91].mxu1 }
 0x19a   : > { %vm2485_vm8 = vcmp.ge.f32.partialorder %v2484_v13, 0.0  ;;  %v2486_v16 = vmul.f32 0.1, %v2484_v13 }
 0x19c   : > { %v2487_v17 = vsel %vm2485_vm8, %v2484_v13, %v2486_v16 }
 0x19d   : > { %v2488_v18 = vpack.c.bf16 %v2487_v17, %v2487_v17  ;;  %v2573_v8 = vpop.f32.mrb[92].mxu0  ;;  %v2630_v19 = vpop.f32.mrb[92].mxu1 }
 0x19e   : > { %v2574_v21 = vadd.f32 %v2573_v8, %v2530_v5  ;;  %v4545_v20 = vpop.f32.mrb[93].mxu0  ;;  %v4551_v23 = vpop.f32.mrb[93].mxu1 }
 0x19f   : > { %4042 = vst.msk [vmem:[%s5231_s16 + $0x10] sm:$0xf] %vm677_vm4, %v2488_v18  ;;  %v2576_v24 = vpop.f32.mrb[94].mxu0  ;;  %v2633_v25 = vpop.f32.mrb[94].mxu1 }
 0x1a0   : > { %v2636_v26 = vadd.f32 %v2630_v19, %v2574_v21  ;;  %v4546_v27 = vpop.f32.mrb[95].mxu0  ;;  %v4552_v28 = vpop.f32.mrb[95].mxu1 }
 0x1a5   : > { %v2676_v31 = vpop.f32.mrb[96].mxu0  ;;  %v2722_v32 = vpop.f32.mrb[96].mxu1 }
 0x1a6   : > { %v2682_v33 = vadd.f32 %v2676_v31, %v2636_v26  ;;  %v4557_v34 = vpop.f32.mrb[97].mxu0  ;;  %v4563_v35 = vpop.f32.mrb[97].mxu1 }
 0x1a7   : > { %v2679_v37 = vpop.f32.mrb[98].mxu0  ;;  %v2725_v38 = vpop.f32.mrb[98].mxu1 }
 0x1a8   : > { %v2728_v22 = vadd.f32 %v2722_v32, %v2682_v33  ;;  %v4558_v39 = vpop.f32.mrb[99].mxu0  ;;  %v4564_v29 = vpop.f32.mrb[99].mxu1 }
 0x1ad   : > { %v2780_v40 = vpop.f32.mrb[100].mxu0  ;;  %v2826_v41 = vpop.f32.mrb[100].mxu1 }
 0x1ae   : > { %v2786_v42 = vadd.f32 %v2780_v40, %v2728_v22  ;;  %v4569_v44 = vpop.f32.mrb[101].mxu0  ;;  %v4575_v45 = vpop.f32.mrb[101].mxu1 }
 0x1af   : > { %v2783_v46 = vpop.f32.mrb[102].mxu0  ;;  %v2829_v3 = vpop.f32.mrb[102].mxu1 }
 0x1b0   : > { %v2832_v47 = vadd.f32 %v2826_v41, %v2786_v42  ;;  %v4570_v48 = vpop.f32.mrb[103].mxu0  ;;  %v4576_v49 = vpop.f32.mrb[103].mxu1 }
 0x1b5   : > { %v2872_v50 = vpop.f32.mrb[104].mxu0  ;;  %v2930_v51 = vpop.f32.mrb[104].mxu1 }
 0x1b6   : > { %v2878_v52 = vadd.f32 %v2872_v50, %v2832_v47  ;;  %v4581_v53 = vpop.f32.mrb[105].mxu0  ;;  %v4587_v54 = vpop.f32.mrb[105].mxu1 }
 0x1b7   : > { %v2875_v55 = vpop.f32.mrb[106].mxu0  ;;  %v2933_v30 = vpop.f32.mrb[106].mxu1 }
 0x1b8   : > { %v2936_v36 = vadd.f32 %v2930_v51, %v2878_v52  ;;  %v4582_v2 = vpop.f32.mrb[107].mxu0  ;;  %v4588_v56 = vpop.f32.mrb[107].mxu1 }
 0x1ba   : > { %v2937_v57 = vadd.f32 %v5217_v43, %v2936_v36 }
 0x1bc   : > { %vm2938_vm9 = vcmp.ge.f32.partialorder %v2937_v57, 0.0  ;;  %v2939_v58 = vmul.f32 0.1, %v2937_v57 }
 0x1bd   : > { %v2983_v59 = vpop.f32.mrb[108].mxu0  ;;  %v3026_v60 = vpop.f32.mrb[108].mxu1 }
 0x1be   : > { %v2940_v61 = vsel %vm2938_vm9, %v2937_v57, %v2939_v58  ;;  %v3027_v4 = vadd.f32 %v3026_v60, %v2983_v59  ;;  %v4593_v7 = vpop.f32.mrb[109].mxu0  ;;  %v4599_v62 = vpop.f32.mrb[109].mxu1 }
 0x1bf   : > { %v2941_v63 = vpack.c.bf16 %v2940_v61, %v2940_v61  ;;  %v2986_v0 = vpop.f32.mrb[110].mxu0  ;;  %v3029_v1 = vpop.f32.mrb[110].mxu1 }
 0x1c0   : > { %v4594_v5 = vpop.f32.mrb[111].mxu0  ;;  %v4600_v6 = vpop.f32.mrb[111].mxu1 }
 0x1c1   : > { %4067 = vst.msk [vmem:[%s5231_s16 + $0x14] sm:$0xf] %vm677_vm4, %v2941_v63 }
 0x1c5   : > { %v3083_v9 = vpop.f32.mrb[112].mxu0  ;;  %v3129_v10 = vpop.f32.mrb[112].mxu1 }
 0x1c6   : > { %v3089_v11 = vadd.f32 %v3083_v9, %v3027_v4  ;;  %v4605_v12 = vpop.f32.mrb[113].mxu0  ;;  %v4611_v13 = vpop.f32.mrb[113].mxu1 }
 0x1c7   : > { %v3086_v14 = vpop.f32.mrb[114].mxu0  ;;  %v3132_v15 = vpop.f32.mrb[114].mxu1 }
 0x1c8   : > { %v3135_v16 = vadd.f32 %v3129_v10, %v3089_v11  ;;  %v4606_v17 = vpop.f32.mrb[115].mxu0  ;;  %v4612_v18 = vpop.f32.mrb[115].mxu1 }
 0x1cd   : > { %v3175_v8 = vpop.f32.mrb[116].mxu0  ;;  %v3233_v19 = vpop.f32.mrb[116].mxu1 }
 0x1ce   : > { %v3181_v21 = vadd.f32 %v3175_v8, %v3135_v16  ;;  %v4617_v20 = vpop.f32.mrb[117].mxu0  ;;  %v4623_v23 = vpop.f32.mrb[117].mxu1 }
 0x1cf   : > { %v3178_v24 = vpop.f32.mrb[118].mxu0  ;;  %v3236_v25 = vpop.f32.mrb[118].mxu1 }
 0x1d0   : > { %v3239_v26 = vadd.f32 %v3233_v19, %v3181_v21  ;;  %v4618_v27 = vpop.f32.mrb[119].mxu0  ;;  %v4624_v28 = vpop.f32.mrb[119].mxu1 }
 0x1d5   : > { %v3279_v31 = vpop.f32.mrb[120].mxu0  ;;  %v3325_v32 = vpop.f32.mrb[120].mxu1 }
 0x1d6   : > { %v3285_v33 = vadd.f32 %v3279_v31, %v3239_v26  ;;  %v4629_v34 = vpop.f32.mrb[121].mxu0  ;;  %v4635_v35 = vpop.f32.mrb[121].mxu1 }
 0x1d7   : > { %v3282_v37 = vpop.f32.mrb[122].mxu0  ;;  %v3328_v38 = vpop.f32.mrb[122].mxu1 }
 0x1d8   : > { %v3331_v22 = vadd.f32 %v3325_v32, %v3285_v33  ;;  %v4630_v39 = vpop.f32.mrb[123].mxu0  ;;  %v4636_v29 = vpop.f32.mrb[123].mxu1 }
 0x1dd   : > { %v3383_v40 = vpop.f32.mrb[124].mxu0  ;;  %v3436_v41 = vpop.f32.mrb[124].mxu1 }
 0x1de   : > { %v3389_v42 = vadd.f32 %v3383_v40, %v3331_v22  ;;  %v4641_v44 = vpop.f32.mrb[125].mxu0  ;;  %v4647_v45 = vpop.f32.mrb[125].mxu1 }
 0x1df   : > { %v3386_v46 = vpop.f32.mrb[126].mxu0  ;;  %v3439_v3 = vpop.f32.mrb[126].mxu1 }
 0x1e0   : > { %v3390_v47 = vadd.f32 %v5217_v43, %v3389_v42  ;;  %v4642_v48 = vpop.f32.mrb[127].mxu0  ;;  %v4648_v49 = vpop.f32.mrb[127].mxu1 }
 0x1e2   : > { %vm3391_vm10 = vcmp.ge.f32.partialorder %v3390_v47, 0.0  ;;  %v3392_v50 = vmul.f32 0.1, %v3390_v47 }
 0x1e4   : > { %v3393_v51 = vsel %vm3391_vm10, %v3390_v47, %v3392_v50 }
 0x1e5   : > { %v3394_v52 = vpack.c.bf16 %v3393_v51, %v3393_v51  ;;  %v3479_v53 = vpop.f32.mrb[128].mxu0  ;;  %v3536_v54 = vpop.f32.mrb[128].mxu1 }
 0x1e6   : > { %v3480_v55 = vadd.f32 %v3479_v53, %v3436_v41  ;;  %v4653_v30 = vpop.f32.mrb[129].mxu0  ;;  %v4659_v36 = vpop.f32.mrb[129].mxu1 }
 0x1e7   : > { %4092 = vst.msk [vmem:[%s5231_s16 + $0x18] sm:$0xf] %vm677_vm4, %v3394_v52  ;;  %v3482_v2 = vpop.f32.mrb[130].mxu0  ;;  %v3539_v56 = vpop.f32.mrb[130].mxu1 }
 0x1e8   : > { %v3542_v57 = vadd.f32 %v3536_v54, %v3480_v55  ;;  %v4654_v58 = vpop.f32.mrb[131].mxu0  ;;  %v4660_v59 = vpop.f32.mrb[131].mxu1 }
 0x1ed   : > { %v3582_v60 = vpop.f32.mrb[132].mxu0  ;;  %v3628_v61 = vpop.f32.mrb[132].mxu1 }
 0x1ee   : > { %v3588_v4 = vadd.f32 %v3582_v60, %v3542_v57  ;;  %v4665_v7 = vpop.f32.mrb[133].mxu0  ;;  %v4671_v62 = vpop.f32.mrb[133].mxu1 }
 0x1ef   : > { %v3585_v63 = vpop.f32.mrb[134].mxu0  ;;  %v3631_v0 = vpop.f32.mrb[134].mxu1 }
 0x1f0   : > { %v3634_v1 = vadd.f32 %v3628_v61, %v3588_v4  ;;  %v4666_v5 = vpop.f32.mrb[135].mxu0  ;;  %v4672_v6 = vpop.f32.mrb[135].mxu1 }
 0x1f5   : > { %v3686_v9 = vpop.f32.mrb[136].mxu0  ;;  %v3732_v10 = vpop.f32.mrb[136].mxu1 }
 0x1f6   : > { %v3692_v11 = vadd.f32 %v3686_v9, %v3634_v1  ;;  %v4677_v12 = vpop.f32.mrb[137].mxu0  ;;  %v4683_v13 = vpop.f32.mrb[137].mxu1 }
 0x1f7   : > { %v3689_v14 = vpop.f32.mrb[138].mxu0  ;;  %v3735_v15 = vpop.f32.mrb[138].mxu1 }
 0x1f8   : > { %v3738_v16 = vadd.f32 %v3732_v10, %v3692_v11  ;;  %v4678_v17 = vpop.f32.mrb[139].mxu0  ;;  %v4684_v18 = vpop.f32.mrb[139].mxu1 }
 0x1fd   : > { %v3778_v8 = vpop.f32.mrb[140].mxu0  ;;  %v3836_v19 = vpop.f32.mrb[140].mxu1 }
 0x1fe   : > { %v3784_v21 = vadd.f32 %v3778_v8, %v3738_v16  ;;  %v4689_v20 = vpop.f32.mrb[141].mxu0  ;;  %v4695_v23 = vpop.f32.mrb[141].mxu1 }
 0x1ff   : > { %v3781_v24 = vpop.f32.mrb[142].mxu0  ;;  %v3839_v25 = vpop.f32.mrb[142].mxu1 }
 0x200   : > { %v3842_v26 = vadd.f32 %v3836_v19, %v3784_v21  ;;  %v4690_v27 = vpop.f32.mrb[143].mxu0  ;;  %v4696_v28 = vpop.f32.mrb[143].mxu1 }
 0x202   : > { %v3843_v31 = vadd.f32 %v5217_v43, %v3842_v26 }
 0x204   : > { %vm3844_vm11 = vcmp.ge.f32.partialorder %v3843_v31, 0.0  ;;  %v3845_v32 = vmul.f32 0.1, %v3843_v31 }
 0x206   : > { %v3846_v33 = vsel %vm3844_vm11, %v3843_v31, %v3845_v32 }
 0x207   : > { %v3847_v34 = vpack.c.bf16 %v3846_v33, %v3846_v33 }
 0x209   : > { %4117 = vst.msk [vmem:[%s5231_s16 + $0x1c] sm:$0xf] %vm677_vm4, %v3847_v34 }
 0x20a PF: > { %s13_s12 = sadd.s32 1, %s4738_s12  }
 0x20b   : > { %p10_p4 = scmp.ge.s32.totalorder %s13_s12, 4  }
 0x20d   :  { %12 = sbr.rel (!%p10_p4) target bundleno = 1 (0x1), region = 110 }

</bundles_post_ra>
